<compile_context>
chip_gen: v7x
topology: tpu7x:2x2x1
jax: 0.10.0
libtpu: 0.0.40
codegen_flags: <defaults>
</compile_context>

<pallas_src>
import math

import jax
import jax.numpy as jnp
from jax import lax
from jax.experimental import pallas as pl
from jax.experimental.pallas import tpu as pltpu


def _round_up(x, m):
    return ((x + m - 1) // m) * m


def _choose_tile(n_padded, tile_n, min_blocks):
    """Largest multiple-of-128 tile that divides n_padded and is <= tile_n.

    Avoids dead padded columns (tile always divides the padded N) and, when
    min_blocks > 1, shrinks the tile so megacore (v7x, 2 TCs) has at least
    two parallel grid blocks to split.
    """
    m = n_padded // 128
    tile = 128
    for d in range(min(m, max(1, tile_n // 128)), 0, -1):
        if m % d == 0:
            tile = 128 * d
            break
    if min_blocks > 1 and n_padded // tile < min_blocks:
        for d in range(m // min_blocks, 0, -1):
            if m % d == 0:
                tile = 128 * d
                break
    return tile


# ----------------------------------------------------------------------------
# Fused sin/cos with shared range reduction (Cephes-style, f32).
# ----------------------------------------------------------------------------
_TWO_OVER_PI = 0.636619772367581343
_PIO2_1 = 1.5703125                    # pi/2 split into three f32-exact pieces
_PIO2_2 = 4.837512969970703125e-4
_PIO2_3 = 7.54978995489188216e-8
_S1, _S2, _S3 = -1.6666654611e-1, 8.3321608736e-3, -1.9515295891e-4
_C1, _C2, _C3 = 4.166664568298827e-2, -1.388731625493765e-3, 2.443315711809948e-5


def _sincos(x):
    """Return (sin(x), cos(x)) in f32 using one shared range reduction."""
    n = jnp.floor(x * _TWO_OVER_PI + 0.5)          # nearest multiple of pi/2
    q = n.astype(jnp.int32)
    r = ((x - n * _PIO2_1) - n * _PIO2_2) - n * _PIO2_3
    r2 = r * r
    sp = r + r * r2 * (_S1 + r2 * (_S2 + r2 * _S3))
    cp = 1.0 - 0.5 * r2 + r2 * r2 * (_C1 + r2 * (_C2 + r2 * _C3))
    odd = (q & 1) == 1
    ge2 = (q & 2) != 0
    sin_base = jnp.where(odd, cp, sp)
    cos_base = jnp.where(odd, sp, cp)
    sin_v = jnp.where(ge2, -sin_base, sin_base)
    cos_v = jnp.where(jnp.logical_xor(odd, ge2), -cos_base, cos_base)
    return sin_v, cos_v


# ----------------------------------------------------------------------------
# Kernel
# ----------------------------------------------------------------------------
def _make_rffnet_kernel(in_features, n_extra_linears, relu_flags):
    """Kernel over one (group c, point-tile n) grid cell.

    ref order: xT, B, W1 (sqrt(2) folded in), b1, [W_i, b_i]*n_extra, o.
    Every ref has a leading block dim of 1 (the group axis); feature tensors
    live transposed (features, tile_n) with tile_n on the lanes.
    """

    def kernel(*refs):
        xT_ref, B_ref, W1_ref, b1_ref = refs[:4]
        o_ref = refs[-1]

        xT = xT_ref[0]                             # (in_features, tn)
        Bm = B_ref[0]                              # (half, in_features)

        # --- RFF projection (K = in_features is tiny -> VPU broadcast FMAs,
        #     avoids a nearly-empty MXU matmul fill/drain) --------------------
        if in_features <= 8:
            projT = Bm[:, 0:1] * xT[0:1, :]
            for i in range(1, in_features):
                projT = projT + Bm[:, i:i + 1] * xT[i:i + 1, :]
        else:
            projT = jnp.dot(Bm, xT, preferred_element_type=jnp.float32)

        # --- embedding: fused sincos + aligned sublane concat ---------------
        s, c = _sincos(projT)                      # (half, tn) each
        emb = jnp.concatenate([s, c], axis=0)      # (2*half, tn)

        # --- first linear: single K = 2*half matmul --------------------------
        W1 = W1_ref[0]                             # (out1, 2*half), sqrt(2) folded
        b1 = b1_ref[0]                             # (out1, 1)
        h = jnp.dot(W1, emb, preferred_element_type=jnp.float32) + b1
        if relu_flags[0]:
            h = jnp.maximum(h, 0.0)

        # --- remaining EinsumLinear layers -----------------------------------
        idx = 4
        for li in range(n_extra_linears):
            W = refs[idx][0]                       # (out_i, in_i)
            b = refs[idx + 1][0]                   # (out_i, 1)
            h = jnp.dot(W, h, preferred_element_type=jnp.float32) + b
            if relu_flags[li + 1]:
                h = jnp.maximum(h, 0.0)
            idx += 2

        o_ref[0] = h.astype(o_ref.dtype)           # (out_features, tn)

    return kernel


# ----------------------------------------------------------------------------
# Wrappers
# ----------------------------------------------------------------------------
def rffnet_forward_transposed(xT, params, *, tile_n=2048):
    """Transposed end-to-end entry point (no wrapper HBM transpose passes).

    xT: (C, in_features, N) float32  ->  returns (C, out_features, N).
    """
    C, in_features, N = xT.shape

    B = params["B"]
    hidden = list(params["hidden"])
    W_out, b_out = params["out"]
    out_features = W_out.shape[1]
    half = B.shape[1]

    linears = hidden + [(W_out, b_out)]
    relu_flags = [True] * len(hidden) + [False]

    # Fold the sqrt(2) embedding correction into the first linear's weight.
    W1, b1 = linears[0]
    out1 = W1.shape[1]
    W1f = W1 * math.sqrt(2.0)                      # (C, out1, 2*half)
    extra = linears[1:]

    # Pad N only to a multiple of 128; tile divides the padded N exactly.
    Np = _round_up(N, 128)
    if Np != N:
        xT = jnp.pad(xT, ((0, 0), (0, 0), (0, Np - N)))
    min_blocks = 1 if C >= 2 else 2                # v7x megacore: >=2 blocks
    tile = _choose_tile(Np, tile_n, min_blocks)

    operands = [xT, B, W1f, b1.reshape(C, out1, 1)]
    in_specs = [
        pl.BlockSpec((1, in_features, tile), lambda c, n: (c, 0, n)),
        pl.BlockSpec((1, half, in_features), lambda c, n: (c, 0, 0)),
        pl.BlockSpec((1, out1, 2 * half), lambda c, n: (c, 0, 0)),
        pl.BlockSpec((1, out1, 1), lambda c, n: (c, 0, 0)),
    ]
    for (W, b) in extra:
        od, idim = W.shape[1], W.shape[2]
        operands.append(W)
        in_specs.append(pl.BlockSpec((1, od, idim), lambda c, n: (c, 0, 0)))
        operands.append(b.reshape(C, od, 1))
        in_specs.append(pl.BlockSpec((1, od, 1), lambda c, n: (c, 0, 0)))

    kernel = _make_rffnet_kernel(in_features, len(extra), relu_flags)

    outT = pl.pallas_call(
        kernel,
        out_shape=jax.ShapeDtypeStruct((C, out_features, Np), xT.dtype),
        grid_spec=pltpu.PrefetchScalarGridSpec(
            num_scalar_prefetch=0,
            grid=(C, Np // tile),                  # C outer, n-tiles inner
            in_specs=in_specs,
            out_specs=pl.BlockSpec((1, out_features, tile),
                                   lambda c, n: (c, 0, n)),
        ),
        compiler_params=pltpu.CompilerParams(
            dimension_semantics=("parallel", "parallel"),
        ),
    )(*operands)

    if Np != N:
        outT = outT[:, :, :N]
    return outT


def rffnet_forward(x, params, *, tile_n=2048):
    """Torch-interface forward: x (C, N, in_features) -> (C, N, out_features).

    Layout plumbing only; callers that can hold the (C, features, N) layout
    should use rffnet_forward_transposed directly and skip both swapaxes.
    """
    xT = jnp.swapaxes(x, 1, 2)
    outT = rffnet_forward_transposed(xT, params, tile_n=tile_n)
    return jnp.swapaxes(outT, 1, 2)


# ----------------------------------------------------------------------------
# Params + pure-JAX reference
# ----------------------------------------------------------------------------
def init_rffnet_params(key, in_features, hidden_features, out_features,
                       sigma, batch_size):
    """Deterministic synthetic init mirroring RFFNet.__init__ / init()."""
    assert hidden_features[0] % 2 == 0
    keys = jax.random.split(key, 2 + 2 * len(hidden_features))
    half = hidden_features[0] // 2

    # RFFEmb buffer B: randn(C, half, in) * sigma * 2 * pi
    B = jax.random.normal(keys[0], (batch_size, half, in_features),
                          jnp.float32) * (sigma * 2.0 * math.pi)

    dims = list(hidden_features)
    hidden = []
    ki = 1
    for i in range(len(dims) - 1):
        fan_in = dims[i]
        std = math.sqrt(2.0 / fan_in)  # kaiming_normal_, nonlinearity='relu'
        W = jax.random.normal(keys[ki], (batch_size, dims[i + 1], fan_in),
                              jnp.float32) * std
        b = jnp.zeros((batch_size, dims[i + 1]), jnp.float32)
        hidden.append((W, b))
        ki += 1

    fan_in = dims[-1]
    std = math.sqrt(1.0 / fan_in)      # kaiming_normal_, nonlinearity='linear'
    W_out = jax.random.normal(keys[ki], (batch_size, out_features, fan_in),
                              jnp.float32) * std
    b_out = jnp.zeros((batch_size, out_features), jnp.float32)

    return {"B": B, "hidden": hidden, "out": (W_out, b_out)}


def rffnet_reference(x, params):
    """Pure-JAX reference of the torch forward (for verification)."""
    hp = lax.Precision.HIGHEST
    B = params["B"]
    proj = jnp.einsum("cna,cba->cnb", x, B, precision=hp)
    h = jnp.concatenate([jnp.sin(proj), jnp.cos(proj)], axis=-1) * math.sqrt(2.0)
    for (W, b) in params["hidden"]:
        h = jnp.einsum("cna,cba->cnb", h, W, precision=hp) + b[:, None, :]
        h = jnp.maximum(h, 0.0)
    W_out, b_out = params["out"]
    return jnp.einsum("cna,cba->cnb", h, W_out, precision=hp) + b_out[:, None, :]


if __name__ == "__main__":
    # Module-consistent shapes: in_features=2 coordinates, hidden=[32, 32],
    # out_features=4, batch_size=2 independent nets, N=2048 points per net.
    # tile 2048 -> grid (2, 1): 2 parallel blocks (one per TC on v7x), each
    # step big enough to amortize the per-step pipeline overhead.
    in_features = 2
    hidden_features = [32, 32]
    out_features = 4
    batch_size = 2
    N = 2048
    sigma = 1.0

    key = jax.random.PRNGKey(0)
    k_x, k_p = jax.random.split(key)
    x = jax.random.uniform(k_x, (batch_size, N, in_features), jnp.float32,
                           minval=-1.0, maxval=1.0)
    params = init_rffnet_params(k_p, in_features, hidden_features,
                                out_features, sigma, batch_size)

    out = rffnet_forward(x, params, tile_n=2048)
    out = jax.block_until_ready(out)

    ref = rffnet_reference(x, params)
    assert out.shape == (batch_size, N, out_features)
    assert jnp.allclose(out, ref, rtol=5e-4, atol=5e-4), "mismatch vs reference"

    print("KERNEL_OK")
</pallas_src>

<mosaic_0001>
module attributes {stable_mosaic.version = 11 : i64} {
  func.func @kernel(%arg0: i32, %arg1: i32, %arg2: memref<1x2x2048xf32, #tpu.memory_space<vmem>>, %arg3: memref<1x16x2xf32, #tpu.memory_space<vmem>>, %arg4: memref<1x32x32xf32, #tpu.memory_space<vmem>>, %arg5: memref<1x32x1xf32, #tpu.memory_space<vmem>>, %arg6: memref<1x4x32xf32, #tpu.memory_space<vmem>>, %arg7: memref<1x4x1xf32, #tpu.memory_space<vmem>>, %arg8: memref<1x4x2048xf32, #tpu.memory_space<vmem>>) attributes {dimension_semantics = [#tpu.dimension_semantics<parallel>, #tpu.dimension_semantics<parallel>], iteration_bounds = array<i64: 2, 1>, scalar_prefetch = 0 : i64, scratch_operands = 0 : i64, tpu.core_type = #tpu.core_type<tc>, window_params = [{transform_indices = @transform_0, window_bounds = array<i64: 1, 2, 2048>}, {transform_indices = @transform_1, window_bounds = array<i64: 1, 16, 2>}, {transform_indices = @transform_2, window_bounds = array<i64: 1, 32, 32>}, {transform_indices = @transform_3, window_bounds = array<i64: 1, 32, 1>}, {transform_indices = @transform_4, window_bounds = array<i64: 1, 4, 32>}, {transform_indices = @transform_5, window_bounds = array<i64: 1, 4, 1>}, {transform_indices = @transform_6, window_bounds = array<i64: 1, 4, 2048>}]} {
    %c0 = arith.constant 0 : index
    %c0_0 = arith.constant 0 : index
    %c0_1 = arith.constant 0 : index
    %0 = vector.load %arg2[%c0, %c0_0, %c0_1] : memref<1x2x2048xf32, #tpu.memory_space<vmem>>, vector<1x2x2048xf32>
    %1 = vector.shape_cast %0 : vector<1x2x2048xf32> to vector<2x2048xf32>
    %c0_2 = arith.constant 0 : index
    %c0_3 = arith.constant 0 : index
    %c0_4 = arith.constant 0 : index
    %2 = vector.load %arg3[%c0_2, %c0_3, %c0_4] : memref<1x16x2xf32, #tpu.memory_space<vmem>>, vector<1x16x2xf32>
    %3 = vector.shape_cast %2 : vector<1x16x2xf32> to vector<16x2xf32>
    %4 = vector.extract_strided_slice %3 {offsets = [0, 0], sizes = [16, 1], strides = [1, 1]} : vector<16x2xf32> to vector<16x1xf32>
    %5 = vector.extract_strided_slice %1 {offsets = [0, 0], sizes = [1, 2048], strides = [1, 1]} : vector<2x2048xf32> to vector<1x2048xf32>
    %6 = vector.broadcast %4 : vector<16x1xf32> to vector<16x2048xf32>
    %7 = vector.broadcast %5 : vector<1x2048xf32> to vector<16x2048xf32>
    %8 = arith.mulf %6, %7 : vector<16x2048xf32>
    %9 = vector.extract_strided_slice %3 {offsets = [0, 1], sizes = [16, 1], strides = [1, 1]} : vector<16x2xf32> to vector<16x1xf32>
    %10 = vector.extract_strided_slice %1 {offsets = [1, 0], sizes = [1, 2048], strides = [1, 1]} : vector<2x2048xf32> to vector<1x2048xf32>
    %11 = vector.broadcast %9 : vector<16x1xf32> to vector<16x2048xf32>
    %12 = vector.broadcast %10 : vector<1x2048xf32> to vector<16x2048xf32>
    %13 = arith.mulf %11, %12 : vector<16x2048xf32>
    %14 = arith.addf %8, %13 : vector<16x2048xf32>
    %cst = arith.constant 0.636619746 : f32
    %15 = vector.broadcast %cst : f32 to vector<16x2048xf32>
    %16 = arith.mulf %14, %15 : vector<16x2048xf32>
    %cst_5 = arith.constant 5.000000e-01 : f32
    %17 = vector.broadcast %cst_5 : f32 to vector<16x2048xf32>
    %18 = arith.addf %16, %17 : vector<16x2048xf32>
    %19 = math.floor %18 : vector<16x2048xf32>
    %20 = arith.fptosi %19 : vector<16x2048xf32> to vector<16x2048xi32>
    %cst_6 = arith.constant 1.5703125 : f32
    %21 = vector.broadcast %cst_6 : f32 to vector<16x2048xf32>
    %22 = arith.mulf %19, %21 : vector<16x2048xf32>
    %23 = arith.subf %14, %22 : vector<16x2048xf32>
    %cst_7 = arith.constant 4.83751297E-4 : f32
    %24 = vector.broadcast %cst_7 : f32 to vector<16x2048xf32>
    %25 = arith.mulf %19, %24 : vector<16x2048xf32>
    %26 = arith.subf %23, %25 : vector<16x2048xf32>
    %cst_8 = arith.constant 7.549790e-08 : f32
    %27 = vector.broadcast %cst_8 : f32 to vector<16x2048xf32>
    %28 = arith.mulf %19, %27 : vector<16x2048xf32>
    %29 = arith.subf %26, %28 : vector<16x2048xf32>
    %30 = arith.mulf %29, %29 : vector<16x2048xf32>
    %31 = arith.mulf %29, %30 : vector<16x2048xf32>
    %cst_9 = arith.constant -1.95152956E-4 : f32
    %32 = vector.broadcast %cst_9 : f32 to vector<16x2048xf32>
    %33 = arith.mulf %30, %32 : vector<16x2048xf32>
    %cst_10 = arith.constant 0.00833216123 : f32
    %34 = vector.broadcast %cst_10 : f32 to vector<16x2048xf32>
    %35 = arith.addf %34, %33 : vector<16x2048xf32>
    %36 = arith.mulf %30, %35 : vector<16x2048xf32>
    %cst_11 = arith.constant -0.166666552 : f32
    %37 = vector.broadcast %cst_11 : f32 to vector<16x2048xf32>
    %38 = arith.addf %37, %36 : vector<16x2048xf32>
    %39 = arith.mulf %31, %38 : vector<16x2048xf32>
    %40 = arith.addf %29, %39 : vector<16x2048xf32>
    %cst_12 = arith.constant 5.000000e-01 : f32
    %41 = vector.broadcast %cst_12 : f32 to vector<16x2048xf32>
    %42 = arith.mulf %41, %30 : vector<16x2048xf32>
    %cst_13 = arith.constant 1.000000e+00 : f32
    %43 = vector.broadcast %cst_13 : f32 to vector<16x2048xf32>
    %44 = arith.subf %43, %42 : vector<16x2048xf32>
    %45 = arith.mulf %30, %30 : vector<16x2048xf32>
    %cst_14 = arith.constant 2.44331568E-5 : f32
    %46 = vector.broadcast %cst_14 : f32 to vector<16x2048xf32>
    %47 = arith.mulf %30, %46 : vector<16x2048xf32>
    %cst_15 = arith.constant -0.00138873165 : f32
    %48 = vector.broadcast %cst_15 : f32 to vector<16x2048xf32>
    %49 = arith.addf %48, %47 : vector<16x2048xf32>
    %50 = arith.mulf %30, %49 : vector<16x2048xf32>
    %cst_16 = arith.constant 0.0416666456 : f32
    %51 = vector.broadcast %cst_16 : f32 to vector<16x2048xf32>
    %52 = arith.addf %51, %50 : vector<16x2048xf32>
    %53 = arith.mulf %45, %52 : vector<16x2048xf32>
    %54 = arith.addf %44, %53 : vector<16x2048xf32>
    %c1_i32 = arith.constant 1 : i32
    %55 = vector.broadcast %c1_i32 : i32 to vector<16x2048xi32>
    %56 = arith.andi %20, %55 : vector<16x2048xi32>
    %c1_i32_17 = arith.constant 1 : i32
    %57 = vector.broadcast %c1_i32_17 : i32 to vector<16x2048xi32>
    %58 = arith.cmpi eq, %56, %57 : vector<16x2048xi32>
    %c2_i32 = arith.constant 2 : i32
    %59 = vector.broadcast %c2_i32 : i32 to vector<16x2048xi32>
    %60 = arith.andi %20, %59 : vector<16x2048xi32>
    %c0_i32 = arith.constant 0 : i32
    %61 = vector.broadcast %c0_i32 : i32 to vector<16x2048xi32>
    %62 = arith.cmpi ne, %60, %61 : vector<16x2048xi32>
    %63 = arith.select %58, %54, %40 : vector<16x2048xi1>, vector<16x2048xf32>
    %64 = arith.select %58, %40, %54 : vector<16x2048xi1>, vector<16x2048xf32>
    %cst_18 = arith.constant 0.000000e+00 : f32
    %65 = vector.broadcast %cst_18 : f32 to vector<16x2048xf32>
    %66 = arith.subf %65, %63 : vector<16x2048xf32>
    %67 = arith.select %62, %66, %63 : vector<16x2048xi1>, vector<16x2048xf32>
    %68 = arith.xori %58, %62 : vector<16x2048xi1>
    %cst_19 = arith.constant 0.000000e+00 : f32
    %69 = vector.broadcast %cst_19 : f32 to vector<16x2048xf32>
    %70 = arith.subf %69, %64 : vector<16x2048xf32>
    %71 = arith.select %68, %70, %64 : vector<16x2048xi1>, vector<16x2048xf32>
    %72 = tpu.concatenate %67, %71 in 0 : vector<16x2048xf32>, vector<16x2048xf32> -> vector<32x2048xf32>
    %c0_20 = arith.constant 0 : index
    %c0_21 = arith.constant 0 : index
    %c0_22 = arith.constant 0 : index
    %73 = vector.load %arg4[%c0_20, %c0_21, %c0_22] : memref<1x32x32xf32, #tpu.memory_space<vmem>>, vector<1x32x32xf32>
    %74 = vector.shape_cast %73 : vector<1x32x32xf32> to vector<32x32xf32>
    %c0_23 = arith.constant 0 : index
    %c0_24 = arith.constant 0 : index
    %c0_25 = arith.constant 0 : index
    %75 = vector.load %arg5[%c0_23, %c0_24, %c0_25] : memref<1x32x1xf32, #tpu.memory_space<vmem>>, vector<1x32x1xf32>
    %76 = vector.shape_cast %75 : vector<1x32x1xf32> to vector<32x1xf32>
    %cst_26 = arith.constant dense<0.000000e+00> : vector<32x2048xf32>
    %77 = tpu.matmul %74, %72, %cst_26 {dimension_numbers = #tpu.dot_dimension_numbers<[1], [0], [0], [1], [0, 0, 1, 1], [], []>} : vector<32x32xf32>, vector<32x2048xf32>, vector<32x2048xf32> -> vector<32x2048xf32>
    %78 = vector.broadcast %76 : vector<32x1xf32> to vector<32x2048xf32>
    %79 = arith.addf %77, %78 : vector<32x2048xf32>
    %cst_27 = arith.constant 0.000000e+00 : f32
    %80 = vector.broadcast %cst_27 : f32 to vector<32x2048xf32>
    %81 = arith.maximumf %79, %80 : vector<32x2048xf32>
    %c0_28 = arith.constant 0 : index
    %c0_29 = arith.constant 0 : index
    %c0_30 = arith.constant 0 : index
    %82 = vector.load %arg6[%c0_28, %c0_29, %c0_30] : memref<1x4x32xf32, #tpu.memory_space<vmem>>, vector<1x4x32xf32>
    %83 = vector.shape_cast %82 : vector<1x4x32xf32> to vector<4x32xf32>
    %c0_31 = arith.constant 0 : index
    %c0_32 = arith.constant 0 : index
    %c0_33 = arith.constant 0 : index
    %84 = vector.load %arg7[%c0_31, %c0_32, %c0_33] : memref<1x4x1xf32, #tpu.memory_space<vmem>>, vector<1x4x1xf32>
    %85 = vector.shape_cast %84 : vector<1x4x1xf32> to vector<4x1xf32>
    %cst_34 = arith.constant dense<0.000000e+00> : vector<4x2048xf32>
    %86 = tpu.matmul %83, %81, %cst_34 {dimension_numbers = #tpu.dot_dimension_numbers<[1], [0], [0], [1], [0, 0, 1, 1], [], []>} : vector<4x32xf32>, vector<32x2048xf32>, vector<4x2048xf32> -> vector<4x2048xf32>
    %87 = vector.broadcast %85 : vector<4x1xf32> to vector<4x2048xf32>
    %88 = arith.addf %86, %87 : vector<4x2048xf32>
    %c0_35 = arith.constant 0 : index
    %c0_36 = arith.constant 0 : index
    %c0_37 = arith.constant 0 : index
    %89 = vector.load %arg8[%c0_35, %c0_36, %c0_37] : memref<1x4x2048xf32, #tpu.memory_space<vmem>>, vector<1x4x2048xf32>
    %90 = vector.shape_cast %89 : vector<1x4x2048xf32> to vector<4x2048xf32>
    %91 = vector.shape_cast %88 : vector<4x2048xf32> to vector<1x4x2048xf32>
    tpu.vector_store %arg8[%c0_35, %c0_36, %c0_37], %91 {strides = array<i32>} : memref<1x4x2048xf32, #tpu.memory_space<vmem>>, vector<1x4x2048xf32>,
    return
  }
  func.func @transform_0(%arg0: i32, %arg1: i32) -> (i32, i32, i32) {
    %c0_i32 = arith.constant 0 : i32
    %c0_i32_0 = arith.constant 0 : i32
    return %arg0, %c0_i32, %arg1 : i32, i32, i32
  }
  func.func @transform_1(%arg0: i32, %arg1: i32) -> (i32, i32, i32) {
    %c0_i32 = arith.constant 0 : i32
    %c0_i32_0 = arith.constant 0 : i32
    %c0_i32_1 = arith.constant 0 : i32
    return %arg0, %c0_i32, %c0_i32_0 : i32, i32, i32
  }
  func.func @transform_2(%arg0: i32, %arg1: i32) -> (i32, i32, i32) {
    %c0_i32 = arith.constant 0 : i32
    %c0_i32_0 = arith.constant 0 : i32
    %c0_i32_1 = arith.constant 0 : i32
    return %arg0, %c0_i32, %c0_i32_0 : i32, i32, i32
  }
  func.func @transform_3(%arg0: i32, %arg1: i32) -> (i32, i32, i32) {
    %c0_i32 = arith.constant 0 : i32
    %c0_i32_0 = arith.constant 0 : i32
    %c0_i32_1 = arith.constant 0 : i32
    return %arg0, %c0_i32, %c0_i32_0 : i32, i32, i32
  }
  func.func @transform_4(%arg0: i32, %arg1: i32) -> (i32, i32, i32) {
    %c0_i32 = arith.constant 0 : i32
    %c0_i32_0 = arith.constant 0 : i32
    %c0_i32_1 = arith.constant 0 : i32
    return %arg0, %c0_i32, %c0_i32_0 : i32, i32, i32
  }
  func.func @transform_5(%arg0: i32, %arg1: i32) -> (i32, i32, i32) {
    %c0_i32 = arith.constant 0 : i32
    %c0_i32_0 = arith.constant 0 : i32
    %c0_i32_1 = arith.constant 0 : i32
    return %arg0, %c0_i32, %c0_i32_0 : i32, i32, i32
  }
  func.func @transform_6(%arg0: i32, %arg1: i32) -> (i32, i32, i32) {
    %c0_i32 = arith.constant 0 : i32
    %c0_i32_0 = arith.constant 0 : i32
    return %arg0, %c0_i32, %arg1 : i32, i32, i32
  }
}

</mosaic_0001>

<bundles_post_ra>
// kernel: tpu_custom_call.1
= control target key start
LH: loop header
LB: loop body
LE: loop exit
PB: predicated region body
PF: predicated region fallthrough
CT: control target
= control target key end

     0   :  { %11 = vsyncpa [#allocation3], 0  ;;  %s5983_s0 = inlined_call_operand.vmem [shape: f32[2,2,2048], index: 0, kind: input, shape index: {}]   ;;  %s5984_s1 = inlined_call_operand.vmem [shape: f32[2,16,2], index: 1, kind: input, shape index: {}]   ;;  %s5985_s2 = inlined_call_operand.hbm [shape: f32[2,32,32], index: 2, kind: input, shape index: {}]   ;;  %s5986_s3 = inlined_call_operand.vmem [shape: f32[2,32,1], index: 3, kind: input, shape index: {}]   ;;  %s5987_s4 = inlined_call_operand.vmem [shape: f32[2,4,32], index: 4, kind: input, shape index: {}]   ;;  %s5988_s5 = inlined_call_operand.vmem [shape: f32[2,4,1], index: 5, kind: input, shape index: {}]   ;;  %s5989_s6 = inlined_call_operand.hbm [shape: f32[2,4,2048], index: 6, kind: output, shape index: {}]  }
   0x1   :  { %13 = vsyncpa [#allocation3 + $0x1], 0 }
   0x2   :  { %14 = vsyncpa [#allocation4], 0 }
   0x3   :  { %16 = vsyncpa [#allocation4 + $0x1], 0  ;;  %s4114_s21 = smov 0   ;;  %s4116_s22 = smov 0  }
   0x4   :  { %s4118_s23 = smov 0   ;;  %s4120_s24 = smov 0  }
   0x5   :  { %s4122_s25 = smov 0   ;;  %s4124_s26 = smov 0  }
   0x6 LB: > { %s3622_s27 = sadd.s32 4294967295, %s4070_s26   ;;  %s3623_s28 = sadd.s32 4294967294, %s4070_s26   ;;  %s4070_s26 = sphi %s4124_s26, %s22_s26   ;;  %s4066_s25 = sphi %s4122_s25, %s6227_s25   ;;  %s4062_s24 = sphi %s4120_s24, %s6226_s24   ;;  %s4058_s23 = sphi %s4118_s23, %s6225_s23   ;;  %s4054_s22 = sphi %s4116_s22, %s6224_s22   ;;  %s4050_s21 = sphi %s4114_s21, %s6223_s21  }
   0x7   : > { %s34_s29 = sadd.s32 1, %s4066_s25  ;;  %s95_s30 = sadd.s32 1, %s4058_s23 }
   0x8   : > { %p36_p0 = scmp.ge.s32.totalorder %s34_s29, 2  ;;  %p102_p1 = scmp.ne.s32.totalorder %s4058_s23, %s4054_s22 }
   0x9   : > { %p103_p2 = scmp.eq.s32.totalorder %s4070_s26, 0  ;;  %p108_p3 = scmp.ne.s32.totalorder %s4054_s22, %s4050_s21 }
   0xa   : > { %s6229_s29 = smov (%p36_p0, %s34_s29), 0  ;;  %p109_p5 = scmp.eq.s32.totalorder %s3622_s27, 0 }
   0xb   : > { %p4155_p4 = por %p103_p2, %p102_p1  ;;  %s92_s8 = ssub.s32 %s4066_s25, %s6229_s29 }
   0xc   : > { %p212_p6 = scmp.eq.s32.totalorder %s3622_s27, 1  ;;  %p93_p7 = scmp.eq.s32.totalorder %s92_s8, 0 }
   0xd   : > { %p4161_p8 = por %p109_p5, %p108_p3  ;;  %p218_p10 = scmp.eq.s32.totalorder %s3623_s28, 1 }
   0xe   : > { %p4165_p9 = por %p212_p6, %p102_p1  ;;  %p3894_p13 = scmp.lt.s32.totalorder %s4070_s26, 2 }
   0xf   : > { %s4170_s11 = scalar_select %p93_p7, %s4058_s23, %s95_s30  }
  0x10   : > { %s6029_s10 = scalar_select %p4165_p9, 1, 0 }
  0x11   : > { %p4172_p11 = por %p218_p10, %p108_p3  ;;  %s259_s13 = sand.u32 1, %s4058_s23  }
  0x12   : > { %s3626_s14 = sshll.u32 %s259_s13, 5  ;;  %s3685_s15 = sshll.u32 %s4066_s25, 9 }
  0x13   : > { %s6030_s12 = scalar_select %p4172_p11, 1, 0 }
  0x14   : > { %s4183_s18 = scalar_lea.hbm %s5985_s2, %s3685_s15  ;;  %s263_s19 = scalar_lea.vmem [#allocation2], %s3626_s14 }
  0x15   : > { %s270_s20 = sshll.u32 %s263_s19, 4  ;;  %p4189_p0 = pnand %p3894_p13, %p4155_p4  ;;  %s4185_s20 = int_to_ptr.vmem [resolvable:$true] %s270_s20 }
  0x16   : > { %s4194_s28 = scalar_lea.sflag [#allocation3], %s259_s13  ;;  %s3958_s30 = scalar_lea.hbm %s4183_s18, 512 }
  0x17   : > { %p3959_p2 = scmp.ne.s32.totalorder %s4183_s18, %s3958_s30  ;;  %p3960_p3 = pneg %p4189_p0 }
  0x18   : > { %s3963_s7 = scalar_lea.hbm %s5985_s2, 1024  ;;  %p3964_p4 = scmp.lt.u32.totalorder %s4183_s18, %s5985_s2 }
  0x19   : > { %p3961_p5 = pnand %p3960_p3, %p3959_p2  ;;  %p3965_p7 = scmp.lt.u32.totalorder %s3963_s7, %s3958_s30 }
  0x1a   : > { %p3967_p13 = scmp.lt.u32.totalorder %s3958_s30, %s4183_s18 }
  0x1b   : > { %p3962_p6 = pneg %p3961_p5  ;;  %p3966_p10 = por %p3965_p7, %p3964_p4 }
  0x1d   : > { %p3968_p12 = por %p3967_p13, %p3966_p10 }
  0x1f   : > { %p3969_p1 = pnand %p3968_p12, %p3962_p6 }
  0x21   : > { %3972 = shalt.err (!%p3969_p1)
}
  0x22   : > { %s3973_s13 = scalar_lea.vmem %s4185_s20, 512  ;;  %s4072_s17 = smov [#allocation2]  }
  0x23   : > { %p3974_p2 = scmp.ne.s32.totalorder %s4185_s20, %s3973_s13  ;;  %s3978_s19 = sshll.u32 %s4072_s17, 4  ;;  %s3979_s19 = int_to_ptr.vmem [resolvable:$false] %s3978_s19 }
  0x24   : > { %s3980_s8 = scalar_lea.vmem %s3979_s19, 1024  ;;  %p3981_p9 = scmp.lt.s32.totalorder %s4185_s20, %s3979_s19 }
  0x25   : > { %p3976_p5 = pnand %p3974_p2, %p3960_p3  ;;  %p3982_p4 = scmp.lt.s32.totalorder %s3980_s8, %s3973_s13 }
  0x27   : > { %p3977_p11 = pneg %p3976_p5  ;;  %p3983_p7 = por %p3982_p4, %p3981_p9 }
  0x29   : > { %p3984_p10 = pnand %p3983_p7, %p3977_p11 }
  0x2b   : > { %3987 = shalt.err (!%p3984_p10)
}
  0x2c   : > { %s4073_s30 = smov 128   ;;  %s4074_s14 = smov 8  }
  0x2d   : > { %3889 = dma.hbm_to_vmem [thread:$0]  (!%p4189_p0), %s4183_s18, 512, %s4185_s20, %s4194_s28, %s4073_s30, %s4073_s30, %s4074_s14  }
  0x2e   : > { %p300_p12 = scmp.lt.s32.totalorder %s4070_s26, 3  ;;  %p6032_p1 = scmp.ge.s32.totalorder %s4070_s26, 1 }
  0x30   : > { %p301_p3 = pnand %p6032_p1, %p300_p12 }
  0x32   : > { %304 = sbr.rel (%p301_p3) target bundleno = 1021 (0x3fd), region = 44 }
  0x39   : > { %s4226_s7 = sand.u32 1, %s4054_s22  }
  0x3a   : > { %s3630_s15 = sshll.u32 %s4226_s7, 5  ;;  %s307_s16 = scalar_lea.sflag [#allocation3], %s4226_s7 }
  0x3b   : > { %s4230_s13 = scalar_lea.vmem [#allocation2], %s3630_s15 }
  0x3c   : > { %4041 = dma.done.wait (%p4161_p8), %s307_s16, 512  }
  0x3d   : > { %4043 = vsyncadd (%p4161_p8), %s307_s16, 4294966784  ;;  %p367_p9 = scmp.lt.s32.totalorder %s4062_s24, 1  ;;  %v415_v0 = vlaneseq  ;;  %v4075_v1 = vmov 1   ;;  %v4076_v2 = vmov 0   ;;  %p6220_p11 = scmp.ne.s32.totalorder %s6029_s10, 0 }
  0x3e   : > { %3950 = vset.pattern.permute.xlu1 %v4075_v1  ;;  %3949 = vset.pattern.permute.xlu0 %v4076_v2 }
  0x3f   : > { %s4238_s18 = scalar_select %p367_p9, %s4062_s24, 1  ;;  %v416_v3 = vshrl.u32 %v415_v0, 7 }
  0x41   : > { %s3687_s20 = sshll.u32 %s4238_s18, 4  ;;  %s3686_s27 = sshll.u32 %s4238_s18, 5  ;;  %v4250_v4 = vsub.s32 4, %v416_v3  ;;  %v4252_v5 = vsub.s32 5, %v416_v3  ;;  %v4288_v20 = vsub.s32 2, %v416_v3  ;;  %v4290_v21 = vsub.s32 3, %v416_v3 }
  0x42   : > { %s380_s9 = scalar_lea.vmem %s5984_s1, %s3687_s20  ;;  %s4248_s30 = scalar_lea.vmem %s5983_s0, %s3686_s27  ;;  %v4292_v22 = vsub.s32 6, %v416_v3  ;;  %v4294_v23 = vsub.s32 7, %v416_v3  ;;  %v4297_v25 = vsub.s32 0, %v416_v3  ;;  %v4299_v26 = vsub.s32 1, %v416_v3 }
  0x43   : > { %6033 = vst [vmem:[#allocation8_spill] sm:$0xff] %v4250_v4  ;;  %6034 = vst [vmem:[#allocation9_spill] sm:$0xff] %v4252_v5  ;;  %v399_v6 = vld [vmem:[%s380_s9] sm:$0xff]  ;;  %v4255_v7 = vld [vmem:[%s4248_s30 + $0x8] sm:$0xff]  ;;  %s4270_s16 = scalar_lea.vmem %s5986_s3, %s3686_s27  ;;  %s3638_s20 = sshll.u32 %s4238_s18, 2 }
  0x44   : > { %592 = vperm.xlu1 %3950, %v399_v6   ;;  %403 = vperm.xlu0 %3949, %v399_v6   ;;  %6035 = vst [vmem:[#allocation10_spill] sm:$0xff] %v4255_v7  ;;  %v4258_v8 = vld [vmem:[%s4248_s30 + $0x10] sm:$0xff]  ;;  %v400_v9 = vld [vmem:[%s380_s9 + $0x8] sm:$0xff]  ;;  %v4261_v10 = vld [vmem:[%s4248_s30 + $0x18] sm:$0xff]  ;;  %s393_s17 = scalar_lea.vmem %s5988_s5, %s3638_s20  ;;  %v438_v39 = vrot.slane %v4255_v7, %v4288_v20  ;;  %v622_v49 = vrot.slane %v4255_v7, %v4290_v21  ;;  %s389_s19 = scalar_lea.vmem %s5987_s4, %s3638_s20 }
  0x45   : > { %6036 = vst [vmem:[#allocation11_spill] sm:$0xff] %v4258_v8  ;;  %6037 = vst [vmem:[#allocation12_spill] sm:$0xff] %v4261_v10  ;;  %v2027_v17 = vld [vmem:[%s4270_s16] sm:$0xff]  ;;  %v2029_v18 = vld [vmem:[%s4270_s16 + $0x10] sm:$0xff]  ;;  %v446_v58 = vrot.slane %v4255_v7, %v4292_v22  ;;  %v630_v59 = vrot.slane %v4255_v7, %v4294_v23  ;;  %s3631_s18 = sshll.u32 %s4226_s7, 6  ;;  %s3459_s27 = scalar_lea.sflag [#allocation4], %s4226_s7 }
  0x46   : > { %v2841_v19 = vld [vmem:[%s393_s17] sm:$0xf]  ;;  %6038 = vst [vmem:[#allocation13_spill] sm:$0xff] %v4288_v20  ;;  %6039 = vst [vmem:[#allocation14_spill] sm:$0xff] %v4290_v21  ;;  %v4332_v53 = vrot.slane %v438_v39, %v4297_v25  ;;  %v4352_v3 = vrot.slane %v622_v49, %v4299_v26  ;;  %s5919_s8 = scalar_lea.vmem [#allocation5], %s3631_s18 }
  0x47   : > { %6040 = vst [vmem:[#allocation15_spill] sm:$0xff] %v4292_v22  ;;  %6041 = vst [vmem:[#allocation16_spill] sm:$0xff] %v4294_v23  ;;  %v395_v24 = vld [vmem:[%s4248_s30] sm:$0xff]  ;;  %s3475_s14 = sshll.u32 %s5919_s8, 4  ;;  %s5935_s14 = int_to_ptr.vmem [resolvable:$true] %s3475_s14 }
  0x48   : > { %596 = vperm.xlu1 %3950, %v400_v9   ;;  %408 = vperm.xlu0 %3949, %v400_v9   ;;  %6042 = vst [vmem:[#allocation17_spill] sm:$0xff] %v4297_v25  ;;  %6043 = vst [vmem:[#allocation18_spill] sm:$0xff] %v4299_v26  ;;  %v422_v27 = vrot.slane %v395_v24, %v4288_v20  ;;  %v606_v28 = vrot.slane %v395_v24, %v4290_v21  ;;  %s3988_s28 = scalar_lea.vmem %s5935_s14, 1024 }
  0x49   : > { %v430_v29 = vrot.slane %v395_v24, %v4292_v22  ;;  %v614_v30 = vrot.slane %v395_v24, %v4294_v23  ;;  %v418_v31 = vrot.slane %v395_v24, %v4297_v25  ;;  %v602_v32 = vrot.slane %v395_v24, %v4299_v26  ;;  %p3989_p8 = scmp.ne.s32.totalorder %s5935_s14, %s3988_s28 }
  0x4a   : > { %v502_v33 = vrot.slane %v422_v27, %v4297_v25  ;;  %v686_v34 = vrot.slane %v606_v28, %v4299_v26  ;;  %v426_v37 = vrot.slane %v395_v24, %v4250_v4  ;;  %v610_v38 = vrot.slane %v395_v24, %v4252_v5 }
  0x4b   : > { %v510_v35 = vrot.slane %v430_v29, %v4297_v25  ;;  %v694_v36 = vrot.slane %v614_v30, %v4299_v26  ;;  %v498_v42 = vrot.slane %v418_v31, %v4297_v25  ;;  %v682_v43 = vrot.slane %v602_v32, %v4299_v26  ;;  %p3990_p0 = pnand %p3989_p8, %p6220_p11 }
  0x4c   : > { %2033 = vperm.xlu0 %3949, %v2027_v17   ;;  %3951 = vset.pattern.permute.xlu1 %v4076_v2  ;;  %v506_v48 = vrot.slane %v426_v37, %v4297_v25  ;;  %v690_v52 = vrot.slane %v610_v38, %v4299_v26  ;;  %v4359_v27 = vrot.slane %v446_v58, %v4297_v25 }
  0x4d   : > { %v4362_v28 = vrot.slane %v630_v59, %v4299_v26  ;;  %p3991_p6 = pneg %p3990_p0 }
  0x4e   : > { %6047 = vst [vmem:[#allocation22_spill] sm:$0xff] %v4359_v27 }
  0x4f   : > { %6048 = vst [vmem:[#allocation23_spill] sm:$0xff] %v4362_v28 }
  0x50   : > { %2043 = vperm.xlu0 %3949, %v2029_v18  }
  0x54   : > { %2844 = vperm.xlu0 %3949, %v2841_v19  }
  0xc3   : > { %v4315_v40 = vpop.permute.xlu1 %592  ;;  %v4317_v41 = vpop.permute.xlu0 %403 }
  0xc4   : > { %6044 = vst [vmem:[#allocation19_spill] sm:$0xff] %v4315_v40  ;;  %6045 = vst [vmem:[#allocation20_spill] sm:$0xff] %v4317_v41  ;;  %v560_v44 = vmul.f32 %v502_v33, %v4317_v41  ;;  %v744_v45 = vmul.f32 %v686_v34, %v4315_v40  ;;  %v562_v46 = vmul.f32 %v510_v35, %v4317_v41 }
  0xc5   : > { %v746_v47 = vmul.f32 %v694_v36, %v4315_v40  ;;  %v559_v56 = vmul.f32 %v498_v42, %v4317_v41  ;;  %v743_v57 = vmul.f32 %v682_v43, %v4315_v40  ;;  %v561_v17 = vmul.f32 %v506_v48, %v4317_v41 }
  0xc6   : > { %v776_v50 = vadd.f32 %v744_v45, %v560_v44  ;;  %v745_v18 = vmul.f32 %v690_v52, %v4315_v40  ;;  %v4368_v32 = vmul.f32 %v4332_v53, %v4317_v41  ;;  %v4377_v44 = vmul.f32 %v4352_v3, %v4315_v40 }
  0xc7   : > { %v4328_v51 = vadd.f32 %v746_v47, %v562_v46  ;;  %v4334_v54 = vpop.permute.xlu1 %596  ;;  %v4336_v55 = vpop.permute.xlu0 %408  ;;  %v4364_v31 = vadd.f32 %v743_v57, %v559_v56  ;;  %v4381_v49 = vmul.f32 %v4359_v27, %v4317_v41 }
  0xc8   : > { %6046 = vst [vmem:[#allocation21_spill] sm:$0xff] %v4334_v54  ;;  %v576_v60 = vmul.f32 %v502_v33, %v4336_v55  ;;  %v760_v61 = vmul.f32 %v686_v34, %v4334_v54  ;;  %v808_v62 = vmul.f32 0.63661975, %v776_v50  ;;  %v578_v63 = vmul.f32 %v510_v35, %v4336_v55 }
  0xc9   : > { %v762_v1 = vmul.f32 %v694_v36, %v4334_v54  ;;  %v810_v2 = vmul.f32 0.63661975, %v4328_v51  ;;  %v575_v35 = vmul.f32 %v498_v42, %v4336_v55  ;;  %v759_v36 = vmul.f32 %v682_v43, %v4334_v54  ;;  %6049 = vst [vmem:[#allocation24_spill] sm:$0xff] %v4381_v49 }
  0xca   : > { %v792_v6 = vadd.f32 %v760_v61, %v576_v60  ;;  %v840_v9 = vadd.f32 0.5, %v808_v62  ;;  %v4373_v39 = vadd.f32 %v745_v18, %v561_v17  ;;  %v4385_v43 = vmul.f32 %v4362_v28, %v4315_v40 }
  0xcb   : > { %v4356_v19 = vadd.f32 %v762_v1, %v578_v63  ;;  %v842_v24 = vadd.f32 0.5, %v810_v2  ;;  %v4387_v59 = vadd.f32 %v759_v36, %v575_v35  ;;  %v807_v60 = vmul.f32 0.63661975, %v4364_v31 }
  0xcc   : > { %v824_v29 = vmul.f32 0.63661975, %v792_v6  ;;  %v872_v30 = vfloor.f32 %v840_v9  ;;  %6050 = vst [vmem:[#allocation25_spill] sm:$0xff] %v4385_v43  ;;  %v577_v61 = vmul.f32 %v506_v48, %v4336_v55  ;;  %v761_v2 = vmul.f32 %v690_v52, %v4334_v54 }
  0xcd   : > { %v826_v33 = vmul.f32 0.63661975, %v4356_v19  ;;  %v874_v34 = vfloor.f32 %v842_v24  ;;  %v4398_v48 = vadd.f32 0.5, %v807_v60 }
  0xce   : > { %v856_v37 = vadd.f32 0.5, %v824_v29  ;;  %v936_v38 = vmul.f32 1.5703125, %v872_v30  ;;  %v3820_v45 = vtrunc.f32 %v872_v30  ;;  %v1000_v42 = vmul.f32 0.0004837513, %v872_v30 }
  0xcf   : > { %v858_v46 = vadd.f32 0.5, %v826_v33  ;;  %v938_v47 = vmul.f32 1.5703125, %v874_v34  ;;  %v1064_v1 = vmul.f32 7.54979e-08, %v872_v30  ;;  %v3824_v17 = vtrunc.f32 %v874_v34 }
  0xd0   : > { %v888_v56 = vfloor.f32 %v856_v37  ;;  %v968_v57 = vsub.f32 %v776_v50, %v936_v38  ;;  %v4392_v9 = vcvt.f32.s32 %v3820_v45  ;;  %v1002_v36 = vmul.f32 0.0004837513, %v874_v34 }
  0xd1   : > { %v890_v58 = vfloor.f32 %v858_v46  ;;  %v970_v18 = vsub.f32 %v4328_v51, %v938_v47  ;;  %v4396_v37 = vmul.f32 0.63661975, %v4387_v59  ;;  %v4401_v30 = vmul.f32 0.63661975, %v4373_v39 }
  0xd2   : > { %v952_v62 = vmul.f32 1.5703125, %v888_v56  ;;  %v1032_v63 = vsub.f32 %v968_v57, %v1000_v42  ;;  %v3852_v50 = vtrunc.f32 %v888_v56  ;;  %v1016_v29 = vmul.f32 0.0004837513, %v888_v56 }
  0xd3   : > { %v954_v35 = vmul.f32 1.5703125, %v890_v58  ;;  %v1080_v38 = vmul.f32 7.54979e-08, %v888_v56  ;;  %v3856_v46 = vtrunc.f32 %v890_v58  ;;  %v4403_v42 = vcvt.f32.s32 %v3824_v17 }
  0xd4   : > { %v984_v24 = vsub.f32 %v792_v6, %v952_v62  ;;  %v1096_v33 = vsub.f32 %v1032_v63, %v1064_v1  ;;  %v3853_v57 = vcvt.f32.s32 %v3852_v50  ;;  %v1034_v6 = vsub.f32 %v970_v18, %v1002_v36 }
  0xd5   : > { %v986_v51 = vsub.f32 %v4356_v19, %v954_v35  ;;  %v1672_v63 = vand.u32 1, %v4392_v9  ;;  %v1018_v1 = vmul.f32 0.0004837513, %v890_v58  ;;  %v1736_v16 = vand.u32 2, %v4392_v9 }
  0xd6   : > { %v1048_v52 = vsub.f32 %v984_v24, %v1016_v29  ;;  %v1128_v45 = vmul.f32 %v1096_v33, %v1096_v33  ;;  %v1066_v13 = vmul.f32 7.54979e-08, %v874_v34  ;;  %v4408_v15 = vadd.f32 %v761_v2, %v577_v61 }
  0xd7   : > { %v4410_v29 = vcvt.f32.s32 %v3856_v46  ;;  %v1050_v50 = vsub.f32 %v986_v51, %v1018_v1  ;;  %v1688_v12 = vand.u32 1, %v3853_v57  ;;  %v1082_v19 = vmul.f32 7.54979e-08, %v890_v58 }
  0xd8   : > { %v1112_v47 = vsub.f32 %v1048_v52, %v1080_v38  ;;  %v1192_v62 = vmul.f32 -0.00019515296, %v1128_v45  ;;  %v1480_v60 = vmul.f32 2.4433157e-05, %v1128_v45  ;;  %v4412_v18 = vsub.f32 %v1034_v6, %v1066_v13 }
  0xd9   : > { %vm4414_vm0 = vcmp.eq.s32.totalorder %v1672_v63, 1  ;;  %v1752_v9 = vand.u32 2, %v3853_v57  ;;  %v1674_v34 = vand.u32 1, %v4403_v42  ;;  %v1384_v61 = vmul.f32 0.5, %v1128_v45 }
  0xda   : > { %v1144_v56 = vmul.f32 %v1112_v47, %v1112_v47  ;;  %v1224_v24 = vadd.f32 0.008332161, %v1192_v62  ;;  %v1512_v17 = vadd.f32 -0.0013887316, %v1480_v60  ;;  %v4419_v46 = vsub.f32 %v1050_v50, %v1082_v19 }
  0xdb   : > { %v1160_v51 = vmul.f32 %v1128_v45, %v1096_v33  ;;  %v1130_v13 = vmul.f32 %v4412_v18, %v4412_v18  ;;  %v1448_v58 = vmul.f32 %v1128_v45, %v1128_v45  ;;  %vm4425_vm1 = vcmp.eq.s32.totalorder %v1688_v12, 1 }
  0xdc   : > { %v1208_v35 = vmul.f32 -0.00019515296, %v1144_v56  ;;  %v1256_v36 = vmul.f32 %v1224_v24, %v1128_v45  ;;  %v1496_v2 = vmul.f32 2.4433157e-05, %v1144_v56  ;;  %v1544_v38 = vmul.f32 %v1512_v17, %v1128_v45 }
  0xdd   : > { %v1146_v60 = vmul.f32 %v4419_v46, %v4419_v46  ;;  %v1400_v14 = vmul.f32 0.5, %v1144_v56  ;;  %v1194_v50 = vmul.f32 -0.00019515296, %v1130_v13  ;;  %v1416_v17 = vsub.f32 1.0, %v1384_v61 }
  0xde   : > { %v1240_v62 = vadd.f32 0.008332161, %v1208_v35  ;;  %v1288_v1 = vadd.f32 -0.16666655, %v1256_v36  ;;  %v1528_v6 = vadd.f32 -0.0013887316, %v1496_v2  ;;  %v1176_v0 = vmul.f32 %v1144_v56, %v1112_v47 }
  0xdf   : > { %v1576_v63 = vadd.f32 0.041666646, %v1544_v38  ;;  %v1210_v36 = vmul.f32 -0.00019515296, %v1146_v60  ;;  %vm4431_vm2 = vcmp.ne.s32.totalorder %v1736_v16, 0  ;;  %vm4437_vm3 = vcmp.ne.s32.totalorder %v1752_v9, 0 }
  0xe0   : > { %v1272_v57 = vmul.f32 %v1240_v62, %v1144_v56  ;;  %v1320_v24 = vmul.f32 %v1288_v1, %v1160_v51  ;;  %v1560_v19 = vmul.f32 %v1528_v6, %v1144_v56  ;;  %v1226_v38 = vadd.f32 0.008332161, %v1194_v50  ;;  %vm1928_vm13 = vmxor %vm4414_vm0, %vm4431_vm2 }
  0xe1   : > { %v1608_v35 = vmul.f32 %v1576_v63, %v1448_v58  ;;  %v1464_v51 = vmul.f32 %v1144_v56, %v1144_v56  ;;  %v1242_v61 = vadd.f32 0.008332161, %v1210_v36  ;;  %v1432_v6 = vsub.f32 1.0, %v1400_v14  ;;  %vm1944_vm15 = vmxor %vm4425_vm1, %vm4437_vm3 }
  0xe2   : > { %v1304_v10 = vadd.f32 -0.16666655, %v1272_v57  ;;  %v4429_v45 = vadd.f32 %v1320_v24, %v1096_v33  ;;  %v1592_v62 = vadd.f32 0.041666646, %v1560_v19  ;;  %v1258_v63 = vmul.f32 %v1226_v38, %v1130_v13 }
  0xe3   : > { %v4435_v12 = vadd.f32 %v1608_v35, %v1416_v17  ;;  %v1386_v57 = vmul.f32 0.5, %v1130_v13  ;;  %v1274_v24 = vmul.f32 %v1242_v61, %v1146_v60  ;;  %v1402_v56 = vmul.f32 0.5, %v1146_v60 }
  0xe4   : > { %v1336_v58 = vmul.f32 %v1304_v10, %v1176_v0  ;;  %v1624_v33 = vmul.f32 %v1592_v62, %v1464_v51  ;;  %v1290_v9 = vadd.f32 -0.16666655, %v1258_v63  ;;  %v1690_v19 = vand.u32 1, %v4410_v29 }
  0xe5   : > { %v1800_v16 = vsel %vm4414_vm0, %v4435_v12, %v4429_v45  ;;  %v1306_v10 = vadd.f32 -0.16666655, %v1274_v24  ;;  %v1482_v14 = vmul.f32 2.4433157e-05, %v1130_v13  ;;  %v1498_v0 = vmul.f32 2.4433157e-05, %v1146_v60 }
  0xe6   : > { %v4445_v50 = vadd.f32 %v1336_v58, %v1112_v47  ;;  %v1864_v17 = vsub.f32 0.0, %v1800_v16  ;;  %v4448_v35 = vadd.f32 %v1624_v33, %v1432_v6  ;;  %v1162_v36 = vmul.f32 %v1130_v13, %v4412_v18 }
  0xe7   : > { %v1178_v38 = vmul.f32 %v1146_v60, %v4419_v46  ;;  %v1418_v51 = vsub.f32 1.0, %v1386_v57  ;;  %v1450_v62 = vmul.f32 %v1130_v13, %v1130_v13  ;;  %v1434_v61 = vsub.f32 1.0, %v1402_v56 }
  0xe8   : > { %v1816_v47 = vsel %vm4425_vm1, %v4448_v35, %v4445_v50  ;;  %v1514_v58 = vadd.f32 -0.0013887316, %v1482_v14  ;;  %v1530_v63 = vadd.f32 -0.0013887316, %v1498_v0  ;;  %v1322_v6 = vmul.f32 %v1290_v9, %v1162_v36 }
  0xe9   : > { %v1880_v8 = vsub.f32 0.0, %v1816_v47  ;;  %v1338_v33 = vmul.f32 %v1306_v10, %v1178_v38  ;;  %v1466_v24 = vmul.f32 %v1146_v60, %v1146_v60  ;;  %vm4456_vm4 = vcmp.eq.s32.totalorder %v1674_v34, 1 }
  0xea   : > { %vm4460_vm5 = vcmp.eq.s32.totalorder %v1690_v19, 1  ;;  %v1896_v57 = vsel %vm4431_vm2, %v1864_v17, %v1800_v16  ;;  %v1546_v21 = vmul.f32 %v1514_v58, %v1130_v13  ;;  %v1562_v20 = vmul.f32 %v1530_v63, %v1146_v60 }
  0xeb   : > { %v855_v56 = vadd.f32 0.5, %v4396_v37  ;;  %v1912_v9 = vsel %vm4437_vm3, %v1880_v8, %v1816_v47  ;;  %v1738_v10 = vand.u32 2, %v4403_v42  ;;  %v1754_v34 = vand.u32 2, %v4410_v29 }
  0xec   : > { %v871_v14 = vfloor.f32 %v4398_v48  ;;  %v3690_v19 = vpack.c.bf16 %v1912_v9, %v1896_v57  ;;  %v1578_v0 = vadd.f32 0.041666646, %v1546_v21  ;;  %v1594_v36 = vadd.f32 0.041666646, %v1562_v20 }
  0xed   : > { %v887_v38 = vfloor.f32 %v855_v56  ;;  %v4473_v40 = vadd.f32 %v1322_v6, %v4412_v18  ;;  %v4476_v13 = vadd.f32 %v1338_v33, %v4419_v46  ;;  %v825_v20 = vmul.f32 0.63661975, %v4408_v15 }
  0xee   : > { %v3818_v37 = vtrunc.f32 %v871_v14  ;;  %v935_v60 = vmul.f32 1.5703125, %v871_v14  ;;  %3691 = vmatprep.subr.bf16.mxu0 %v3690_v19  ;;  %v1610_v8 = vmul.f32 %v1578_v0, %v1450_v62  ;;  %v1626_v16 = vmul.f32 %v1594_v36, %v1466_v24 }
  0xef   : > { %v3850_v42 = vtrunc.f32 %v887_v38  ;;  %v951_v17 = vmul.f32 1.5703125, %v887_v38  ;;  %v999_v21 = vmul.f32 0.0004837513, %v871_v14  ;;  %v1015_v58 = vmul.f32 0.0004837513, %v887_v38 }
  0xf0   : > { %v4478_v29 = vcvt.f32.s32 %v3818_v37  ;;  %v967_v48 = vsub.f32 %v4364_v31, %v935_v60  ;;  %v4482_v47 = vadd.f32 %v1610_v8, %v1418_v51  ;;  %v4484_v18 = vadd.f32 %v1626_v16, %v1434_v61 }
  0xf1   : > { %v983_v46 = vsub.f32 %v4387_v59, %v951_v17  ;;  %v1063_v6 = vmul.f32 7.54979e-08, %v871_v14  ;;  %v1079_v62 = vmul.f32 7.54979e-08, %v887_v38  ;;  %v841_v33 = vadd.f32 0.5, %v4401_v30 }
  0xf2   : > { %v1031_v63 = vsub.f32 %v967_v48, %v999_v21  ;;  %v1802_v31 = vsel %vm4456_vm4, %v4482_v47, %v4473_v40  ;;  %v1818_v51 = vsel %vm4460_vm5, %v4484_v18, %v4476_v13  ;;  %v4496_v61 = vcvt.f32.s32 %v3850_v42 }
  0xf3   : > { %v1047_v24 = vsub.f32 %v983_v46, %v1015_v58  ;;  %v1866_v59 = vsub.f32 0.0, %v1802_v31  ;;  %v1882_v57 = vsub.f32 0.0, %v1818_v51  ;;  %v857_v9 = vadd.f32 0.5, %v825_v20 }
  0xf4   : > { %v1095_v56 = vsub.f32 %v1031_v63, %v1063_v6  ;;  %vm4498_vm6 = vcmp.ne.s32.totalorder %v1738_v10, 0  ;;  %v6063_v14 = vmov 0  ;;  %vm4502_vm7 = vcmp.ne.s32.totalorder %v1754_v34, 0 }
  0xf5   : > { %v6064_v14 = vsel %vm4498_vm6, 4294967295, %v6063_v14  ;;  %v1111_v19 = vsub.f32 %v1047_v24, %v1079_v62  ;;  %v1671_v0 = vand.u32 1, %v4478_v29  ;;  %v1898_v36 = vsel %vm4498_vm6, %v1866_v59, %v1802_v31  ;;  %vm1946_vm2 = vmxor %vm4460_vm5, %vm4502_vm7 }
  0xf6   : > { %6065 = vst [vmem:[#allocation26_spill] sm:$0xff] %v6064_v14  ;;  %v1914_v38 = vsel %vm4502_vm7, %v1882_v57, %v1818_v51  ;;  %v1127_v37 = vmul.f32 %v1095_v56, %v1095_v56  ;;  %v873_v60 = vfloor.f32 %v841_v33  ;;  %v1687_v16 = vand.u32 1, %v4496_v61  ;;  %vm1930_vm7 = vmxor %vm4456_vm4, %vm4498_vm6 }
  0xf7   : > { %v3698_v8 = vpack.c.bf16 %v1914_v38, %v1898_v36  ;;  %v1143_v10 = vmul.f32 %v1111_v19, %v1111_v19  ;;  %v1735_v34 = vand.u32 2, %v4478_v29  ;;  %v1751_v48 = vand.u32 2, %v4496_v61 }
  0xf8   : > { %v1191_v42 = vmul.f32 -0.00019515296, %v1127_v37  ;;  %v1383_v17 = vmul.f32 0.5, %v1127_v37  ;;  %v889_v21 = vfloor.f32 %v857_v9  ;;  %v1159_v20 = vmul.f32 %v1127_v37, %v1095_v56 }
  0xf9   : > { %3699 = vmatprep.subr.bf16.mxu1 %v3698_v8  ;;  %v1175_v46 = vmul.f32 %v1143_v10, %v1111_v19  ;;  %v1207_v58 = vmul.f32 -0.00019515296, %v1143_v10  ;;  %v1447_v63 = vmul.f32 %v1127_v37, %v1127_v37  ;;  %v1399_v62 = vmul.f32 0.5, %v1143_v10 }
  0xfa   : > { %v1223_v6 = vadd.f32 0.008332161, %v1191_v42  ;;  %v1479_v31 = vmul.f32 2.4433157e-05, %v1127_v37  ;;  %v3822_v33 = vtrunc.f32 %v873_v60  ;;  %v1415_v24 = vsub.f32 1.0, %v1383_v17 }
  0xfb   : > { %v1239_v51 = vadd.f32 0.008332161, %v1207_v58  ;;  %v1463_v59 = vmul.f32 %v1143_v10, %v1143_v10  ;;  %v1495_v57 = vmul.f32 2.4433157e-05, %v1143_v10  ;;  %v3854_v38 = vtrunc.f32 %v889_v21 }
  0xfc   : > { %v1255_v36 = vmul.f32 %v1223_v6, %v1127_v37  ;;  %v1511_v29 = vadd.f32 -0.0013887316, %v1479_v31  ;;  %v937_v41 = vmul.f32 1.5703125, %v873_v60  ;;  %vm4514_vm8 = vcmp.eq.s32.totalorder %v1671_v0, 1 }
  0xfd   : > { %v1271_v5 = vmul.f32 %v1239_v51, %v1143_v10  ;;  %v1527_v61 = vadd.f32 -0.0013887316, %v1495_v57  ;;  %v4518_v8 = vcvt.f32.s32 %v3822_v33  ;;  %v953_v42 = vmul.f32 1.5703125, %v889_v21 }
  0xfe   : > { %v1287_v4 = vadd.f32 -0.16666655, %v1255_v36  ;;  %v1543_v25 = vmul.f32 %v1511_v29, %v1127_v37  ;;  %v969_v58 = vsub.f32 %v4373_v39, %v937_v41  ;;  %v1001_v17 = vmul.f32 0.0004837513, %v873_v60 }
  0xff   : > { %v1303_v7 = vadd.f32 -0.16666655, %v1271_v5  ;;  %v1559_v26 = vmul.f32 %v1527_v61, %v1143_v10  ;;  %v985_v6 = vsub.f32 %v4408_v15, %v953_v42  ;;  %v1017_v31 = vmul.f32 0.0004837513, %v889_v21 }
 0x100   : > { %v1319_v43 = vmul.f32 %v1287_v4, %v1159_v20  ;;  %v1575_v51 = vadd.f32 0.041666646, %v1543_v25  ;;  %v1033_v57 = vsub.f32 %v969_v58, %v1001_v17  ;;  %v1065_v0 = vmul.f32 7.54979e-08, %v873_v60 }
 0x101   : > { %v1335_v49 = vmul.f32 %v1303_v7, %v1175_v46  ;;  %v1591_v28 = vadd.f32 0.041666646, %v1559_v26  ;;  %v1049_v27 = vsub.f32 %v985_v6, %v1017_v31  ;;  %v1081_v33 = vmul.f32 7.54979e-08, %v889_v21 }
 0x102   : > { %v4522_v14 = vadd.f32 %v1319_v43, %v1095_v56  ;;  %v1607_v36 = vmul.f32 %v1575_v51, %v1447_v63  ;;  %v3855_v37 = vcvt.f32.s32 %v3854_v38  ;;  %v4524_v29 = vsub.f32 %v1033_v57, %v1065_v0 }
 0x103   : > { %v4526_v41 = vadd.f32 %v1335_v49, %v1111_v19  ;;  %v1431_v5 = vsub.f32 1.0, %v1399_v62  ;;  %v1623_v39 = vmul.f32 %v1591_v28, %v1463_v59  ;;  %v4528_v15 = vsub.f32 %v1049_v27, %v1081_v33 }
 0x104   : > { %v4530_v4 = vadd.f32 %v1607_v36, %v1415_v24  ;;  %vm4532_vm9 = vcmp.eq.s32.totalorder %v1687_v16, 1  ;;  %vm4536_vm10 = vcmp.ne.s32.totalorder %v1735_v34, 0  ;;  %v1129_v26 = vmul.f32 %v4524_v29, %v4524_v29 }
 0x105   : > { %v4542_v43 = vadd.f32 %v1623_v39, %v1431_v5  ;;  %vm4544_vm11 = vcmp.ne.s32.totalorder %v1751_v48, 0  ;;  %v1145_v27 = vmul.f32 %v4528_v15, %v4528_v15  ;;  %v1673_v28 = vand.u32 1, %v4518_v8  ;;  %vm1927_vm3 = vmxor %vm4514_vm8, %vm4536_vm10 }
 0x106   : > { %v1799_v56 = vsel %vm4514_vm8, %v4530_v4, %v4522_v14  ;;  %v1193_v19 = vmul.f32 -0.00019515296, %v1129_v26  ;;  %v4555_v60 = vmul.f32 0.5, %v1129_v26  ;;  %v1689_v10 = vand.u32 1, %v3855_v37 }
 0x107   : > { %v1815_v16 = vsel %vm4532_vm9, %v4542_v43, %v4526_v41  ;;  %v1863_v34 = vsub.f32 0.0, %v1799_v56  ;;  %v1209_v48 = vmul.f32 -0.00019515296, %v1145_v27  ;;  %v1737_v21 = vand.u32 2, %v4518_v8 }
 0x108   : > { %v1879_v20 = vsub.f32 0.0, %v1815_v16  ;;  %v1161_v46 = vmul.f32 %v1129_v26, %v4524_v29  ;;  %v1225_v63 = vadd.f32 0.008332161, %v1193_v19  ;;  %v1753_v62 = vand.u32 2, %v3855_v37 }
 0x109   : > { %v1177_v24 = vmul.f32 %v1145_v27, %v4528_v15  ;;  %v1241_v59 = vadd.f32 0.008332161, %v1209_v48  ;;  %v1401_v38 = vmul.f32 0.5, %v1145_v27  ;;  %v1417_v61 = vsub.f32 1.0, %v4555_v60 }
 0x10a   : > { %v1895_v42 = vsel %vm4536_vm10, %v1863_v34, %v1799_v56  ;;  %v1911_v58 = vsel %vm4544_vm11, %v1879_v20, %v1815_v16  ;;  %v1257_v17 = vmul.f32 %v1225_v63, %v1129_v26  ;;  %v1481_v6 = vmul.f32 2.4433157e-05, %v1129_v26  ;;  %v6091_v56 = vld [vmem:[#allocation17_spill] sm:$0xff] }
 0x10b   : > { %v3692_v8 = vpack.c.bf16 %v1911_v58, %v1895_v42  ;;  %v1273_v31 = vmul.f32 %v1241_v59, %v1145_v27  ;;  %v1449_v51 = vmul.f32 %v1129_v26, %v1129_v26  ;;  %v1497_v57 = vmul.f32 2.4433157e-05, %v1145_v27 }
 0x10c   : > { %v1289_v0 = vadd.f32 -0.16666655, %v1257_v17  ;;  %v1465_v33 = vmul.f32 %v1145_v27, %v1145_v27  ;;  %v1513_v36 = vadd.f32 -0.0013887316, %v1481_v6  ;;  %v1832_v37 = vsel %vm4414_vm0, %v4429_v45, %v4435_v12 }
 0x10d   : > { %3693 = vmatpush1.bf16.msra.mxu0 %v3692_v8  ;;  %v1305_v5 = vadd.f32 -0.16666655, %v1273_v31  ;;  %v1529_v39 = vadd.f32 -0.0013887316, %v1497_v57  ;;  %vm4573_vm12 = vcmp.eq.s32.totalorder %v1673_v28, 1  ;;  %v1848_v19 = vsel %vm4425_vm1, %v4445_v50, %v4448_v35  ;;  %v6085_v8 = vld [vmem:[#allocation22_spill] sm:$0xff] }
 0x10e   : > { %v1960_v60 = vsub.f32 0.0, %v1832_v37  ;;  %v1321_v16 = vmul.f32 %v1289_v0, %v1161_v46  ;;  %v1433_v45 = vsub.f32 1.0, %v1401_v38  ;;  %v1545_v12 = vmul.f32 %v1513_v36, %v1129_v26 }
 0x10f   : > { %vm4585_vm14 = vcmp.eq.s32.totalorder %v1689_v10, 1  ;;  %v1976_v28 = vsub.f32 0.0, %v1848_v19  ;;  %v1337_v50 = vmul.f32 %v1305_v5, %v1177_v24  ;;  %v1561_v35 = vmul.f32 %v1529_v39, %v1145_v27 }
 0x110   : > { %v1834_v52 = vsel %vm4456_vm4, %v4473_v40, %v4482_v47  ;;  %v1850_v2 = vsel %vm4460_vm5, %v4476_v13, %v4484_v18  ;;  %v1577_v26 = vadd.f32 0.041666646, %v1545_v12  ;;  %vm4601_vm0 = vcmp.ne.s32.totalorder %v1753_v62, 0  ;;  %vm1943_vm5 = vmxor %vm4532_vm9, %vm4544_vm11 }
 0x111   : > { %v1992_v1 = vsel %vm1928_vm13, %v1960_v60, %v1832_v37  ;;  %v2008_v11 = vsel %vm1944_vm15, %v1976_v28, %v1848_v19  ;;  %v1353_v48 = vadd.f32 %v1321_v16, %v4524_v29  ;;  %v1593_v27 = vadd.f32 0.041666646, %v1561_v35  ;;  %vm1945_vm4 = vmxor %vm4585_vm14, %vm4601_vm0  ;;  %v6087_v19 = vld [vmem:[#allocation24_spill] sm:$0xff]  ;;  %v6088_v60 = vld [vmem:[#allocation25_spill] sm:$0xff] }
 0x112   : > { %vm4606_vm1 = vcmp.ne.s32.totalorder %v1737_v21, 0  ;;  %v3694_v40 = vpack.c.bf16 %v2008_v11, %v1992_v1  ;;  %v1978_v47 = vsub.f32 0.0, %v1850_v2  ;;  %v1609_v13 = vmul.f32 %v1577_v26, %v1449_v51  ;;  %v6086_v51 = vld [vmem:[#allocation23_spill] sm:$0xff]  ;;  %v6089_v35 = vld [vmem:[#allocation18_spill] sm:$0xff] }
 0x113   : > { %v1962_v18 = vsub.f32 0.0, %v1834_v52  ;;  %v1831_v46 = vsel %vm4514_vm8, %v4522_v14, %v4530_v4  ;;  %v1847_v29 = vsel %vm4532_vm9, %v4526_v41, %v4542_v43  ;;  %v1369_v22 = vadd.f32 %v1337_v50, %v4528_v15  ;;  %v4668_v50 = vld [vmem:[%s4230_s13] sm:$0xff]  ;;  %vm1929_vm8 = vmxor %vm4573_vm12, %vm4606_vm1 }
 0x114   : > { %v1625_v30 = vmul.f32 %v1593_v27, %v1465_v33  ;;  %3695 = vmatprep.subr.bf16.mxu0 %v3694_v40  ;;  %v1959_v21 = vsub.f32 0.0, %v1831_v46  ;;  %v1975_v63 = vsub.f32 0.0, %v1847_v29  ;;  %v1641_v14 = vadd.f32 %v1609_v13, %v1417_v61 }
 0x115   : > { %v2010_v4 = vsel %vm1946_vm2, %v1978_v47, %v1850_v2  ;;  %v580_v41 = vmul.f32 %v4332_v53, %v4336_v55  ;;  %v764_v9 = vmul.f32 %v4352_v3, %v4334_v54  ;;  %v780_v62 = vadd.f32 %v4377_v44, %v4368_v32 }
 0x116   : > { %v1657_v7 = vadd.f32 %v1625_v30, %v1433_v45  ;;  %v1991_v43 = vsel %vm1927_vm3, %v1959_v21, %v1831_v46  ;;  %v2007_v15 = vsel %vm1943_vm5, %v1975_v63, %v1847_v29  ;;  %v1801_v25 = vsel %vm4573_vm12, %v1641_v14, %v1353_v48  ;;  %v4688_v30 = vld [vmem:[%s4230_s13 + $0x8] sm:$0xff] }
 0x117   : > { %v3696_v49 = vpack.c.bf16 %v2007_v15, %v1991_v43  ;;  %v1833_v53 = vsel %vm4573_vm12, %v1353_v48, %v1641_v14  ;;  %v796_v59 = vadd.f32 %v764_v9, %v580_v41  ;;  %v1865_v38 = vsub.f32 0.0, %v1801_v25 }
 0x118   : > { %v1817_v3 = vsel %vm4585_vm14, %v1657_v7, %v1369_v22  ;;  %v1994_v61 = vsel %vm1930_vm7, %v1962_v18, %v1834_v52  ;;  %v1849_v32 = vsel %vm4585_vm14, %v1369_v22, %v1657_v7  ;;  %v812_v42 = vmul.f32 0.63661975, %v780_v62  ;;  %v6090_v52 = vld [vmem:[#allocation10_spill] sm:$0xff] }
 0x119   : > { %v1881_v44 = vsub.f32 0.0, %v1817_v3  ;;  %3697 = vmatpush1.bf16.msra.mxu0 %v3696_v49  ;;  %v1977_v23 = vsub.f32 0.0, %v1849_v32  ;;  %v828_v58 = vmul.f32 0.63661975, %v796_v59  ;;  %v3702_v17 = vpack.c.bf16 %v2010_v4, %v1994_v61  ;;  %v6093_v4 = vld [vmem:[#allocation8_spill] sm:$0xff] }
 0x11a   : > { %v1961_v6 = vsub.f32 0.0, %v1833_v53  ;;  %v582_v31 = vmul.f32 %v6085_v8, %v4336_v55  ;;  %v766_v57 = vmul.f32 %v6086_v51, %v4334_v54  ;;  %v1897_v0 = vsel %vm4606_vm1, %v1865_v38, %v1801_v25  ;;  %v6095_v38 = vld [vmem:[#allocation9_spill] sm:$0xff] }
 0x11b   : > { %v1913_v33 = vsel %vm4601_vm0, %v1881_v44, %v1817_v3  ;;  %v844_v36 = vadd.f32 0.5, %v812_v42  ;;  %v860_v37 = vadd.f32 0.5, %v828_v58  ;;  %v2009_v39 = vsel %vm1945_vm4, %v1977_v23, %v1849_v32  ;;  %v4717_v44 = vld [vmem:[%s4230_s13 + $0x10] sm:$0xff]  ;;  %v6097_v42 = vld [vmem:[#allocation20_spill] sm:$0xff] }
 0x11c   : > { %v3700_v5 = vpack.c.bf16 %v1913_v33, %v1897_v0  ;;  %v4663_v16 = vadd.f32 %v6088_v60, %v6087_v19  ;;  %v4665_v45 = vadd.f32 %v766_v57, %v582_v31  ;;  %vm2051_vm6 = vcmask 261120  }
 0x11d   : > { %v876_v12 = vfloor.f32 %v844_v36  ;;  %v892_v28 = vfloor.f32 %v860_v37  ;;  %v618_v2 = vrot.slane %v6090_v52, %v6089_v35  ;;  %v6020_v10 = vmov 0.0  }
 0x11e   : > { %3701 = vmatpush1.bf16.msra.mxu1 %v3700_v5  ;;  %v814_v34 = vmul.f32 0.63661975, %v4663_v16  ;;  %v830_v26 = vmul.f32 0.63661975, %v4665_v45  ;;  %2128 = vmatprep.mubr.f32.mxu0 %v6020_v10  ;;  %v1993_v1 = vsel %vm1929_vm8, %v1961_v6, %v1833_v53  ;;  %v6092_v47 = vrot.slane %v6090_v52, %v6091_v56  ;;  %v6098_v6 = vld [vmem:[#allocation19_spill] sm:$0xff] }
 0x11f   : > { %3703 = vmatprep.subr.bf16.mxu1 %v3702_v17  ;;  %v940_v11 = vmul.f32 1.5703125, %v876_v12  ;;  %v956_v48 = vmul.f32 1.5703125, %v892_v28  ;;  %2217 = vmatprep.mubr.f32.mxu1 %v6020_v10  ;;  %v3704_v27 = vpack.c.bf16 %v2009_v39, %v1993_v1  ;;  %v3828_v20 = vtrunc.f32 %v876_v12 }
 0x120   : > { %v3860_v40 = vtrunc.f32 %v892_v28  ;;  %3640 = vmatmul.mubr.msk.f32.vlgmr.msra.gmra.mrb[0].mxu0 %vm2051_vm6, %v4668_v50  ;;  %v514_v13 = vrot.slane %v6092_v47, %v6091_v56  ;;  %v1004_v29 = vmul.f32 0.0004837513, %v876_v12  ;;  %v1020_v22 = vmul.f32 0.0004837513, %v892_v28 }
 0x121   : > { %v972_v18 = vsub.f32 %v780_v62, %v940_v11  ;;  %v988_v46 = vsub.f32 %v796_v59, %v956_v48  ;;  %2134 = vmatprep.mubr.f32.mxu0 %v6020_v10  ;;  %v846_v21 = vadd.f32 0.5, %v814_v34  ;;  %v862_v63 = vadd.f32 0.5, %v830_v26 }
 0x122   : > { %3705 = vmatpush1.bf16.msra.mxu1 %v3704_v27  ;;  %v698_v14 = vrot.slane %v618_v2, %v6089_v35  ;;  %v6094_v41 = vrot.slane %v6090_v52, %v6093_v4  ;;  %v1068_v15 = vmul.f32 7.54979e-08, %v876_v12  ;;  %v1084_v62 = vmul.f32 7.54979e-08, %v892_v28  ;;  %v4746_v28 = vld [vmem:[%s4230_s13 + $0x18] sm:$0xff] }
 0x123   : > { %v1036_v7 = vsub.f32 %v972_v18, %v1004_v29  ;;  %v1052_v43 = vsub.f32 %v988_v46, %v1020_v22  ;;  %v4697_v24 = vcvt.f32.s32 %v3828_v20  ;;  %v4699_v25 = vcvt.f32.s32 %v3860_v40 }
 0x124   : > { %v4695_v9 = vrot.slane %v6094_v41, %v6091_v56  ;;  %v878_v49 = vfloor.f32 %v846_v21  ;;  %v894_v53 = vfloor.f32 %v862_v63  ;;  %3641 = vmatmul.mubr.msk.f32.gmra.mrb[2].mxu0 %vm2051_vm6, %v4688_v30  ;;  %v6096_v61 = vrot.slane %v6090_v52, %v6095_v38 }
 0x125   : > { %v4703_v59 = vsub.f32 %v1036_v7, %v1068_v15  ;;  %v4705_v3 = vsub.f32 %v1052_v43, %v1084_v62  ;;  %3644 = vmatmul.mubr.msk.f32.vlgmr.msra.gmra.mrb[0].mxu1 %vm2051_vm6, %v4668_v50  ;;  %2140 = vmatprep.mubr.f32.mxu0 %v6020_v10  ;;  %v4720_v58 = vmul.f32 %v514_v13, %v6097_v42  ;;  %v1676_v33 = vand.u32 1, %v4697_v24 }
 0x126   : > { %v4713_v32 = vrot.slane %v6096_v61, %v6089_v35  ;;  %v3832_v23 = vtrunc.f32 %v878_v49  ;;  %v4723_v17 = vmul.f32 %v514_v13, %v4336_v55  ;;  %v4726_v8 = vmul.f32 %v698_v14, %v6098_v6  ;;  %2223 = vmatprep.mubr.f32.mxu1 %v6020_v10 }
 0x127   : > { %v1132_v31 = vmul.f32 %v4703_v59, %v4703_v59  ;;  %v1148_v51 = vmul.f32 %v4705_v3, %v4705_v3  ;;  %v942_v57 = vmul.f32 1.5703125, %v878_v49  ;;  %v4734_v0 = vmul.f32 %v698_v14, %v4334_v54 }
 0x128   : > { %v1692_v36 = vand.u32 1, %v4699_v25  ;;  %v1740_v37 = vand.u32 2, %v4697_v24  ;;  %v958_v5 = vmul.f32 1.5703125, %v894_v53  ;;  %3642 = vmatmul.mubr.msk.f32.gmra.mrb[4].mxu0 %vm2051_vm6, %v4717_v44  ;;  %v1756_v60 = vand.u32 2, %v4699_v25 }
 0x129   : > { %v1196_v39 = vmul.f32 -0.00019515296, %v1132_v31  ;;  %v1212_v19 = vmul.f32 -0.00019515296, %v1148_v51  ;;  %v3864_v12 = vtrunc.f32 %v894_v53  ;;  %3645 = vmatmul.mubr.msk.f32.gmra.mrb[2].mxu1 %vm2051_vm6, %v4688_v30  ;;  %2146 = vmatprep.mubr.f32.mxu0 %v6020_v10  ;;  %v1164_v52 = vmul.f32 %v1132_v31, %v4703_v59 }
 0x12a   : > { %v4749_v2 = vcvt.f32.s32 %v3832_v23  ;;  %v1006_v34 = vmul.f32 0.0004837513, %v878_v49  ;;  %v1022_v26 = vmul.f32 0.0004837513, %v894_v53  ;;  %2229 = vmatprep.mubr.f32.mxu1 %v6020_v10  ;;  %v1484_v48 = vmul.f32 2.4433157e-05, %v1132_v31 }
 0x12b   : > { %v1228_v1 = vadd.f32 0.008332161, %v1196_v39  ;;  %v1244_v11 = vadd.f32 0.008332161, %v1212_v19  ;;  %v974_v27 = vsub.f32 %v4663_v16, %v942_v57  ;;  %v1180_v20 = vmul.f32 %v1148_v51, %v4705_v3 }
 0x12c   : > { %v1388_v40 = vmul.f32 0.5, %v1132_v31  ;;  %v1500_v47 = vmul.f32 2.4433157e-05, %v1148_v51  ;;  %v990_v13 = vsub.f32 %v4665_v45, %v958_v5  ;;  %3643 = vmatmul.mubr.msk.f32.gmra.mrb[6].mxu0 %vm2051_vm6, %v4746_v28  ;;  %v1516_v29 = vadd.f32 -0.0013887316, %v1484_v48 }
 0x12d   : > { %v1260_v18 = vmul.f32 %v1228_v1, %v1132_v31  ;;  %v1276_v46 = vmul.f32 %v1244_v11, %v1148_v51  ;;  %v1038_v22 = vsub.f32 %v974_v27, %v1006_v34  ;;  %3646 = vmatmul.mubr.msk.f32.gmra.mrb[4].mxu1 %vm2051_vm6, %v4717_v44  ;;  %2306 = vmatprep.mubr.f32.mxu0 %v6020_v10  ;;  %vm4760_vm9 = vcmp.eq.s32.totalorder %v1676_v33, 1 }
 0x12e   : > { %v1532_v21 = vadd.f32 -0.0013887316, %v1500_v47  ;;  %v1054_v63 = vsub.f32 %v990_v13, %v1022_v26  ;;  %v1070_v14 = vmul.f32 7.54979e-08, %v878_v49  ;;  %v1086_v45 = vmul.f32 7.54979e-08, %v894_v53  ;;  %2235 = vmatprep.mubr.f32.mxu1 %v6020_v10 }
 0x12f   : > { %v1292_v41 = vadd.f32 -0.16666655, %v1260_v18  ;;  %v1308_v7 = vadd.f32 -0.16666655, %v1276_v46  ;;  %v1404_v43 = vmul.f32 0.5, %v1148_v51  ;;  %v1548_v15 = vmul.f32 %v1516_v29, %v1132_v31 }
 0x130   : > { %vm4765_vm10 = vcmp.eq.s32.totalorder %v1692_v36, 1  ;;  %v1564_v24 = vmul.f32 %v1532_v21, %v1148_v51  ;;  %v4769_v25 = vcvt.f32.s32 %v3864_v12  ;;  %v4771_v61 = vsub.f32 %v1038_v22, %v1070_v14 }
 0x131   : > { %v4773_v23 = vsub.f32 %v1054_v63, %v1086_v45  ;;  %v1324_v57 = vmul.f32 %v1292_v41, %v1164_v52  ;;  %v1340_v49 = vmul.f32 %v1308_v7, %v1180_v20  ;;  %v1452_v53 = vmul.f32 %v1132_v31, %v1132_v31  ;;  %3647 = vmatmul.mubr.msk.f32.gmra.mrb[6].mxu1 %vm2051_vm6, %v4746_v28 }
 0x132   : > { %v1580_v33 = vadd.f32 0.041666646, %v1548_v15  ;;  %v1468_v5 = vmul.f32 %v1148_v51, %v1148_v51  ;;  %v1596_v39 = vadd.f32 0.041666646, %v1564_v24  ;;  %vm4777_vm11 = vcmp.ne.s32.totalorder %v1740_v37, 0  ;;  %2395 = vmatprep.mubr.f32.mxu1 %v6020_v10 }
 0x133   : > { %vm4781_vm12 = vcmp.ne.s32.totalorder %v1756_v60, 0  ;;  %v1134_v12 = vmul.f32 %v4771_v61, %v4771_v61  ;;  %v1150_v31 = vmul.f32 %v4773_v23, %v4773_v23  ;;  %v4791_v52 = vadd.f32 %v1324_v57, %v4703_v59  ;;  %vm1932_vm1 = vmxor %vm4760_vm9, %vm4777_vm11 }
 0x134   : > { %v1420_v51 = vsub.f32 1.0, %v1388_v40  ;;  %v1436_v37 = vsub.f32 1.0, %v1404_v43  ;;  %v1612_v34 = vmul.f32 %v1580_v33, %v1452_v53  ;;  %v4794_v26 = vadd.f32 %v1340_v49, %v4705_v3  ;;  %vm1948_vm4 = vmxor %vm4765_vm10, %vm4781_vm12 }
 0x135   : > { %v1628_v60 = vmul.f32 %v1596_v39, %v1468_v5  ;;  %v1198_v1 = vmul.f32 -0.00019515296, %v1134_v12  ;;  %v1678_v11 = vand.u32 1, %v4749_v2  ;;  %v1214_v27 = vmul.f32 -0.00019515296, %v1150_v31 }
 0x136   : > { %v4797_v48 = vadd.f32 %v1612_v34, %v1420_v51  ;;  %v1694_v20 = vand.u32 1, %v4769_v25  ;;  %v1742_v47 = vand.u32 2, %v4749_v2  ;;  %v1166_v59 = vmul.f32 %v1134_v12, %v4771_v61 }
 0x137   : > { %v4801_v13 = vadd.f32 %v1628_v60, %v1436_v37  ;;  %v1230_v40 = vadd.f32 0.008332161, %v1198_v1  ;;  %v1390_v18 = vmul.f32 0.5, %v1134_v12  ;;  %v1182_v46 = vmul.f32 %v1150_v31, %v4773_v23 }
 0x138   : > { %v1804_v3 = vsel %vm4760_vm9, %v4797_v48, %v4791_v52  ;;  %v1246_v29 = vadd.f32 0.008332161, %v1214_v27  ;;  %v1406_v22 = vmul.f32 0.5, %v1150_v31  ;;  %v1486_v14 = vmul.f32 2.4433157e-05, %v1134_v12 }
 0x139   : > { %v1820_v2 = vsel %vm4765_vm10, %v4801_v13, %v4794_v26  ;;  %v1868_v21 = vsub.f32 0.0, %v1804_v3  ;;  %v1262_v63 = vmul.f32 %v1230_v40, %v1134_v12  ;;  %v1454_v7 = vmul.f32 %v1134_v12, %v1134_v12 }
 0x13a   : > { %v1884_v45 = vsub.f32 0.0, %v1820_v2  ;;  %v1278_v41 = vmul.f32 %v1246_v29, %v1150_v31  ;;  %v1502_v43 = vmul.f32 2.4433157e-05, %v1150_v31  ;;  %v1422_v24 = vsub.f32 1.0, %v1390_v18 }
 0x13b   : > { %v1294_v15 = vadd.f32 -0.16666655, %v1262_v63  ;;  %v1470_v57 = vmul.f32 %v1150_v31, %v1150_v31  ;;  %v1518_v49 = vadd.f32 -0.0013887316, %v1486_v14  ;;  %v1900_v53 = vsel %vm4777_vm11, %v1868_v21, %v1804_v3 }
 0x13c   : > { %v1916_v33 = vsel %vm4781_vm12, %v1884_v45, %v1820_v2  ;;  %v1310_v5 = vadd.f32 -0.16666655, %v1278_v41  ;;  %v1534_v39 = vadd.f32 -0.0013887316, %v1502_v43  ;;  %vm4817_vm13 = vcmp.eq.s32.totalorder %v1678_v11, 1 }
 0x13d   : > { %v3706_v37 = vpack.c.bf16 %v1916_v33, %v1900_v53  ;;  %v1326_v34 = vmul.f32 %v1294_v15, %v1166_v59  ;;  %v1550_v60 = vmul.f32 %v1518_v49, %v1134_v12  ;;  %v779_v1 = vadd.f32 %v4726_v8, %v4720_v58 }
 0x13e   : > { %v1342_v27 = vmul.f32 %v1310_v5, %v1182_v46  ;;  %v1566_v40 = vmul.f32 %v1534_v39, %v1150_v31  ;;  %v795_v18 = vadd.f32 %v4734_v0, %v4723_v17  ;;  %v565_v3 = vmul.f32 %v4695_v9, %v6097_v42 }
 0x13f   : > { %3707 = vmatprep.subr.bf16.mxu0 %v3706_v37  ;;  %v1438_v29 = vsub.f32 1.0, %v1406_v22  ;;  %v1582_v11 = vadd.f32 0.041666646, %v1550_v60  ;;  %v811_v2 = vmul.f32 0.63661975, %v779_v1  ;;  %v581_v21 = vmul.f32 %v4695_v9, %v4336_v55 }
 0x140   : > { %v1598_v59 = vadd.f32 0.041666646, %v1566_v40  ;;  %v1758_v12 = vand.u32 2, %v4769_v25  ;;  %v827_v63 = vmul.f32 0.63661975, %v795_v18  ;;  %v749_v58 = vmul.f32 %v4713_v32, %v6098_v6 }
 0x141   : > { %v4833_v8 = vadd.f32 %v1326_v34, %v4771_v61  ;;  %v1614_v17 = vmul.f32 %v1582_v11, %v1454_v7  ;;  %v843_v0 = vadd.f32 0.5, %v811_v2  ;;  %v765_v31 = vmul.f32 %v4713_v32, %v4334_v54 }
 0x142   : > { %v4838_v46 = vadd.f32 %v1342_v27, %v4773_v23  ;;  %v1630_v22 = vmul.f32 %v1598_v59, %v1470_v57  ;;  %v859_v9 = vadd.f32 0.5, %v827_v63  ;;  %v4840_v14 = vadd.f32 %v749_v58, %v565_v3 }
 0x143   : > { %v4842_v25 = vadd.f32 %v1614_v17, %v1422_v24  ;;  %vm4844_vm14 = vcmp.eq.s32.totalorder %v1694_v20, 1  ;;  %v875_v61 = vfloor.f32 %v843_v0  ;;  %v4848_v41 = vadd.f32 %v765_v31, %v581_v21 }
 0x144   : > { %v4850_v7 = vadd.f32 %v1630_v22, %v1438_v29  ;;  %vm4852_vm15 = vcmp.ne.s32.totalorder %v1742_v47, 0  ;;  %vm4856_vm0 = vcmp.ne.s32.totalorder %v1758_v12, 0  ;;  %v891_v43 = vfloor.f32 %v859_v9 }
 0x145   : > { %v1806_v20 = vsel %vm4817_vm13, %v4842_v25, %v4833_v8  ;;  %v3826_v15 = vtrunc.f32 %v875_v61  ;;  %v939_v24 = vmul.f32 1.5703125, %v875_v61  ;;  %v1836_v47 = vsel %vm4760_vm9, %v4791_v52, %v4797_v48 }
 0x146   : > { %v1822_v57 = vsel %vm4844_vm14, %v4850_v7, %v4838_v46  ;;  %v1870_v49 = vsub.f32 0.0, %v1806_v20  ;;  %v3858_v53 = vtrunc.f32 %v891_v43  ;;  %v955_v33 = vmul.f32 1.5703125, %v891_v43 }
 0x147   : > { %v1886_v5 = vsub.f32 0.0, %v1822_v57  ;;  %v971_v39 = vsub.f32 %v779_v1, %v939_v24  ;;  %v1003_v37 = vmul.f32 0.0004837513, %v875_v61  ;;  %v4876_v34 = vsel %vm4765_vm10, %v4794_v26, %v4801_v13  ;;  %vm1934_vm10 = vmxor %vm4817_vm13, %vm4852_vm15 }
 0x148   : > { %v4878_v60 = vcvt.f32.s32 %v3826_v15  ;;  %v987_v52 = vsub.f32 %v795_v18, %v955_v33  ;;  %v1019_v48 = vmul.f32 0.0004837513, %v891_v43  ;;  %v813_v27 = vmul.f32 0.63661975, %v4840_v14  ;;  %v4887_v18 = vld [vmem:[%s4248_s30 + $0x10] sm:$0xff] }
 0x149   : > { %v1902_v40 = vsel %vm4852_vm15, %v1870_v49, %v1806_v20  ;;  %v1918_v1 = vsel %vm4856_vm0, %v1886_v5, %v1822_v57  ;;  %v1035_v3 = vsub.f32 %v971_v39, %v1003_v37  ;;  %v1067_v29 = vmul.f32 7.54979e-08, %v875_v61 }
 0x14a   : > { %v3714_v11 = vpack.c.bf16 %v1918_v1, %v1902_v40  ;;  %v3859_v2 = vcvt.f32.s32 %v3858_v53  ;;  %v1051_v21 = vsub.f32 %v987_v52, %v1019_v48  ;;  %v1083_v26 = vmul.f32 7.54979e-08, %v891_v43 }
 0x14b   : > { %v1099_v13 = vsub.f32 %v1035_v3, %v1067_v29  ;;  %v829_v59 = vmul.f32 0.63661975, %v4848_v41  ;;  %v1964_v12 = vsub.f32 0.0, %v1836_v47  ;;  %v845_v0 = vadd.f32 0.5, %v813_v27 }
 0x14c   : > { %3715 = vmatprep.subr.bf16.mxu1 %v3714_v11  ;;  %v1115_v17 = vsub.f32 %v1051_v21, %v1083_v26  ;;  %v1675_v22 = vand.u32 1, %v4878_v60  ;;  %v1980_v61 = vsub.f32 0.0, %v4876_v34  ;;  %v1691_v20 = vand.u32 1, %v3859_v2 }
 0x14d   : > { %v1131_v31 = vmul.f32 %v1099_v13, %v1099_v13  ;;  %v861_v9 = vadd.f32 0.5, %v829_v59  ;;  %v1739_v15 = vand.u32 2, %v4878_v60  ;;  %v877_v24 = vfloor.f32 %v845_v0 }
 0x14e   : > { %v1147_v43 = vmul.f32 %v1115_v17, %v1115_v17  ;;  %v1755_v53 = vand.u32 2, %v3859_v2  ;;  %v4900_v33 = vsel %vm1932_vm1, %v1964_v12, %v1836_v47  ;;  %vm4902_vm2 = vcmp.eq.s32.totalorder %v1675_v22, 1 }
 0x14f   : > { %v1163_v57 = vmul.f32 %v1131_v31, %v1099_v13  ;;  %v1195_v49 = vmul.f32 -0.00019515296, %v1131_v31  ;;  %v1387_v37 = vmul.f32 0.5, %v1131_v31  ;;  %v1451_v52 = vmul.f32 %v1131_v31, %v1131_v31 }
 0x150   : > { %v1179_v5 = vmul.f32 %v1147_v43, %v1115_v17  ;;  %v1211_v39 = vmul.f32 -0.00019515296, %v1147_v43  ;;  %v1403_v27 = vmul.f32 0.5, %v1147_v43  ;;  %v1483_v40 = vmul.f32 2.4433157e-05, %v1131_v31 }
 0x151   : > { %v1227_v48 = vadd.f32 0.008332161, %v1195_v49  ;;  %v893_v1 = vfloor.f32 %v861_v9  ;;  %v1467_v3 = vmul.f32 %v1147_v43, %v1147_v43  ;;  %v1499_v29 = vmul.f32 2.4433157e-05, %v1147_v43 }
 0x152   : > { %v1243_v60 = vadd.f32 0.008332161, %v1211_v39  ;;  %v3830_v36 = vtrunc.f32 %v877_v24  ;;  %v1515_v16 = vadd.f32 -0.0013887316, %v1483_v40  ;;  %v941_v26 = vmul.f32 1.5703125, %v877_v24 }
 0x153   : > { %v1259_v11 = vmul.f32 %v1227_v48, %v1131_v31  ;;  %v3862_v21 = vtrunc.f32 %v893_v1  ;;  %v1419_v2 = vsub.f32 1.0, %v1387_v37  ;;  %v1531_v47 = vadd.f32 -0.0013887316, %v1499_v29 }
 0x154   : > { %v1275_v59 = vmul.f32 %v1243_v60, %v1147_v43  ;;  %v957_v0 = vmul.f32 1.5703125, %v893_v1  ;;  %v1547_v58 = vmul.f32 %v1515_v16, %v1131_v31  ;;  %vm4906_vm3 = vcmp.eq.s32.totalorder %v1691_v20, 1 }
 0x155   : > { %v1291_v49 = vadd.f32 -0.16666655, %v1259_v11  ;;  %v4910_v39 = vcvt.f32.s32 %v3830_v36  ;;  %v973_v48 = vsub.f32 %v4840_v14, %v941_v26  ;;  %v1563_v63 = vmul.f32 %v1531_v47, %v1147_v43 }
 0x156   : > { %v1307_v40 = vadd.f32 -0.16666655, %v1275_v59  ;;  %v989_v37 = vsub.f32 %v4848_v41, %v957_v0  ;;  %v1005_v60 = vmul.f32 0.0004837513, %v877_v24  ;;  %v1579_v29 = vadd.f32 0.041666646, %v1547_v58 }
 0x157   : > { %v1323_v22 = vmul.f32 %v1291_v49, %v1163_v57  ;;  %vm4914_vm5 = vcmp.ne.s32.totalorder %v1739_v15, 0  ;;  %v4918_v31 = vcvt.f32.s32 %v3862_v21  ;;  %v1021_v20 = vmul.f32 0.0004837513, %v893_v1 }
 0x158   : > { %v1339_v11 = vmul.f32 %v1307_v40, %v1179_v5  ;;  %v1595_v16 = vadd.f32 0.041666646, %v1563_v63  ;;  %vm4920_vm7 = vcmp.ne.s32.totalorder %v1755_v53, 0  ;;  %v1037_v14 = vsub.f32 %v973_v48, %v1005_v60  ;;  %vm1931_vm15 = vmxor %vm4902_vm2, %vm4914_vm5 }
 0x159   : > { %v1069_v43 = vmul.f32 7.54979e-08, %v877_v24  ;;  %v1355_v26 = vadd.f32 %v1323_v22, %v1099_v13  ;;  %v1611_v41 = vmul.f32 %v1579_v29, %v1451_v52  ;;  %v1053_v59 = vsub.f32 %v989_v37, %v1021_v20 }
 0x15a   : > { %v1085_v57 = vmul.f32 7.54979e-08, %v893_v1  ;;  %v1371_v58 = vadd.f32 %v1339_v11, %v1115_v17  ;;  %v1435_v15 = vsub.f32 1.0, %v1403_v27  ;;  %v1627_v47 = vmul.f32 %v1595_v16, %v1467_v3 }
 0x15b   : > { %v1101_v0 = vsub.f32 %v1037_v14, %v1069_v43  ;;  %v1643_v63 = vadd.f32 %v1611_v41, %v1419_v2  ;;  %v2012_v5 = vsel %vm1948_vm4, %v1980_v61, %v4876_v34  ;;  %v1838_v13 = vsel %vm4817_vm13, %v4833_v8, %v4842_v25  ;;  %vm1950_vm13 = vmxor %vm4844_vm14, %vm4856_vm0 }
 0x15c   : > { %v4928_v53 = vsub.f32 %v1053_v59, %v1085_v57  ;;  %v1659_v24 = vadd.f32 %v1627_v47, %v1435_v15  ;;  %v1677_v52 = vand.u32 1, %v4910_v39  ;;  %v1693_v27 = vand.u32 1, %v4918_v31 }
 0x15d   : > { %v1133_v17 = vmul.f32 %v1101_v0, %v1101_v0  ;;  %v1803_v62 = vsel %vm4902_vm2, %v1643_v63, %v1355_v26  ;;  %v1741_v1 = vand.u32 2, %v4910_v39  ;;  %v1757_v34 = vand.u32 2, %v4918_v31 }
 0x15e   : > { %v1149_v19 = vmul.f32 %v4928_v53, %v4928_v53  ;;  %v1819_v61 = vsel %vm4906_vm3, %v1659_v24, %v1371_v58  ;;  %v1867_v8 = vsub.f32 0.0, %v1803_v62  ;;  %v3710_v3 = vpack.c.bf16 %v2012_v5, %v4900_v33 }
 0x15f   : > { %v1197_v25 = vmul.f32 -0.00019515296, %v1133_v17  ;;  %v1883_v21 = vsub.f32 0.0, %v1819_v61  ;;  %v1165_v2 = vmul.f32 %v1133_v17, %v1101_v0  ;;  %v1389_v48 = vmul.f32 0.5, %v1133_v17 }
 0x160   : > { %v1213_v49 = vmul.f32 -0.00019515296, %v1149_v19  ;;  %v1899_v40 = vsel %vm4914_vm5, %v1867_v8, %v1803_v62  ;;  %v1181_v37 = vmul.f32 %v1149_v19, %v4928_v53  ;;  %v1405_v39 = vmul.f32 0.5, %v1149_v19 }
 0x161   : > { %v1229_v60 = vadd.f32 0.008332161, %v1197_v25  ;;  %v1915_v22 = vsel %vm4920_vm7, %v1883_v21, %v1819_v61  ;;  %v1421_v31 = vsub.f32 1.0, %v1389_v48  ;;  %v1453_v20 = vmul.f32 %v1133_v17, %v1133_v17 }
 0x162   : > { %v1245_v29 = vadd.f32 0.008332161, %v1213_v49  ;;  %v3708_v11 = vpack.c.bf16 %v1915_v22, %v1899_v40  ;;  %v1469_v33 = vmul.f32 %v1149_v19, %v1149_v19  ;;  %v1485_v14 = vmul.f32 2.4433157e-05, %v1133_v17  ;;  %v6133_v40 = vld [vmem:[#allocation15_spill] sm:$0xff]  ;;  %v6134_v22 = vld [vmem:[#allocation16_spill] sm:$0xff] }
 0x163   : > { %v1261_v16 = vmul.f32 %v1229_v60, %v1133_v17  ;;  %v1437_v41 = vsub.f32 1.0, %v1405_v39  ;;  %v1501_v59 = vmul.f32 2.4433157e-05, %v1149_v19  ;;  %v1854_v57 = vsel %vm4844_vm14, %v4838_v46, %v4850_v7  ;;  %vm1947_vm14 = vmxor %vm4906_vm3, %vm4920_vm7 }
 0x164   : > { %v1277_v43 = vmul.f32 %v1245_v29, %v1149_v19  ;;  %3709 = vmatpush1.bf16.msra.mxu0 %v3708_v11  ;;  %v1517_v47 = vadd.f32 -0.0013887316, %v1485_v14  ;;  %v1966_v5 = vsub.f32 0.0, %v1838_v13  ;;  %v1982_v62 = vsub.f32 0.0, %v1854_v57 }
 0x165   : > { %v1293_v15 = vadd.f32 -0.16666655, %v1261_v16  ;;  %v1533_v8 = vadd.f32 -0.0013887316, %v1501_v59  ;;  %vm4955_vm8 = vcmp.eq.s32.totalorder %v1677_v52, 1  ;;  %vm4959_vm9 = vcmp.ne.s32.totalorder %v1741_v1, 0  ;;  %3711 = vmatprep.subr.bf16.mxu0 %v3710_v3 }
 0x166   : > { %v1309_v61 = vadd.f32 -0.16666655, %v1277_v43  ;;  %v1835_v46 = vsel %vm4902_vm2, %v1355_v26, %v1643_v63  ;;  %v1851_v7 = vsel %vm4906_vm3, %v1371_v58, %v1659_v24  ;;  %v1549_v49 = vmul.f32 %v1517_v47, %v1133_v17  ;;  %vm1933_vm0 = vmxor %vm4955_vm8, %vm4959_vm9 }
 0x167   : > { %v1325_v52 = vmul.f32 %v1293_v15, %v1165_v2  ;;  %vm4971_vm11 = vcmp.eq.s32.totalorder %v1693_v27, 1  ;;  %vm4975_vm12 = vcmp.ne.s32.totalorder %v1757_v34, 0  ;;  %v4983_v51 = vsel %vm1934_vm10, %v1966_v5, %v1838_v13  ;;  %v6131_v34 = vld [vmem:[#allocation13_spill] sm:$0xff] }
 0x168   : > { %v1341_v32 = vmul.f32 %v1309_v61, %v1181_v37  ;;  %v1565_v26 = vmul.f32 %v1533_v8, %v1149_v19  ;;  %v4985_v58 = vsel %vm1950_vm13, %v1982_v62, %v1854_v57  ;;  %v1963_v63 = vsub.f32 0.0, %v1835_v46  ;;  %vm1949_vm1 = vmxor %vm4971_vm11, %vm4975_vm12 }
 0x169   : > { %v1357_v24 = vadd.f32 %v1325_v52, %v1101_v0  ;;  %v1581_v17 = vadd.f32 0.041666646, %v1549_v49  ;;  %v1979_v27 = vsub.f32 0.0, %v1851_v7  ;;  %v454_v23 = vrot.slane %v4887_v18, %v6131_v34  ;;  %v6132_v0 = vld [vmem:[#allocation14_spill] sm:$0xff] }
 0x16a   : > { %v1373_v45 = vadd.f32 %v1341_v32, %v4928_v53  ;;  %v1597_v13 = vadd.f32 0.041666646, %v1565_v26  ;;  %v1995_v19 = vsel %vm1931_vm15, %v1963_v63, %v1835_v46  ;;  %v638_v3 = vrot.slane %v4887_v18, %v6132_v0 }
 0x16b   : > { %v1613_v10 = vmul.f32 %v1581_v17, %v1453_v20  ;;  %v2011_v2 = vsel %vm1947_vm14, %v1979_v27, %v1851_v7  ;;  %v534_v12 = vrot.slane %v454_v23, %v6091_v56  ;;  %v462_v37 = vrot.slane %v4887_v18, %v6133_v40 }
 0x16c   : > { %v1629_v60 = vmul.f32 %v1597_v13, %v1469_v33  ;;  %v3712_v39 = vpack.c.bf16 %v2011_v2, %v1995_v19  ;;  %v718_v53 = vrot.slane %v638_v3, %v6089_v35  ;;  %v646_v36 = vrot.slane %v4887_v18, %v6134_v22 }
 0x16d   : > { %v1645_v9 = vadd.f32 %v1613_v10, %v1421_v31  ;;  %v568_v29 = vmul.f32 %v534_v12, %v6097_v42  ;;  %v584_v11 = vmul.f32 %v534_v12, %v4336_v55  ;;  %v542_v20 = vrot.slane %v462_v37, %v6091_v56 }
 0x16e   : > { %v1661_v16 = vadd.f32 %v1629_v60, %v1437_v41  ;;  %3713 = vmatpush1.bf16.msra.mxu0 %v3712_v39  ;;  %v752_v14 = vmul.f32 %v718_v53, %v6098_v6  ;;  %v768_v43 = vmul.f32 %v718_v53, %v4334_v54  ;;  %v726_v33 = vrot.slane %v646_v36, %v6089_v35 }
 0x16f   : > { %v1805_v59 = vsel %vm4955_vm8, %v1645_v9, %v1357_v24  ;;  %v1837_v31 = vsel %vm4955_vm8, %v1357_v24, %v1645_v9  ;;  %v570_v57 = vmul.f32 %v542_v20, %v6097_v42  ;;  %v586_v15 = vmul.f32 %v542_v20, %v4336_v55 }
 0x170   : > { %v1821_v41 = vsel %vm4971_vm11, %v1661_v16, %v1373_v45  ;;  %v1869_v47 = vsub.f32 0.0, %v1805_v59  ;;  %v1853_v5 = vsel %vm4971_vm11, %v1373_v45, %v1661_v16  ;;  %v1965_v62 = vsub.f32 0.0, %v1837_v31 }
 0x171   : > { %v1885_v61 = vsub.f32 0.0, %v1821_v41  ;;  %v1981_v8 = vsub.f32 0.0, %v1853_v5  ;;  %v784_v46 = vadd.f32 %v752_v14, %v568_v29  ;;  %v800_v7 = vadd.f32 %v768_v43, %v584_v11  ;;  %3648 = vmatmul.mubr.msk.f32.vlgmr.msra.gmra.mrb[8].mxu0 %vm2051_vm6, %v4668_v50 }
 0x172   : > { %v1901_v52 = vsel %vm4959_vm9, %v1869_v47, %v1805_v59  ;;  %v1997_v49 = vsel %vm1933_vm0, %v1965_v62, %v1837_v31  ;;  %v754_v32 = vmul.f32 %v726_v33, %v6098_v6  ;;  %v770_v25 = vmul.f32 %v726_v33, %v4334_v54 }
 0x173   : > { %v6135_v26 = vmov 0.0   ;;  %v1917_v63 = vsel %vm4975_vm12, %v1885_v61, %v1821_v41  ;;  %v2013_v24 = vsel %vm1949_vm1, %v1981_v8, %v1853_v5  ;;  %v816_v17 = vmul.f32 0.63661975, %v784_v46  ;;  %v5072_v61 = vld [vmem:[%s4248_s30 + $0x18] sm:$0xff]  ;;  %s3689_s30 = sshll.u32 %s4062_s24, 10  ;;  %s4078_s24 = smov [#allocation5]  }
 0x174   : > { %2312 = vmatprep.mubr.f32.mxu0 %v6135_v26  ;;  %v832_v27 = vmul.f32 0.63661975, %v800_v7  ;;  %v3716_v21 = vpack.c.bf16 %v1917_v63, %v1901_v52  ;;  %v3720_v23 = vpack.c.bf16 %v2013_v24, %v1997_v49  ;;  %v5039_v45 = vadd.f32 %v754_v32, %v570_v57  ;;  %v6138_v24 = vld [vmem:[#allocation11_spill] sm:$0xff]  ;;  %s5933_s20 = scalar_lea.hbm %s5989_s6, %s3689_s30  ;;  %s3992_s17 = sshll.u32 %s4078_s24, 4  ;;  %s3993_s17 = int_to_ptr.vmem [resolvable:$false] %s3992_s17 }
 0x175   : > { %v5041_v13 = vadd.f32 %v770_v25, %v586_v15  ;;  %v3718_v48 = vpack.c.bf16 %v4985_v58, %v4983_v51  ;;  %v848_v19 = vadd.f32 0.5, %v816_v17  ;;  %3649 = vmatmul.mubr.msk.f32.gmra.mrb[10].mxu0 %vm2051_vm6, %v4688_v30  ;;  %v6136_v2 = vrot.slane %v4887_v18, %v6091_v56  ;;  %p3995_p13 = scmp.lt.s32.totalorder %s5935_s14, %s3993_s17 }
 0x176   : > { %v864_v3 = vadd.f32 0.5, %v832_v27  ;;  %3717 = vmatpush1.bf16.msra.mxu1 %v3716_v21  ;;  %v818_v1 = vmul.f32 0.63661975, %v5039_v45  ;;  %2318 = vmatprep.mubr.f32.mxu0 %v6135_v26  ;;  %v6137_v60 = vrot.slane %v4887_v18, %v6089_v35  ;;  %v6139_v17 = vrot.slane %v6138_v24, %v6093_v4 }
 0x177   : > { %v834_v10 = vmul.f32 0.63661975, %v5041_v13  ;;  %v530_v12 = vrot.slane %v6136_v2, %v6091_v56  ;;  %3719 = vmatprep.subr.bf16.mxu1 %v3718_v48  ;;  %v880_v37 = vfloor.f32 %v848_v19  ;;  %v6140_v21 = vrot.slane %v6138_v24, %v6095_v38 }
 0x178   : > { %v896_v51 = vfloor.f32 %v864_v3  ;;  %v850_v58 = vadd.f32 0.5, %v818_v1  ;;  %v714_v39 = vrot.slane %v6137_v60, %v6089_v35  ;;  %v5094_v27 = vrot.slane %v6139_v17, %v6091_v56 }
 0x179   : > { %v3836_v53 = vtrunc.f32 %v880_v37  ;;  %v944_v36 = vmul.f32 1.5703125, %v880_v37  ;;  %3650 = vmatmul.mubr.msk.f32.gmra.mrb[12].mxu0 %vm2051_vm6, %v4717_v44  ;;  %v866_v11 = vadd.f32 0.5, %v834_v10  ;;  %v567_v20 = vmul.f32 %v530_v12, %v6097_v42 }
 0x17a   : > { %v960_v9 = vmul.f32 1.5703125, %v896_v51  ;;  %3721 = vmatpush1.bf16.msra.mxu1 %v3720_v23  ;;  %v3868_v29 = vtrunc.f32 %v896_v51  ;;  %v583_v16 = vmul.f32 %v530_v12, %v4336_v55  ;;  %2324 = vmatprep.mubr.f32.mxu0 %v6135_v26  ;;  %v1008_v18 = vmul.f32 0.0004837513, %v880_v37 }
 0x17b   : > { %v976_v14 = vsub.f32 %v784_v46, %v944_v36  ;;  %v1024_v33 = vmul.f32 0.0004837513, %v896_v51  ;;  %v1072_v59 = vmul.f32 7.54979e-08, %v880_v37  ;;  %v882_v31 = vfloor.f32 %v850_v58 }
 0x17c   : > { %v992_v43 = vsub.f32 %v800_v7, %v960_v9  ;;  %v751_v57 = vmul.f32 %v714_v39, %v6098_v6  ;;  %v767_v15 = vmul.f32 %v714_v39, %v4334_v54  ;;  %v5065_v41 = vcvt.f32.s32 %v3836_v53 }
 0x17d   : > { %v1040_v47 = vsub.f32 %v976_v14, %v1008_v18  ;;  %v1088_v62 = vmul.f32 7.54979e-08, %v896_v51  ;;  %3652 = vmatmul.mubr.msk.f32.vlgmr.msra.gmra.mrb[8].mxu1 %vm2051_vm6, %v4668_v50  ;;  %3651 = vmatmul.mubr.msk.f32.gmra.mrb[14].mxu0 %vm2051_vm6, %v4746_v28  ;;  %v5076_v46 = vcvt.f32.s32 %v3868_v29  ;;  %v898_v7 = vfloor.f32 %v866_v11 }
 0x17e   : > { %v1056_v5 = vsub.f32 %v992_v43, %v1024_v33  ;;  %2401 = vmatprep.mubr.f32.mxu1 %v6135_v26  ;;  %2484 = vmatprep.mubr.f32.mxu0 %v6135_v26  ;;  %v3840_v32 = vtrunc.f32 %v882_v31  ;;  %v5086_v25 = vadd.f32 %v751_v57, %v567_v20  ;;  %v5088_v63 = vadd.f32 %v767_v15, %v583_v16 }
 0x17f   : > { %v5082_v49 = vsub.f32 %v1040_v47, %v1072_v59  ;;  %v5100_v23 = vrot.slane %v6140_v21, %v6089_v35  ;;  %v1680_v3 = vand.u32 1, %v5065_v41  ;;  %v946_v1 = vmul.f32 1.5703125, %v882_v31 }
 0x180   : > { %v5084_v50 = vsub.f32 %v1056_v5, %v1088_v62  ;;  %v1696_v10 = vand.u32 1, %v5076_v46  ;;  %v1744_v2 = vand.u32 2, %v5065_v41  ;;  %v1760_v12 = vand.u32 2, %v5076_v46 }
 0x181   : > { %v1136_v48 = vmul.f32 %v5082_v49, %v5082_v49  ;;  %3653 = vmatmul.mubr.msk.f32.gmra.mrb[10].mxu1 %vm2051_vm6, %v4688_v30  ;;  %v962_v37 = vmul.f32 1.5703125, %v898_v7  ;;  %v5113_v60 = vcvt.f32.s32 %v3840_v32  ;;  %v3872_v39 = vtrunc.f32 %v898_v7 }
 0x182   : > { %v1152_v19 = vmul.f32 %v5084_v50, %v5084_v50  ;;  %2407 = vmatprep.mubr.f32.mxu1 %v6135_v26  ;;  %v1010_v53 = vmul.f32 0.0004837513, %v882_v31  ;;  %v1026_v36 = vmul.f32 0.0004837513, %v898_v7  ;;  %v1074_v9 = vmul.f32 7.54979e-08, %v882_v31 }
 0x183   : > { %v1200_v51 = vmul.f32 -0.00019515296, %v1136_v48  ;;  %v1090_v29 = vmul.f32 7.54979e-08, %v898_v7  ;;  %v1488_v20 = vmul.f32 2.4433157e-05, %v1136_v48  ;;  %v978_v16 = vsub.f32 %v5039_v45, %v946_v1 }
 0x184   : > { %v1216_v58 = vmul.f32 -0.00019515296, %v1152_v19  ;;  %v1168_v14 = vmul.f32 %v1136_v48, %v5082_v49  ;;  %v1184_v43 = vmul.f32 %v1152_v19, %v5084_v50  ;;  %v1504_v18 = vmul.f32 2.4433157e-05, %v1152_v19 }
 0x185   : > { %v1232_v11 = vadd.f32 0.008332161, %v1200_v51  ;;  %3654 = vmatmul.mubr.msk.f32.gmra.mrb[12].mxu1 %vm2051_vm6, %v4717_v44  ;;  %v994_v33 = vsub.f32 %v5041_v13, %v962_v37  ;;  %v1520_v57 = vadd.f32 -0.0013887316, %v1488_v20  ;;  %v1042_v15 = vsub.f32 %v978_v16, %v1010_v53 }
 0x186   : > { %v1248_v30 = vadd.f32 0.008332161, %v1216_v58  ;;  %2413 = vmatprep.mubr.f32.mxu1 %v6135_v26  ;;  %v1392_v41 = vmul.f32 0.5, %v1136_v48  ;;  %v1408_v47 = vmul.f32 0.5, %v1152_v19  ;;  %v1536_v5 = vadd.f32 -0.0013887316, %v1504_v18 }
 0x187   : > { %v1264_v59 = vmul.f32 %v1232_v11, %v1136_v48  ;;  %vm5122_vm2 = vcmp.eq.s32.totalorder %v1680_v3, 1  ;;  %v1058_v44 = vsub.f32 %v994_v33, %v1026_v36  ;;  %v1552_v7 = vmul.f32 %v1520_v57, %v1136_v48 }
 0x188   : > { %v1280_v31 = vmul.f32 %v1248_v30, %v1152_v19  ;;  %vm5126_vm3 = vcmp.eq.s32.totalorder %v1696_v10, 1  ;;  %v5130_v13 = vsub.f32 %v1042_v15, %v1074_v9  ;;  %v1456_v24 = vmul.f32 %v1136_v48, %v1136_v48 }
 0x189   : > { %v1296_v62 = vadd.f32 -0.16666655, %v1264_v59  ;;  %3655 = vmatmul.mubr.msk.f32.gmra.mrb[14].mxu1 %vm2051_vm6, %v4746_v28  ;;  %v1568_v17 = vmul.f32 %v1536_v5, %v1152_v19  ;;  %v5134_v21 = vcvt.f32.s32 %v3872_v39  ;;  %v5136_v3 = vsub.f32 %v1058_v44, %v1090_v29 }
 0x18a   : > { %v1312_v46 = vadd.f32 -0.16666655, %v1280_v31  ;;  %2573 = vmatprep.mubr.f32.mxu1 %v6135_v26  ;;  %v1584_v51 = vadd.f32 0.041666646, %v1552_v7  ;;  %v1138_v10 = vmul.f32 %v5130_v13, %v5130_v13  ;;  %v1472_v58 = vmul.f32 %v1152_v19, %v1152_v19 }
 0x18b   : > { %v1328_v1 = vmul.f32 %v1296_v62, %v1168_v14  ;;  %v1600_v53 = vadd.f32 0.041666646, %v1568_v17  ;;  %vm5141_vm5 = vcmp.ne.s32.totalorder %v1744_v2, 0  ;;  %v1154_v28 = vmul.f32 %v5136_v3, %v5136_v3 }
 0x18c   : > { %v1344_v37 = vmul.f32 %v1312_v46, %v1184_v43  ;;  %v1424_v39 = vsub.f32 1.0, %v1392_v41  ;;  %v1440_v9 = vsub.f32 1.0, %v1408_v47  ;;  %v1616_v29 = vmul.f32 %v1584_v51, %v1456_v24  ;;  %vm1936_vm15 = vmxor %vm5122_vm2, %vm5141_vm5 }
 0x18d   : > { %v5148_v48 = vadd.f32 %v1328_v1, %v5082_v49  ;;  %v1632_v30 = vmul.f32 %v1600_v53, %v1472_v58  ;;  %v1202_v20 = vmul.f32 -0.00019515296, %v1138_v10  ;;  %v1218_v19 = vmul.f32 -0.00019515296, %v1154_v28 }
 0x18e   : > { %v5151_v11 = vadd.f32 %v1344_v37, %v5084_v50  ;;  %v5153_v16 = vadd.f32 %v1616_v29, %v1424_v39  ;;  %vm5155_vm7 = vcmp.ne.s32.totalorder %v1760_v12, 0  ;;  %v1682_v14 = vand.u32 1, %v5113_v60 }
 0x18f   : > { %v1698_v49 = vand.u32 1, %v5134_v21  ;;  %v5161_v43 = vadd.f32 %v1632_v30, %v1440_v9  ;;  %v1234_v18 = vadd.f32 0.008332161, %v1202_v20  ;;  %v1250_v33 = vadd.f32 0.008332161, %v1218_v19  ;;  %vm1952_vm0 = vmxor %vm5126_vm3, %vm5155_vm7 }
 0x190   : > { %v1746_v50 = vand.u32 2, %v5113_v60  ;;  %v1808_v59 = vsel %vm5122_vm2, %v5153_v16, %v5148_v48  ;;  %v1170_v12 = vmul.f32 %v1138_v10, %v5130_v13  ;;  %v1186_v31 = vmul.f32 %v1154_v28, %v5136_v3 }
 0x191   : > { %v1490_v57 = vmul.f32 2.4433157e-05, %v1138_v10  ;;  %v1824_v15 = vsel %vm5126_vm3, %v5161_v43, %v5151_v11  ;;  %v1872_v41 = vsub.f32 0.0, %v1808_v59  ;;  %v1266_v47 = vmul.f32 %v1234_v18, %v1138_v10 }
 0x192   : > { %v1282_v5 = vmul.f32 %v1250_v33, %v1154_v28  ;;  %v1888_v44 = vsub.f32 0.0, %v1824_v15  ;;  %v1394_v62 = vmul.f32 0.5, %v1138_v10  ;;  %v1506_v46 = vmul.f32 2.4433157e-05, %v1154_v28 }
 0x193   : > { %v1522_v7 = vadd.f32 -0.0013887316, %v1490_v57  ;;  %v1904_v24 = vsel %vm5141_vm5, %v1872_v41, %v1808_v59  ;;  %v1298_v17 = vadd.f32 -0.16666655, %v1266_v47  ;;  %v1410_v37 = vmul.f32 0.5, %v1154_v28 }
 0x194   : > { %v1314_v1 = vadd.f32 -0.16666655, %v1282_v5  ;;  %vm5176_vm4 = vcmp.eq.s32.totalorder %v1682_v14, 1  ;;  %v1920_v58 = vsel %vm5155_vm7, %v1888_v44, %v1824_v15  ;;  %v1538_v53 = vadd.f32 -0.0013887316, %v1506_v46 }
 0x195   : > { %v1554_v39 = vmul.f32 %v1522_v7, %v1138_v10  ;;  %v815_v9 = vmul.f32 0.63661975, %v5086_v25  ;;  %v3722_v29 = vpack.c.bf16 %v1920_v58, %v1904_v24  ;;  %v1330_v30 = vmul.f32 %v1298_v17, %v1170_v12 }
 0x196   : > { %v1346_v20 = vmul.f32 %v1314_v1, %v1186_v31  ;;  %vm5183_vm8 = vcmp.eq.s32.totalorder %v1698_v49, 1  ;;  %v831_v18 = vmul.f32 0.63661975, %v5088_v63  ;;  %v1458_v14 = vmul.f32 %v1138_v10, %v1138_v10 }
 0x197   : > { %v1570_v33 = vmul.f32 %v1538_v53, %v1154_v28  ;;  %v1586_v59 = vadd.f32 0.041666646, %v1554_v39  ;;  %v847_v57 = vadd.f32 0.5, %v815_v9  ;;  %3723 = vmatprep.subr.bf16.mxu0 %v3722_v29  ;;  %v1426_v41 = vsub.f32 1.0, %v1394_v62 }
 0x198   : > { %v1474_v15 = vmul.f32 %v1154_v28, %v1154_v28  ;;  %v1762_v47 = vand.u32 2, %v5134_v21  ;;  %v863_v5 = vadd.f32 0.5, %v831_v18  ;;  %v5190_v44 = vadd.f32 %v1330_v30, %v5130_v13 }
 0x199   : > { %v1602_v12 = vadd.f32 0.041666646, %v1570_v33  ;;  %v1618_v49 = vmul.f32 %v1586_v59, %v1458_v14  ;;  %v879_v31 = vfloor.f32 %v847_v57  ;;  %v5193_v46 = vadd.f32 %v1346_v20, %v5136_v3 }
 0x19a   : > { %v1442_v7 = vsub.f32 1.0, %v1410_v37  ;;  %v895_v10 = vfloor.f32 %v863_v5  ;;  %v569_v24 = vmul.f32 %v5094_v27, %v6097_v42  ;;  %v585_v13 = vmul.f32 %v5094_v27, %v4336_v55 }
 0x19b   : > { %v1634_v17 = vmul.f32 %v1602_v12, %v1474_v15  ;;  %v5197_v62 = vadd.f32 %v1618_v49, %v1426_v41  ;;  %v3834_v28 = vtrunc.f32 %v879_v31  ;;  %v943_v21 = vmul.f32 1.5703125, %v879_v31 }
 0x19c   : > { %v3866_v1 = vtrunc.f32 %v895_v10  ;;  %v959_v58 = vmul.f32 1.5703125, %v895_v10  ;;  %v753_v53 = vmul.f32 %v5100_v23, %v6098_v6  ;;  %v1007_v9 = vmul.f32 0.0004837513, %v879_v31 }
 0x19d   : > { %v5203_v3 = vadd.f32 %v1634_v17, %v1442_v7  ;;  %v1810_v37 = vsel %vm5176_vm4, %v5197_v62, %v5190_v44  ;;  %v975_v39 = vsub.f32 %v5086_v25, %v943_v21  ;;  %v1023_v20 = vmul.f32 0.0004837513, %v895_v10 }
 0x19e   : > { %v1874_v29 = vsub.f32 0.0, %v1810_v37  ;;  %v991_v30 = vsub.f32 %v5088_v63, %v959_v58  ;;  %v769_v27 = vmul.f32 %v5100_v23, %v4334_v54  ;;  %v3835_v14 = vcvt.f32.s32 %v3834_v28 }
 0x19f   : > { %v1826_v18 = vsel %vm5183_vm8, %v5203_v3, %v5193_v46  ;;  %v1039_v33 = vsub.f32 %v975_v39, %v1007_v9  ;;  %v1071_v59 = vmul.f32 7.54979e-08, %v879_v31  ;;  %v5217_v41 = vcvt.f32.s32 %v3866_v1 }
 0x1a0   : > { %v1890_v57 = vsub.f32 0.0, %v1826_v18  ;;  %v1055_v25 = vsub.f32 %v991_v30, %v1023_v20  ;;  %v1087_v15 = vmul.f32 7.54979e-08, %v895_v10  ;;  %vm5221_vm9 = vcmp.ne.s32.totalorder %v1746_v50, 0 }
 0x1a1   : > { %vm5225_vm10 = vcmp.ne.s32.totalorder %v1762_v47, 0  ;;  %v1103_v5 = vsub.f32 %v1039_v33, %v1071_v59  ;;  %v5233_v12 = vsel %vm5122_vm2, %v5148_v48, %v5153_v16  ;;  %v1906_v49 = vsel %vm5221_vm9, %v1874_v29, %v1810_v37  ;;  %vm1938_vm7 = vmxor %vm5176_vm4, %vm5221_vm9 }
 0x1a2   : > { %v1922_v60 = vsel %vm5225_vm10, %v1890_v57, %v1826_v18  ;;  %v1119_v50 = vsub.f32 %v1055_v25, %v1087_v15  ;;  %v785_v31 = vadd.f32 %v753_v53, %v569_v24  ;;  %v1679_v10 = vand.u32 1, %v3835_v14 }
 0x1a3   : > { %v3730_v7 = vpack.c.bf16 %v1922_v60, %v1906_v49  ;;  %v1135_v47 = vmul.f32 %v1103_v5, %v1103_v5  ;;  %v5243_v17 = vsel %vm5126_vm3, %v5151_v11, %v5161_v43  ;;  %v1695_v48 = vand.u32 1, %v5217_v41 }
 0x1a4   : > { %v1151_v28 = vmul.f32 %v1119_v50, %v1119_v50  ;;  %v5246_v16 = vadd.f32 %v769_v27, %v585_v13  ;;  %v817_v21 = vmul.f32 0.63661975, %v785_v31  ;;  %v1743_v58 = vand.u32 2, %v3835_v14 }
 0x1a5   : > { %3731 = vmatprep.subr.bf16.mxu1 %v3730_v7  ;;  %v1199_v1 = vmul.f32 -0.00019515296, %v1135_v47  ;;  %v1759_v24 = vand.u32 2, %v5217_v41  ;;  %v1968_v53 = vsub.f32 0.0, %v5233_v12  ;;  %v1167_v37 = vmul.f32 %v1135_v47, %v1103_v5 }
 0x1a6   : > { %v1215_v39 = vmul.f32 -0.00019515296, %v1151_v28  ;;  %v1391_v9 = vmul.f32 0.5, %v1135_v47  ;;  %v1407_v29 = vmul.f32 0.5, %v1151_v28  ;;  %v1455_v11 = vmul.f32 %v1135_v47, %v1135_v47 }
 0x1a7   : > { %v1231_v30 = vadd.f32 0.008332161, %v1199_v1  ;;  %v1487_v43 = vmul.f32 2.4433157e-05, %v1135_v47  ;;  %v849_v20 = vadd.f32 0.5, %v817_v21  ;;  %v1183_v18 = vmul.f32 %v1151_v28, %v1119_v50 }
 0x1a8   : > { %v1247_v33 = vadd.f32 0.008332161, %v1215_v39  ;;  %v1471_v13 = vmul.f32 %v1151_v28, %v1151_v28  ;;  %v1503_v27 = vmul.f32 2.4433157e-05, %v1151_v28  ;;  %v833_v14 = vmul.f32 0.63661975, %v5246_v16 }
 0x1a9   : > { %v1263_v59 = vmul.f32 %v1231_v30, %v1135_v47  ;;  %v1519_v57 = vadd.f32 -0.0013887316, %v1487_v43  ;;  %v881_v25 = vfloor.f32 %v849_v20  ;;  %v1423_v15 = vsub.f32 1.0, %v1391_v9 }
 0x1aa   : > { %v1279_v41 = vmul.f32 %v1247_v33, %v1151_v28  ;;  %v1439_v49 = vsub.f32 1.0, %v1407_v29  ;;  %v1535_v60 = vadd.f32 -0.0013887316, %v1503_v27  ;;  %vm5251_vm11 = vcmp.eq.s32.totalorder %v1679_v10, 1 }
 0x1ab   : > { %v1295_v1 = vadd.f32 -0.16666655, %v1263_v59  ;;  %v1551_v52 = vmul.f32 %v1519_v57, %v1135_v47  ;;  %vm5255_vm12 = vcmp.eq.s32.totalorder %v1695_v48, 1  ;;  %v865_v39 = vadd.f32 0.5, %v833_v14 }
 0x1ac   : > { %v3838_v30 = vtrunc.f32 %v881_v25  ;;  %v1311_v43 = vadd.f32 -0.16666655, %v1279_v41  ;;  %v1567_v8 = vmul.f32 %v1535_v60, %v1151_v28  ;;  %v945_v38 = vmul.f32 1.5703125, %v881_v25 }
 0x1ad   : > { %v1984_v20 = vsub.f32 0.0, %v5243_v17  ;;  %v1327_v9 = vmul.f32 %v1295_v1, %v1167_v37  ;;  %v1583_v29 = vadd.f32 0.041666646, %v1551_v52  ;;  %vm5260_vm13 = vcmp.ne.s32.totalorder %v1743_v58, 0 }
 0x1ae   : > { %v897_v33 = vfloor.f32 %v865_v39  ;;  %v1009_v27 = vmul.f32 0.0004837513, %v881_v25  ;;  %v1343_v47 = vmul.f32 %v1311_v43, %v1183_v18  ;;  %v1599_v48 = vadd.f32 0.041666646, %v1567_v8 }
 0x1af   : > { %v3839_v59 = vcvt.f32.s32 %v3838_v30  ;;  %v977_v57 = vsub.f32 %v785_v31, %v945_v38  ;;  %v5264_v4 = vadd.f32 %v1327_v9, %v1103_v5  ;;  %v1615_v14 = vmul.f32 %v1583_v29, %v1455_v11 }
 0x1b0   : > { %v3870_v41 = vtrunc.f32 %v897_v33  ;;  %v961_v28 = vmul.f32 1.5703125, %v897_v33  ;;  %v5266_v60 = vadd.f32 %v1343_v47, %v1119_v50  ;;  %v1631_v26 = vmul.f32 %v1599_v48, %v1471_v13 }
 0x1b1   : > { %v1041_v37 = vsub.f32 %v977_v57, %v1009_v27  ;;  %v1073_v52 = vmul.f32 7.54979e-08, %v881_v25  ;;  %v5268_v58 = vadd.f32 %v1615_v14, %v1423_v15  ;;  %v1025_v54 = vmul.f32 0.0004837513, %v897_v33  ;;  %v2028_v27 = vld [vmem:[%s4270_s16 + $0x8] sm:$0xff] }
 0x1b2   : > { %v3871_v1 = vcvt.f32.s32 %v3870_v41  ;;  %v993_v39 = vsub.f32 %v5246_v16, %v961_v28  ;;  %v1663_v38 = vadd.f32 %v1631_v26, %v1439_v49  ;;  %vm5275_vm14 = vcmp.ne.s32.totalorder %v1759_v24, 0  ;;  %2038 = vperm.xlu1 %3951, %v2028_v27  }
 0x1b3   : > { %v5279_v5 = vsub.f32 %v1041_v37, %v1073_v52  ;;  %v2000_v50 = vsel %vm1936_vm15, %v1968_v53, %v5233_v12  ;;  %v1807_v45 = vsel %vm5251_vm11, %v5268_v58, %v5264_v4  ;;  %v1089_v26 = vmul.f32 7.54979e-08, %v897_v33  ;;  %v2030_v52 = vld [vmem:[%s4270_s16 + $0x18] sm:$0xff]  ;;  %vm1954_vm15 = vmxor %vm5183_vm8, %vm5225_vm10 }
 0x1b4   : > { %v1057_v36 = vsub.f32 %v993_v39, %v1025_v54  ;;  %v2016_v31 = vsel %vm1952_vm0, %v1984_v20, %v5243_v17  ;;  %v1823_v16 = vsel %vm5255_vm12, %v1663_v38, %v5266_v60  ;;  %v1871_v24 = vsub.f32 0.0, %v1807_v45 }
 0x1b5   : > { %v1137_v32 = vmul.f32 %v5279_v5, %v5279_v5  ;;  %v1681_v2 = vand.u32 1, %v3839_v59  ;;  %v1887_v11 = vsub.f32 0.0, %v1823_v16  ;;  %v1697_v53 = vand.u32 1, %v3871_v1 }
 0x1b6   : > { %v5296_v12 = vsub.f32 %v1057_v36, %v1089_v26  ;;  %v1745_v18 = vand.u32 2, %v3839_v59  ;;  %v1903_v54 = vsel %vm5260_vm13, %v1871_v24, %v1807_v45  ;;  %v1761_v25 = vand.u32 2, %v3871_v1  ;;  %2048 = vperm.xlu1 %3951, %v2030_v52   ;;  %v5392_v52 = vld [vmem:[%s4230_s13] sm:$0xff] }
 0x1b7   : > { %v1201_v13 = vmul.f32 -0.00019515296, %v1137_v32  ;;  %v1393_v17 = vmul.f32 0.5, %v1137_v32  ;;  %v1919_v15 = vsel %vm5275_vm14, %v1887_v11, %v1823_v16  ;;  %v1169_v30 = vmul.f32 %v1137_v32, %v5279_v5 }
 0x1b8   : > { %v1153_v49 = vmul.f32 %v5296_v12, %v5296_v12  ;;  %v1489_v43 = vmul.f32 2.4433157e-05, %v1137_v32  ;;  %v3724_v20 = vpack.c.bf16 %v1919_v15, %v1903_v54  ;;  %v1457_v33 = vmul.f32 %v1137_v32, %v1137_v32 }
 0x1b9   : > { %v1233_v9 = vadd.f32 0.008332161, %v1201_v13  ;;  %v1425_v29 = vsub.f32 1.0, %v1393_v17  ;;  %v3726_v37 = vpack.c.bf16 %v2016_v31, %v2000_v50  ;;  %vm5308_vm1 = vcmp.eq.s32.totalorder %v1681_v2, 1 }
 0x1ba   : > { %v1185_v47 = vmul.f32 %v1153_v49, %v5296_v12  ;;  %v1217_v48 = vmul.f32 -0.00019515296, %v1153_v49  ;;  %v1409_v59 = vmul.f32 0.5, %v1153_v49  ;;  %v1473_v57 = vmul.f32 %v1153_v49, %v1153_v49  ;;  %3725 = vmatpush1.bf16.msra.mxu0 %v3724_v20 }
 0x1bb   : > { %v1265_v14 = vmul.f32 %v1233_v9, %v1137_v32  ;;  %v1505_v41 = vmul.f32 2.4433157e-05, %v1153_v49  ;;  %v1521_v28 = vadd.f32 -0.0013887316, %v1489_v43  ;;  %vm5312_vm2 = vcmp.ne.s32.totalorder %v1745_v18, 0  ;;  %3727 = vmatprep.subr.bf16.mxu0 %v3726_v37 }
 0x1bc   : > { %v1249_v1 = vadd.f32 0.008332161, %v1217_v48  ;;  %v1441_v39 = vsub.f32 1.0, %v1409_v59  ;;  %v1842_v26 = vsel %vm5176_vm4, %v5190_v44, %v5197_v62  ;;  %v1858_v50 = vsel %vm5183_vm8, %v5193_v46, %v5203_v3  ;;  %vm1935_vm4 = vmxor %vm5251_vm11, %vm5260_vm13  ;;  %v6173_v59 = vld [vmem:[#allocation21_spill] sm:$0xff] }
 0x1bd   : > { %v1297_v31 = vadd.f32 -0.16666655, %v1265_v14  ;;  %v1537_v16 = vadd.f32 -0.0013887316, %v1505_v41  ;;  %v1553_v24 = vmul.f32 %v1521_v28, %v1137_v32  ;;  %v1970_v2 = vsub.f32 0.0, %v1842_v26  ;;  %vm1951_vm8 = vmxor %vm5255_vm12, %vm5275_vm14 }
 0x1be   : > { %v1281_v11 = vmul.f32 %v1249_v1, %v1153_v49  ;;  %vm5324_vm3 = vcmp.eq.s32.totalorder %v1697_v53, 1  ;;  %vm5328_vm5 = vcmp.ne.s32.totalorder %v1761_v25, 0  ;;  %v1986_v44 = vsub.f32 0.0, %v1858_v50  ;;  %vm1937_vm9 = vmxor %vm5308_vm1, %vm5312_vm2 }
 0x1bf   : > { %v1839_v46 = vsel %vm5251_vm11, %v5264_v4, %v5268_v58  ;;  %v1855_v62 = vsel %vm5255_vm12, %v5266_v60, %v1663_v38  ;;  %v1329_v3 = vmul.f32 %v1297_v31, %v1169_v30  ;;  %v1569_v32 = vmul.f32 %v1537_v16, %v1153_v49  ;;  %vm1953_vm10 = vmxor %vm5324_vm3, %vm5328_vm5 }
 0x1c0   : > { %v1585_v53 = vadd.f32 0.041666646, %v1553_v24  ;;  %v5347_v51 = vsel %vm1938_vm7, %v1970_v2, %v1842_v26  ;;  %v1313_v63 = vadd.f32 -0.16666655, %v1281_v11  ;;  %v5349_v13 = vsel %vm1954_vm15, %v1986_v44, %v1858_v50 }
 0x1c1   : > { %v1967_v4 = vsub.f32 0.0, %v1839_v46  ;;  %v1983_v60 = vsub.f32 0.0, %v1855_v62  ;;  %v1361_v58 = vadd.f32 %v1329_v3, %v5279_v5  ;;  %v1601_v38 = vadd.f32 0.041666646, %v1569_v32 }
 0x1c2   : > { %v1617_v17 = vmul.f32 %v1585_v53, %v1457_v33  ;;  %v3734_v19 = vpack.c.bf16 %v5349_v13, %v5347_v51  ;;  %v1345_v23 = vmul.f32 %v1313_v63, %v1185_v47  ;;  %v470_v7 = vrot.slane %v5072_v61, %v6131_v34  ;;  %v5418_v51 = vld [vmem:[%s4230_s13 + $0x8] sm:$0xff] }
 0x1c3   : > { %v1999_v25 = vsel %vm1935_vm4, %v1967_v4, %v1839_v46  ;;  %v2015_v10 = vsel %vm1951_vm8, %v1983_v60, %v1855_v62  ;;  %v1633_v15 = vmul.f32 %v1601_v38, %v1473_v57  ;;  %v654_v5 = vrot.slane %v5072_v61, %v6132_v0 }
 0x1c4   : > { %v1649_v49 = vadd.f32 %v1617_v17, %v1425_v29  ;;  %v3728_v30 = vpack.c.bf16 %v2015_v10, %v1999_v25  ;;  %v1377_v43 = vadd.f32 %v1345_v23, %v5296_v12  ;;  %v550_v20 = vrot.slane %v470_v7, %v6091_v56 }
 0x1c5   : > { %v478_v21 = vrot.slane %v5072_v61, %v6133_v40  ;;  %v662_v8 = vrot.slane %v5072_v61, %v6134_v22  ;;  %v1665_v9 = vadd.f32 %v1633_v15, %v1441_v39  ;;  %v734_v0 = vrot.slane %v654_v5, %v6089_v35  ;;  %v5434_v15 = vld [vmem:[%s4230_s13 + $0x10] sm:$0xff] }
 0x1c6   : > { %v1809_v34 = vsel %vm5308_vm1, %v1649_v49, %v1361_v58  ;;  %3729 = vmatpush1.bf16.msra.mxu0 %v3728_v30  ;;  %v1841_v29 = vsel %vm5308_vm1, %v1361_v58, %v1649_v49  ;;  %v572_v27 = vmul.f32 %v550_v20, %v6097_v42  ;;  %v588_v40 = vmul.f32 %v550_v20, %v4336_v55 }
 0x1c7   : > { %v1873_v12 = vsub.f32 0.0, %v1809_v34  ;;  %v1969_v33 = vsub.f32 0.0, %v1841_v29  ;;  %v1825_v22 = vsel %vm5324_vm3, %v1665_v9, %v1377_v43  ;;  %v1857_v47 = vsel %vm5324_vm3, %v1377_v43, %v1665_v9 }
 0x1c8   : > { %v756_v48 = vmul.f32 %v734_v0, %v6098_v6  ;;  %v772_v57 = vmul.f32 %v734_v0, %v6173_v59  ;;  %v1889_v14 = vsub.f32 0.0, %v1825_v22  ;;  %v1985_v28 = vsub.f32 0.0, %v1857_v47 }
 0x1c9   : > { %v1905_v41 = vsel %vm5312_vm2, %v1873_v12, %v1809_v34  ;;  %v2001_v37 = vsel %vm1937_vm9, %v1969_v33, %v1841_v29  ;;  %3656 = vmatmul.mubr.msk.f32.vlgmr.msra.gmra.mrb[16].mxu0 %vm2051_vm6, %v5392_v52  ;;  %v558_v45 = vrot.slane %v478_v21, %v6091_v56  ;;  %v742_v36 = vrot.slane %v662_v8, %v6089_v35  ;;  %v5446_v12 = vld [vmem:[%s4230_s13 + $0x18] sm:$0xff]  ;;  %s3994_s13 = scalar_lea.vmem %s3993_s17, 2048 }
 0x1ca   : > { %v788_v1 = vadd.f32 %v756_v48, %v572_v27  ;;  %v804_v39 = vadd.f32 %v772_v57, %v588_v40  ;;  %v6174_v26 = vmov 0.0   ;;  %v1921_v50 = vsel %vm5328_vm5, %v1889_v14, %v1825_v22  ;;  %p3996_p2 = scmp.lt.s32.totalorder %s3994_s13, %s3988_s28 }
 0x1cb   : > { %2490 = vmatprep.mubr.f32.mxu0 %v6174_v26  ;;  %v2017_v31 = vsel %vm1953_vm10, %v1985_v28, %v1857_v47  ;;  %v6175_v16 = vrot.slane %v5072_v61, %v6091_v56  ;;  %v6176_v2 = vrot.slane %v5072_v61, %v6089_v35  ;;  %v3732_v18 = vpack.c.bf16 %v1921_v50, %v1905_v41  ;;  %v6180_v50 = vld [vmem:[#allocation9_spill] sm:$0xff] }
 0x1cc   : > { %v3736_v44 = vpack.c.bf16 %v2017_v31, %v2001_v37  ;;  %v820_v46 = vmul.f32 0.63661975, %v788_v1  ;;  %v836_v62 = vmul.f32 0.63661975, %v804_v39  ;;  %v574_v3 = vmul.f32 %v558_v45, %v6097_v42  ;;  %p3997_p5 = por %p3996_p2, %p3995_p13 }
 0x1cd   : > { %v546_v24 = vrot.slane %v6175_v16, %v6091_v56  ;;  %v730_v11 = vrot.slane %v6176_v2, %v6089_v35  ;;  %v590_v54 = vmul.f32 %v558_v45, %v4336_v55  ;;  %v758_v32 = vmul.f32 %v742_v36, %v6098_v6  ;;  %3657 = vmatmul.mubr.msk.f32.gmra.mrb[18].mxu0 %vm2051_vm6, %v5418_v51 }
 0x1ce   : > { %v774_v53 = vmul.f32 %v742_v36, %v6173_v59  ;;  %3733 = vmatpush1.bf16.msra.mxu1 %v3732_v18  ;;  %v852_v61 = vadd.f32 0.5, %v820_v46  ;;  %v868_v63 = vadd.f32 0.5, %v836_v62  ;;  %2496 = vmatprep.mubr.f32.mxu0 %v6174_v26  ;;  %p3998_p4 = pnand %p3997_p5, %p3991_p6 }
 0x1cf   : > { %3735 = vmatprep.subr.bf16.mxu1 %v3734_v19  ;;  %v5423_v13 = vadd.f32 %v758_v32, %v574_v3  ;;  %v571_v38 = vmul.f32 %v546_v24, %v6097_v42  ;;  %v587_v17 = vmul.f32 %v546_v24, %v4336_v55  ;;  %v755_v10 = vmul.f32 %v730_v11, %v6098_v6 }
 0x1d0   : > { %v5425_v4 = vadd.f32 %v774_v53, %v590_v54  ;;  %v884_v60 = vfloor.f32 %v852_v61  ;;  %v900_v58 = vfloor.f32 %v868_v63  ;;  %v771_v7 = vmul.f32 %v730_v11, %v6173_v59 }
 0x1d1   : > { %v822_v23 = vmul.f32 0.63661975, %v5423_v13  ;;  %3658 = vmatmul.mubr.msk.f32.gmra.mrb[20].mxu0 %vm2051_vm6, %v5434_v15  ;;  %v5441_v29 = vadd.f32 %v755_v10, %v571_v38 }
 0x1d2   : > { %v838_v25 = vmul.f32 0.63661975, %v5425_v4  ;;  %3737 = vmatpush1.bf16.msra.mxu1 %v3736_v44  ;;  %v948_v19 = vmul.f32 1.5703125, %v884_v60  ;;  %v964_v49 = vmul.f32 1.5703125, %v900_v58  ;;  %2502 = vmatprep.mubr.f32.mxu0 %v6174_v26  ;;  %v3844_v30 = vtrunc.f32 %v884_v60 }
 0x1d3   : > { %v3876_v5 = vtrunc.f32 %v900_v58  ;;  %v1012_v21 = vmul.f32 0.0004837513, %v884_v60  ;;  %v1028_v8 = vmul.f32 0.0004837513, %v900_v58  ;;  %v854_v9 = vadd.f32 0.5, %v822_v23 }
 0x1d4   : > { %v980_v43 = vsub.f32 %v788_v1, %v948_v19  ;;  %v996_v20 = vsub.f32 %v804_v39, %v964_v49  ;;  %v870_v34 = vadd.f32 0.5, %v838_v25  ;;  %v5443_v0 = vadd.f32 %v771_v7, %v587_v17  ;;  %v6177_v1 = vld [vmem:[#allocation12_spill] sm:$0xff] }
 0x1d5   : > { %3660 = vmatmul.mubr.msk.f32.vlgmr.msra.gmra.mrb[16].mxu1 %vm2051_vm6, %v5392_v52  ;;  %3659 = vmatmul.mubr.msk.f32.gmra.mrb[22].mxu0 %vm2051_vm6, %v5446_v12  ;;  %v1076_v40 = vmul.f32 7.54979e-08, %v884_v60  ;;  %v1092_v22 = vmul.f32 7.54979e-08, %v900_v58  ;;  %v5452_v47 = vcvt.f32.s32 %v3844_v30  ;;  %v5454_v48 = vcvt.f32.s32 %v3876_v5  ;;  %v6178_v39 = vld [vmem:[#allocation8_spill] sm:$0xff] }
 0x1d6   : > { %v1044_v33 = vsub.f32 %v980_v43, %v1012_v21  ;;  %v1060_v27 = vsub.f32 %v996_v20, %v1028_v8  ;;  %2579 = vmatprep.mubr.f32.mxu1 %v6174_v26  ;;  %2662 = vmatprep.mubr.f32.mxu0 %v6174_v26  ;;  %v886_v57 = vfloor.f32 %v854_v9  ;;  %v5456_v14 = vfloor.f32 %v870_v34 }
 0x1d7   : > { %v6179_v45 = vrot.slane %v6177_v1, %v6178_v39  ;;  %v6181_v31 = vrot.slane %v6177_v1, %v6180_v50  ;;  %v5477_v18 = vmul.f32 0.63661975, %v5441_v29  ;;  %v1700_v44 = vand.u32 1, %v5454_v48 }
 0x1d8   : > { %v1108_v41 = vsub.f32 %v1044_v33, %v1076_v40  ;;  %v5458_v28 = vsub.f32 %v1060_v27, %v1092_v22  ;;  %v3848_v37 = vtrunc.f32 %v886_v57  ;;  %v950_v11 = vmul.f32 1.5703125, %v886_v57 }
 0x1d9   : > { %v5464_v36 = vrot.slane %v6179_v45, %v6091_v56  ;;  %v5470_v16 = vrot.slane %v6181_v31, %v6089_v35  ;;  %3661 = vmatmul.mubr.msk.f32.gmra.mrb[18].mxu1 %vm2051_vm6, %v5418_v51  ;;  %v1684_v56 = vand.u32 1, %v5452_v47  ;;  %v966_v35 = vmul.f32 1.5703125, %v5456_v14 }
 0x1da   : > { %v1140_v24 = vmul.f32 %v1108_v41, %v1108_v41  ;;  %v1156_v2 = vmul.f32 %v5458_v28, %v5458_v28  ;;  %2585 = vmatprep.mubr.f32.mxu1 %v6174_v26  ;;  %v5484_v46 = vmul.f32 0.63661975, %v5443_v0  ;;  %v1748_v54 = vand.u32 2, %v5452_v47 }
 0x1db   : > { %v1764_v32 = vand.u32 2, %v5454_v48  ;;  %v5488_v53 = vcvt.f32.s32 %v3848_v37  ;;  %v3880_v61 = vtrunc.f32 %v5456_v14  ;;  %v1014_v63 = vmul.f32 0.0004837513, %v886_v57 }
 0x1dc   : > { %v1204_v62 = vmul.f32 -0.00019515296, %v1140_v24  ;;  %v1220_v3 = vmul.f32 -0.00019515296, %v1156_v2  ;;  %v1030_v60 = vmul.f32 0.0004837513, %v5456_v14  ;;  %v982_v23 = vsub.f32 %v5423_v13, %v950_v11 }
 0x1dd   : > { %3662 = vmatmul.mubr.msk.f32.gmra.mrb[20].mxu1 %vm2051_vm6, %v5434_v15  ;;  %v1492_v17 = vmul.f32 2.4433157e-05, %v1140_v24  ;;  %v1172_v25 = vmul.f32 %v1140_v24, %v1108_v41  ;;  %v1188_v10 = vmul.f32 %v1156_v2, %v5458_v28  ;;  %v1508_v7 = vmul.f32 2.4433157e-05, %v1156_v2 }
 0x1de   : > { %v1236_v58 = vadd.f32 0.008332161, %v1204_v62  ;;  %v1252_v38 = vadd.f32 0.008332161, %v1220_v3  ;;  %2591 = vmatprep.mubr.f32.mxu1 %v6174_v26  ;;  %v998_v19 = vsub.f32 %v5425_v4, %v966_v35  ;;  %v1046_v43 = vsub.f32 %v982_v23, %v1014_v63 }
 0x1df   : > { %v1524_v5 = vadd.f32 -0.0013887316, %v1492_v17  ;;  %v1540_v20 = vadd.f32 -0.0013887316, %v1508_v7  ;;  %vm5498_vm11 = vcmp.eq.s32.totalorder %v1684_v56, 1  ;;  %v1396_v27 = vmul.f32 0.5, %v1140_v24 }
 0x1e0   : > { %v1268_v49 = vmul.f32 %v1236_v58, %v1140_v24  ;;  %v1284_v30 = vmul.f32 %v1252_v38, %v1156_v2  ;;  %v1062_v8 = vsub.f32 %v998_v19, %v1030_v60  ;;  %v1078_v9 = vmul.f32 7.54979e-08, %v886_v57 }
 0x1e1   : > { %v1094_v13 = vmul.f32 7.54979e-08, %v5456_v14  ;;  %3663 = vmatmul.mubr.msk.f32.gmra.mrb[22].mxu1 %vm2051_vm6, %v5446_v12  ;;  %v1556_v4 = vmul.f32 %v1524_v5, %v1140_v24  ;;  %v1412_v40 = vmul.f32 0.5, %v1156_v2  ;;  %v1572_v22 = vmul.f32 %v1540_v20, %v1156_v2 }
 0x1e2   : > { %v1300_v34 = vadd.f32 -0.16666655, %v1268_v49  ;;  %v1316_v33 = vadd.f32 -0.16666655, %v1284_v30  ;;  %2751 = vmatprep.mubr.f32.mxu1 %v6174_v26  ;;  %v5506_v47 = vsub.f32 %v1046_v43, %v1078_v9  ;;  %v1460_v57 = vmul.f32 %v1140_v24, %v1140_v24 }
 0x1e3   : > { %v5508_v48 = vsub.f32 %v1062_v8, %v1094_v13  ;;  %v1588_v39 = vadd.f32 0.041666646, %v1556_v4  ;;  %v1476_v14 = vmul.f32 %v1156_v2, %v1156_v2  ;;  %v1604_v45 = vadd.f32 0.041666646, %v1572_v22  ;;  %v5794_v22 = vpop.permute.xlu0 %2033 }
 0x1e4   : > { %v1332_v37 = vmul.f32 %v1300_v34, %v1172_v25  ;;  %v1348_v1 = vmul.f32 %v1316_v33, %v1188_v10  ;;  %v1142_v50 = vmul.f32 %v5506_v47, %v5506_v47  ;;  %v1428_v56 = vsub.f32 1.0, %v1396_v27 }
 0x1e5   : > { %v1158_v31 = vmul.f32 %v5508_v48, %v5508_v48  ;;  %v1620_v35 = vmul.f32 %v1588_v39, %v1460_v57  ;;  %v5516_v62 = vcvt.f32.s32 %v3880_v61  ;;  %v1444_v63 = vsub.f32 1.0, %v1412_v40 }
 0x1e6   : > { %v5514_v11 = vadd.f32 %v1332_v37, %v1108_v41  ;;  %v5519_v3 = vadd.f32 %v1348_v1, %v5458_v28  ;;  %v1636_v24 = vmul.f32 %v1604_v45, %v1476_v14  ;;  %v1206_v60 = vmul.f32 -0.00019515296, %v1142_v50 }
 0x1e7   : > { %v5521_v2 = vadd.f32 %v1620_v35, %v1428_v56  ;;  %vm5523_vm12 = vcmp.eq.s32.totalorder %v1700_v44, 1  ;;  %vm5527_vm13 = vcmp.ne.s32.totalorder %v1748_v54, 0  ;;  %v1222_v41 = vmul.f32 -0.00019515296, %v1158_v31 }
 0x1e8   : > { %v5531_v17 = vadd.f32 %v1636_v24, %v1444_v63  ;;  %vm5533_vm14 = vcmp.ne.s32.totalorder %v1764_v32, 0  ;;  %v1238_v28 = vadd.f32 0.008332161, %v1206_v60  ;;  %v1686_v23 = vand.u32 1, %v5488_v53  ;;  %vm1940_vm9 = vmxor %vm5498_vm11, %vm5527_vm13 }
 0x1e9   : > { %v1812_v44 = vsel %vm5498_vm11, %v5521_v2, %v5514_v11  ;;  %v1174_v54 = vmul.f32 %v1142_v50, %v5506_v47  ;;  %v1254_v25 = vadd.f32 0.008332161, %v1222_v41  ;;  %v1702_v10 = vand.u32 1, %v5516_v62  ;;  %vm1956_vm4 = vmxor %vm5523_vm12, %vm5533_vm14 }
 0x1ea   : > { %v1828_v32 = vsel %vm5523_vm12, %v5531_v17, %v5519_v3  ;;  %v1876_v7 = vsub.f32 0.0, %v1812_v44  ;;  %v1270_v19 = vmul.f32 %v1238_v28, %v1142_v50  ;;  %v1494_v49 = vmul.f32 2.4433157e-05, %v1142_v50 }
 0x1eb   : > { %v1892_v30 = vsub.f32 0.0, %v1828_v32  ;;  %v1190_v5 = vmul.f32 %v1158_v31, %v5508_v48  ;;  %v1286_v43 = vmul.f32 %v1254_v25, %v1158_v31  ;;  %v1510_v20 = vmul.f32 2.4433157e-05, %v1158_v31 }
 0x1ec   : > { %v1302_v8 = vadd.f32 -0.16666655, %v1270_v19  ;;  %v1398_v9 = vmul.f32 0.5, %v1142_v50  ;;  %v1414_v13 = vmul.f32 0.5, %v1158_v31  ;;  %v1526_v34 = vadd.f32 -0.0013887316, %v1494_v49 }
 0x1ed   : > { %v1908_v33 = vsel %vm5527_vm13, %v1876_v7, %v1812_v44  ;;  %v1924_v27 = vsel %vm5533_vm14, %v1892_v30, %v1828_v32  ;;  %v1318_v4 = vadd.f32 -0.16666655, %v1286_v43  ;;  %v1542_v40 = vadd.f32 -0.0013887316, %v1510_v20 }
 0x1ee   : > { %vm5553_vm0 = vcmp.eq.s32.totalorder %v1686_v23, 1  ;;  %v3738_v37 = vpack.c.bf16 %v1924_v27, %v1908_v33  ;;  %v1334_v1 = vmul.f32 %v1302_v8, %v1174_v54  ;;  %v1558_v57 = vmul.f32 %v1526_v34, %v1142_v50 }
 0x1ef   : > { %vm5557_vm1 = vcmp.eq.s32.totalorder %v1702_v10, 1  ;;  %v851_v14 = vadd.f32 0.5, %v5477_v18  ;;  %v1350_v45 = vmul.f32 %v1318_v4, %v1190_v5  ;;  %v1574_v56 = vmul.f32 %v1542_v40, %v1158_v31 }
 0x1f0   : > { %v1750_v35 = vand.u32 2, %v5488_v53  ;;  %v867_v63 = vadd.f32 0.5, %v5484_v46  ;;  %3739 = vmatprep.subr.bf16.mxu0 %v3738_v37  ;;  %v1462_v24 = vmul.f32 %v1142_v50, %v1142_v50  ;;  %v1478_v60 = vmul.f32 %v1158_v31, %v1158_v31 }
 0x1f1   : > { %v1590_v41 = vadd.f32 0.041666646, %v1558_v57  ;;  %v883_v28 = vfloor.f32 %v851_v14  ;;  %v1430_v23 = vsub.f32 1.0, %v1398_v9  ;;  %v1446_v44 = vsub.f32 1.0, %v1414_v13 }
 0x1f2   : > { %v1606_v54 = vadd.f32 0.041666646, %v1574_v56  ;;  %v899_v25 = vfloor.f32 %v867_v63  ;;  %v5565_v10 = vadd.f32 %v1334_v1, %v5506_v47  ;;  %v1766_v18 = vand.u32 2, %v5516_v62 }
 0x1f3   : > { %v1622_v32 = vmul.f32 %v1590_v41, %v1462_v24  ;;  %v947_v7 = vmul.f32 1.5703125, %v883_v28  ;;  %v5569_v53 = vadd.f32 %v1350_v45, %v5508_v48  ;;  %v573_v50 = vmul.f32 %v5464_v36, %v6097_v42  ;;  %v5585_v13 = vpop.f32.mrb[0].mxu0 }
 0x1f4   : > { %v1638_v46 = vmul.f32 %v1606_v54, %v1478_v60  ;;  %v963_v19 = vmul.f32 1.5703125, %v899_v25  ;;  %v3842_v49 = vtrunc.f32 %v883_v28  ;;  %v1011_v5 = vmul.f32 0.0004837513, %v883_v28  ;;  %v5591_v27 = vpop.f32.mrb[1].mxu0 }
 0x1f5   : > { %v5573_v31 = vadd.f32 %v1622_v32, %v1430_v23  ;;  %v979_v30 = vsub.f32 %v5441_v29, %v947_v7  ;;  %v3874_v43 = vtrunc.f32 %v899_v25  ;;  %v1027_v20 = vmul.f32 0.0004837513, %v899_v25 }
 0x1f6   : > { %v5576_v47 = vadd.f32 %v1638_v46, %v1446_v44  ;;  %v995_v62 = vsub.f32 %v5443_v0, %v963_v19  ;;  %v1075_v9 = vmul.f32 7.54979e-08, %v883_v28  ;;  %v757_v42 = vmul.f32 %v5470_v16, %v6098_v6 }
 0x1f7   : > { %v1814_v48 = vsel %vm5553_vm0, %v5573_v31, %v5565_v10  ;;  %v1043_v8 = vsub.f32 %v979_v30, %v1011_v5  ;;  %v1091_v33 = vmul.f32 7.54979e-08, %v899_v25  ;;  %vm5593_vm2 = vcmp.ne.s32.totalorder %v1750_v35, 0  ;;  %v5619_v60 = vpop.f32.mrb[2].mxu0 }
 0x1f8   : > { %v1830_v29 = vsel %vm5557_vm1, %v5576_v47, %v5569_v53  ;;  %v1878_v34 = vsub.f32 0.0, %v1814_v48  ;;  %v1059_v0 = vsub.f32 %v995_v62, %v1027_v20  ;;  %vm5597_vm3 = vcmp.ne.s32.totalorder %v1766_v18, 0 }
 0x1f9   : > { %v1894_v6 = vsub.f32 0.0, %v1830_v29  ;;  %v5601_v37 = vsub.f32 %v1043_v8, %v1075_v9  ;;  %v5603_v1 = vcvt.f32.s32 %v3842_v49  ;;  %v5605_v57 = vcvt.f32.s32 %v3874_v43 }
 0x1fa   : > { %v5607_v14 = vsub.f32 %v1059_v0, %v1091_v33  ;;  %v589_v45 = vmul.f32 %v5464_v36, %v4336_v55  ;;  %v1910_v56 = vsel %vm5593_vm2, %v1878_v34, %v1814_v48  ;;  %v773_v24 = vmul.f32 %v5470_v16, %v6173_v59  ;;  %v5625_v55 = vpop.f32.mrb[0].mxu1  ;;  %v5627_v36 = vpop.f32.mrb[3].mxu0 }
 0x1fb   : > { %v1926_v35 = vsel %vm5597_vm3, %v1894_v6, %v1830_v29  ;;  %v1139_v63 = vmul.f32 %v5601_v37, %v5601_v37  ;;  %v5623_v23 = vadd.f32 %v757_v42, %v573_v50  ;;  %v5629_v54 = vpop.f32.mrb[1].mxu1  ;;  %v1683_v32 = vand.u32 1, %v5603_v1  ;;  %v5637_v50 = vpop.f32.mrb[4].mxu0 }
 0x1fc   : > { %v3746_v41 = vpack.c.bf16 %v1926_v35, %v1910_v56  ;;  %v1155_v28 = vmul.f32 %v5607_v14, %v5607_v14  ;;  %v1699_v59 = vand.u32 1, %v5605_v57  ;;  %v5635_v19 = vadd.f32 %v773_v24, %v589_v45  ;;  %v5646_v62 = vpop.f32.mrb[2].mxu1 }
 0x1fd   : > { %v1203_v44 = vmul.f32 -0.00019515296, %v1139_v63  ;;  %v1491_v7 = vmul.f32 2.4433157e-05, %v1139_v63  ;;  %v1171_v49 = vmul.f32 %v1139_v63, %v5601_v37  ;;  %v5644_v43 = vsel %vm5498_vm11, %v5514_v11, %v5521_v2  ;;  %v5654_v6 = vpop.f32.mrb[3].mxu1  ;;  %v5656_v11 = vpop.f32.mrb[5].mxu0 }
 0x1fe   : > { %3747 = vmatprep.subr.bf16.mxu1 %v3746_v41  ;;  %v1219_v25 = vmul.f32 -0.00019515296, %v1155_v28  ;;  %v1507_v5 = vmul.f32 2.4433157e-05, %v1155_v28  ;;  %v821_v8 = vmul.f32 0.63661975, %v5623_v23  ;;  %v1187_v41 = vmul.f32 %v1155_v28, %v5607_v14 }
 0x1ff   : > { %v1235_v18 = vadd.f32 0.008332161, %v1203_v44  ;;  %v1523_v48 = vadd.f32 -0.0013887316, %v1491_v7  ;;  %v837_v9 = vmul.f32 0.63661975, %v5635_v19  ;;  %v2131_v4 = vadd.f32 %v5585_v13, %v5794_v22 }
 0x200   : > { %v1251_v30 = vadd.f32 0.008332161, %v1219_v25  ;;  %v1395_v29 = vmul.f32 0.5, %v1139_v63  ;;  %v1411_v34 = vmul.f32 0.5, %v1155_v28  ;;  %v1539_v0 = vadd.f32 -0.0013887316, %v1507_v5 }
 0x201   : > { %v1267_v20 = vmul.f32 %v1235_v18, %v1139_v63  ;;  %vm5650_vm5 = vcmp.eq.s32.totalorder %v1683_v32, 1  ;;  %6200 = vst [vmem:[#allocation26_spill] sm:$0xff] %v5656_v11  ;;  %v1555_v45 = vmul.f32 %v1523_v48, %v1139_v63  ;;  %v853_v56 = vadd.f32 0.5, %v821_v8  ;;  %v5658_v24 = vpop.f32.mrb[6].mxu0  ;;  %v5661_v7 = vpop.f32.mrb[4].mxu1 }
 0x202   : > { %v1283_v42 = vmul.f32 %v1251_v30, %v1155_v28  ;;  %v869_v35 = vadd.f32 0.5, %v837_v9  ;;  %6201 = vst [vmem:[#allocation22_spill] sm:$0xff] %v5658_v24  ;;  %v1459_v25 = vmul.f32 %v1139_v63, %v1139_v63  ;;  %v1571_v18 = vmul.f32 %v1539_v0, %v1155_v28  ;;  %v5663_v32 = vpop.f32.mrb[7].mxu0  ;;  %v5665_v11 = vpop.f32.mrb[5].mxu1 }
 0x203   : > { %v1299_v2 = vadd.f32 -0.16666655, %v1267_v20  ;;  %v1587_v5 = vadd.f32 0.041666646, %v1555_v45  ;;  %v885_v46 = vfloor.f32 %v853_v56  ;;  %v1475_v48 = vmul.f32 %v1155_v28, %v1155_v28 }
 0x204   : > { %v1315_v44 = vadd.f32 -0.16666655, %v1283_v42  ;;  %v901_v16 = vfloor.f32 %v869_v35  ;;  %v1603_v8 = vadd.f32 0.041666646, %v1571_v18  ;;  %v1860_v9 = vsel %vm5523_vm12, %v5519_v3, %v5531_v17  ;;  %v5673_v35 = vpop.f32.mrb[6].mxu1 }
 0x205   : > { %v1331_v30 = vmul.f32 %v1299_v2, %v1171_v49  ;;  %v1427_v42 = vsub.f32 1.0, %v1395_v29  ;;  %v1443_v0 = vsub.f32 1.0, %v1411_v34  ;;  %v1619_v24 = vmul.f32 %v1587_v5, %v1459_v25  ;;  %v5679_v3 = vpop.f32.mrb[7].mxu1 }
 0x206   : > { %v1347_v20 = vmul.f32 %v1315_v44, %v1187_v41  ;;  %v1635_v2 = vmul.f32 %v1603_v8, %v1475_v48  ;;  %v949_v45 = vmul.f32 1.5703125, %v885_v46  ;;  %v965_v56 = vmul.f32 1.5703125, %v901_v16 }
 0x207   : > { %v1363_v63 = vadd.f32 %v1331_v30, %v5601_v37  ;;  %v1651_v41 = vadd.f32 %v1619_v24, %v1427_v42  ;;  %vm5675_vm7 = vcmp.eq.s32.totalorder %v1699_v59, 1  ;;  %v1013_v44 = vmul.f32 0.0004837513, %v885_v46 }
 0x208   : > { %v1379_v49 = vadd.f32 %v1347_v20, %v5607_v14  ;;  %v1988_v18 = vsub.f32 0.0, %v1860_v9  ;;  %v1667_v17 = vadd.f32 %v1635_v2, %v1443_v0  ;;  %v981_v37 = vsub.f32 %v5623_v23, %v949_v45 }
 0x209   : > { %v997_v29 = vsub.f32 %v5635_v19, %v965_v56  ;;  %v1029_v14 = vmul.f32 0.0004837513, %v901_v16  ;;  %v1811_v34 = vsel %vm5650_vm5, %v1651_v41, %v1363_v63  ;;  %v1077_v25 = vmul.f32 7.54979e-08, %v885_v46 }
 0x20a   : > { %v1093_v30 = vmul.f32 7.54979e-08, %v901_v16  ;;  %v1972_v59 = vsub.f32 0.0, %v5644_v43  ;;  %v1827_v24 = vsel %vm5675_vm7, %v1667_v17, %v1379_v49  ;;  %v1875_v5 = vsub.f32 0.0, %v1811_v34 }
 0x20b   : > { %v1045_v20 = vsub.f32 %v981_v37, %v1013_v44  ;;  %v1061_v48 = vsub.f32 %v997_v29, %v1029_v14  ;;  %v6204_v8 = vand.u32 2, %v5603_v1  ;;  %v1891_v19 = vsub.f32 0.0, %v1827_v24 }
 0x20c   : > { %v3846_v42 = vtrunc.f32 %v885_v46  ;;  %v3878_v0 = vtrunc.f32 %v901_v16  ;;  %v6207_v2 = vand.u32 2, %v5605_v57  ;;  %v2020_v44 = vsel %vm1956_vm4, %v1988_v18, %v1860_v9 }
 0x20d   : > { %vm5690_vm15 = vcmp.ne.s32.totalorder %v6204_v8, 0  ;;  %v1109_v56 = vsub.f32 %v1045_v20, %v1077_v25  ;;  %v1125_v1 = vsub.f32 %v1061_v48, %v1093_v30  ;;  %v2004_v46 = vsel %vm1940_vm9, %v1972_v59, %v5644_v43 }
 0x20e   : > { %vm5700_vm8 = vcmp.ne.s32.totalorder %v6207_v2, 0  ;;  %v1907_v37 = vsel %vm5690_vm15, %v1875_v5, %v1811_v34  ;;  %v3847_v29 = vcvt.f32.s32 %v3846_v42  ;;  %v3879_v14 = vcvt.f32.s32 %v3878_v0  ;;  %vm1939_vm10 = vmxor %vm5650_vm5, %vm5690_vm15 }
 0x20f   : > { %v1923_v16 = vsel %vm5700_vm8, %v1891_v19, %v1827_v24  ;;  %v1141_v61 = vmul.f32 %v1109_v56, %v1109_v56  ;;  %v1157_v57 = vmul.f32 %v1125_v1, %v1125_v1  ;;  %v3742_v25 = vpack.c.bf16 %v2020_v44, %v2004_v46  ;;  %vm1955_vm11 = vmxor %vm5675_vm7, %vm5700_vm8 }
 0x210   : > { %v3740_v58 = vpack.c.bf16 %v1923_v16, %v1907_v37  ;;  %v1843_v34 = vsel %vm5650_vm5, %v1363_v63, %v1651_v41  ;;  %v1859_v21 = vsel %vm5675_vm7, %v1379_v49, %v1667_v17  ;;  %v1685_v48 = vand.u32 1, %v3847_v29  ;;  %vm1958_vm7 = vmxor %vm5557_vm1, %vm5597_vm3 }
 0x211   : > { %v1205_v9 = vmul.f32 -0.00019515296, %v1141_v61  ;;  %v1221_v18 = vmul.f32 -0.00019515296, %v1157_v57  ;;  %v1493_v24 = vmul.f32 2.4433157e-05, %v1141_v61  ;;  %v1173_v5 = vmul.f32 %v1141_v61, %v1109_v56 }
 0x212   : > { %3741 = vmatpush1.bf16.msra.mxu0 %v3740_v58  ;;  %v1509_v20 = vmul.f32 2.4433157e-05, %v1157_v57  ;;  %v1701_v43 = vand.u32 1, %v3879_v14  ;;  %v1189_v59 = vmul.f32 %v1157_v57, %v1125_v1  ;;  %v1397_v0 = vmul.f32 0.5, %v1141_v61 }
 0x213   : > { %3743 = vmatprep.subr.bf16.mxu0 %v3742_v25  ;;  %v1237_v30 = vadd.f32 0.008332161, %v1205_v9  ;;  %v1253_v38 = vadd.f32 0.008332161, %v1221_v18  ;;  %v1525_v42 = vadd.f32 -0.0013887316, %v1493_v24  ;;  %v1461_v16 = vmul.f32 %v1141_v61, %v1141_v61 }
 0x214   : > { %v1541_v2 = vadd.f32 -0.0013887316, %v1509_v20  ;;  %v1971_v63 = vsub.f32 0.0, %v1843_v34  ;;  %v1987_v41 = vsub.f32 0.0, %v1859_v21  ;;  %v1413_v49 = vmul.f32 0.5, %v1157_v57 }
 0x215   : > { %v1269_v8 = vmul.f32 %v1237_v30, %v1141_v61  ;;  %v1285_v19 = vmul.f32 %v1253_v38, %v1157_v57  ;;  %v1557_v17 = vmul.f32 %v1525_v42, %v1141_v61  ;;  %v1477_v30 = vmul.f32 %v1157_v57, %v1157_v57 }
 0x216   : > { %v1573_v58 = vmul.f32 %v1541_v2, %v1157_v57  ;;  %v2003_v46 = vsel %vm1939_vm10, %v1971_v63, %v1843_v34  ;;  %v2019_v25 = vsel %vm1955_vm11, %v1987_v41, %v1859_v21  ;;  %v1749_v24 = vand.u32 2, %v3847_v29 }
 0x217   : > { %v1301_v44 = vadd.f32 -0.16666655, %v1269_v8  ;;  %v1317_v37 = vadd.f32 -0.16666655, %v1285_v19  ;;  %v1589_v18 = vadd.f32 0.041666646, %v1557_v17  ;;  %v3744_v33 = vpack.c.bf16 %v2019_v25, %v2003_v46  ;;  %v5808_v25 = vpop.permute.xlu0 %2043 }
 0x218   : > { %v1605_v38 = vadd.f32 0.041666646, %v1573_v58  ;;  %v1765_v20 = vand.u32 2, %v3879_v14  ;;  %v1429_v19 = vsub.f32 1.0, %v1397_v0  ;;  %v1862_v28 = vsel %vm5557_vm1, %v5569_v53, %v5576_v47  ;;  %vm1942_vm1 = vmxor %vm5553_vm0, %vm5593_vm2 }
 0x219   : > { %v1333_v9 = vmul.f32 %v1301_v44, %v1173_v5  ;;  %v1349_v23 = vmul.f32 %v1317_v37, %v1189_v59  ;;  %v1621_v42 = vmul.f32 %v1589_v18, %v1461_v16  ;;  %3745 = vmatpush1.bf16.msra.mxu0 %v3744_v33  ;;  %v1445_v61 = vsub.f32 1.0, %v1413_v49 }
 0x21a   : > { %v1637_v34 = vmul.f32 %v1605_v38, %v1477_v30  ;;  %v1846_v57 = vsel %vm5553_vm0, %v5565_v10, %v5573_v31  ;;  %vm5733_vm12 = vcmp.eq.s32.totalorder %v1685_v48, 1  ;;  %vm5737_vm13 = vcmp.eq.s32.totalorder %v1701_v43, 1 }
 0x21b   : > { %v1365_v8 = vadd.f32 %v1333_v9, %v1109_v56  ;;  %v1381_v45 = vadd.f32 %v1349_v23, %v1125_v1  ;;  %v1653_v21 = vadd.f32 %v1621_v42, %v1429_v19  ;;  %vm5741_vm14 = vcmp.ne.s32.totalorder %v1749_v24, 0 }
 0x21c   : > { %v1669_v56 = vadd.f32 %v1637_v34, %v1445_v61  ;;  %v1990_v47 = vsub.f32 0.0, %v1862_v28  ;;  %3664 = vmatmul.mubr.msk.f32.vlgmr.msra.gmra.mrb[24].mxu0 %vm2051_vm6, %v5392_v52  ;;  %vm5747_vm5 = vcmp.ne.s32.totalorder %v1765_v20, 0  ;;  %v1974_v1 = vsub.f32 0.0, %v1846_v57  ;;  %vm1941_vm15 = vmxor %vm5733_vm12, %vm5741_vm14 }
 0x21d   : > { %v1813_v31 = vsel %vm5733_vm12, %v1653_v21, %v1365_v8  ;;  %v1845_v5 = vsel %vm5733_vm12, %v1365_v8, %v1653_v21  ;;  %2668 = vmatprep.mubr.f32.mxu0 %v6174_v26  ;;  %vm1957_vm4 = vmxor %vm5737_vm13, %vm5747_vm5  ;;  %v2220_v46 = vadd.f32 %v5625_v55, %v5794_v22  ;;  %v2143_v55 = vadd.f32 %v5637_v50, %v5808_v25  ;;  %v6218_v50 = vld [vmem:[#allocation26_spill] sm:$0xff] }
 0x21e   : > { %v1829_v48 = vsel %vm5737_vm13, %v1669_v56, %v1381_v45  ;;  %v1877_v43 = vsub.f32 0.0, %v1813_v31  ;;  %v1861_v59 = vsel %vm5737_vm13, %v1381_v45, %v1669_v56  ;;  %v1973_v0 = vsub.f32 0.0, %v1845_v5  ;;  %v6219_v45 = vld [vmem:[#allocation22_spill] sm:$0xff] }
 0x21f   : > { %v1893_v2 = vsub.f32 0.0, %v1829_v48  ;;  %v1989_v63 = vsub.f32 0.0, %v1861_v59  ;;  %v2022_v41 = vsel %vm1958_vm7, %v1990_v47, %v1862_v28  ;;  %v2006_v17 = vsel %vm1942_vm1, %v1974_v1, %v1846_v57 }
 0x220   : > { %3665 = vmatmul.mubr.msk.f32.gmra.mrb[26].mxu0 %vm2051_vm6, %v5418_v51  ;;  %v1909_v39 = vsel %vm5741_vm14, %v1877_v43, %v1813_v31  ;;  %v2005_v44 = vsel %vm1941_vm15, %v1973_v0, %v1845_v5  ;;  %v3750_v58 = vpack.c.bf16 %v2022_v41, %v2006_v17  ;;  %v2778_v9 = vmax.f32 %v2220_v46, 0.0  ;;  %v5846_v5 = vld [vmem:[%s389_s19] sm:$0xf] }
 0x221   : > { %v1925_v40 = vsel %vm5747_vm5, %v1893_v2, %v1829_v48  ;;  %v2021_v37 = vsel %vm1957_vm4, %v1989_v63, %v1861_v59  ;;  %2674 = vmatprep.mubr.f32.mxu0 %v6174_v26  ;;  %v2232_v30 = vadd.f32 %v5661_v7, %v5808_v25  ;;  %v2145_v38 = vadd.f32 %v6218_v50, %v5808_v25 }
 0x222   : > { %v3748_v49 = vpack.c.bf16 %v1925_v40, %v1909_v39  ;;  %v3752_v16 = vpack.c.bf16 %v2021_v37, %v2005_v44  ;;  %v2808_v57 = vmax.f32 %v2143_v55, 0.0 }
 0x223   : > { %v2810_v21 = vmax.f32 %v2232_v30, 0.0  ;;  %v2809_v29 = vmax.f32 %v2145_v38, 0.0 }
 0x224   : > { %3749 = vmatpush1.bf16.msra.mxu1 %v3748_v49  ;;  %3666 = vmatmul.mubr.msk.f32.gmra.mrb[28].mxu0 %vm2051_vm6, %v5434_v15 }
 0x225   : > { %3751 = vmatprep.subr.bf16.mxu1 %v3750_v58  ;;  %2680 = vmatprep.mubr.f32.mxu0 %v6174_v26 }
 0x228   : > { %3753 = vmatpush1.bf16.msra.mxu1 %v3752_v16  ;;  %3667 = vmatmul.mubr.msk.f32.gmra.mrb[30].mxu0 %vm2051_vm6, %v5446_v12 }
 0x229   : > { %2914 = vmatprep.mubr.f32.mxu0 %v6174_v26 }
 0x22b   : > { %3668 = vmatmul.mubr.msk.f32.vlgmr.msra.gmra.mrb[24].mxu1 %vm2051_vm6, %v5392_v52  ;;  %v2133_v52 = vadd.f32 %v5591_v27, %v5794_v22 }
 0x22c   : > { %2757 = vmatprep.mubr.f32.mxu1 %v6174_v26 }
 0x22d   : > { %v2777_v23 = vmax.f32 %v2133_v52, 0.0 }
 0x22f   : > { %3669 = vmatmul.mubr.msk.f32.gmra.mrb[26].mxu1 %vm2051_vm6, %v5418_v51  ;;  %v2222_v51 = vadd.f32 %v5629_v54, %v5794_v22 }
 0x230   : > { %2763 = vmatprep.mubr.f32.mxu1 %v6174_v26 }
 0x231   : > { %v5812_v13 = vpop.permute.xlu1 %2038  ;;  %v2779_v33 = vmax.f32 %v2222_v51, 0.0 }
 0x232   : > { %v2137_v27 = vadd.f32 %v5619_v60, %v5812_v13  ;;  %v2226_v18 = vadd.f32 %v5646_v62, %v5812_v13  ;;  %v2139_v54 = vadd.f32 %v5627_v36, %v5812_v13  ;;  %v2234_v60 = vadd.f32 %v5665_v11, %v5808_v25 }
 0x233   : > { %3670 = vmatmul.mubr.msk.f32.gmra.mrb[28].mxu1 %vm2051_vm6, %v5434_v15  ;;  %v2776_v15 = vmax.f32 %v2131_v4, 0.0 }
 0x234   : > { %2769 = vmatprep.mubr.f32.mxu1 %v6174_v26  ;;  %v2792_v24 = vmax.f32 %v2137_v27, 0.0  ;;  %v2794_v62 = vmax.f32 %v2226_v18, 0.0  ;;  %v2793_v20 = vmax.f32 %v2139_v54, 0.0  ;;  %v2811_v56 = vmax.f32 %v2234_v60, 0.0 }
 0x235   : > { %v5831_v36 = vpop.permute.xlu1 %2048 }
 0x236   : > { %v3756_v19 = vpack.c.bf16 %v2792_v24, %v2776_v15  ;;  %v3754_v42 = vpack.c.bf16 %v2793_v20, %v2777_v23  ;;  %v2149_v61 = vadd.f32 %v6219_v45, %v5831_v36  ;;  %v2238_v7 = vadd.f32 %v5673_v35, %v5831_v36 }
 0x237   : > { %3671 = vmatmul.mubr.msk.f32.gmra.mrb[30].mxu1 %vm2051_vm6, %v5446_v12  ;;  %v2228_v12 = vadd.f32 %v5654_v6, %v5812_v13  ;;  %v3764_v6 = vpack.c.bf16 %v2794_v62, %v2778_v9  ;;  %v2151_v11 = vadd.f32 %v5663_v32, %v5831_v36  ;;  %v2240_v34 = vadd.f32 %v5679_v3, %v5831_v36 }
 0x238   : > { %2985 = vmatprep.mubr.f32.mxu1 %v6174_v26  ;;  %3755 = vmatprep.subr.bf16.mxu0 %v3754_v42  ;;  %v2824_v14 = vmax.f32 %v2149_v61, 0.0  ;;  %v2826_v53 = vmax.f32 %v2238_v7, 0.0 }
 0x239   : > { %v2795_v8 = vmax.f32 %v2228_v12, 0.0  ;;  %v2825_v47 = vmax.f32 %v2151_v11, 0.0  ;;  %v2827_v10 = vmax.f32 %v2240_v34, 0.0  ;;  %3757 = vmatpush1.bf16.msra.mxu0 %v3756_v19 }
 0x23a   : > { %v3760_v32 = vpack.c.bf16 %v2824_v14, %v2808_v57  ;;  %v3768_v35 = vpack.c.bf16 %v2826_v53, %v2810_v21 }
 0x23b   : > { %v3762_v28 = vpack.c.bf16 %v2795_v8, %v2779_v33  ;;  %v3758_v3 = vpack.c.bf16 %v2825_v47, %v2809_v29  ;;  %v3766_v31 = vpack.c.bf16 %v2827_v10, %v2811_v56 }
 0x23d   : > { %3763 = vmatprep.subr.bf16.mxu1 %v3762_v28  ;;  %3759 = vmatprep.subr.bf16.mxu0 %v3758_v3 }
 0x23e   : > { %3765 = vmatpush1.bf16.msra.mxu1 %v3764_v6  ;;  %3761 = vmatpush1.bf16.msra.mxu0 %v3760_v32 }
 0x23f   : > { %3767 = vmatprep.subr.bf16.mxu1 %v3766_v31 }
 0x241   : > { %3672 = vmatmul.mubr.msk.f32.vlgmr.msra.gmra.mrb[32].mxu0 %vm2051_vm6, %v5846_v5 }
 0x242   : > { %3769 = vmatpush1.bf16.msra.mxu1 %v3768_v35  ;;  %3056 = vmatprep.mubr.f32.mxu0 %v6174_v26 }
 0x244   : > { %v2308_v1 = vpop.f32.mrb[8].mxu0 }
 0x245   : > { %v2310_v48 = vpop.f32.mrb[9].mxu0  ;;  %v2309_v43 = vadd.f32 %v2308_v1, %v5794_v22  ;;  %3673 = vmatmul.mubr.msk.f32.vlgmr.msra.gmra.mrb[32].mxu1 %vm2051_vm6, %v5846_v5 }
 0x246   : > { %v2311_v59 = vadd.f32 %v2310_v48, %v5794_v22  ;;  %3127 = vmatprep.mubr.f32.mxu1 %v6174_v26 }
 0x247   : > { %v2780_v39 = vmax.f32 %v2309_v43, 0.0 }
 0x248   : > { %v2314_v0 = vpop.f32.mrb[10].mxu0  ;;  %v2781_v44 = vmax.f32 %v2311_v59, 0.0 }
 0x249   : > { %v2315_v2 = vadd.f32 %v2314_v0, %v5812_v13  ;;  %v2316_v63 = vpop.f32.mrb[11].mxu0 }
 0x24a   : > { %v2317_v41 = vadd.f32 %v2316_v63, %v5812_v13 }
 0x24b   : > { %v2796_v40 = vmax.f32 %v2315_v2, 0.0 }
 0x24c   : > { %v2797_v37 = vmax.f32 %v2317_v41, 0.0  ;;  %v2320_v49 = vpop.f32.mrb[12].mxu0 }
 0x24d   : > { %v3772_v17 = vpack.c.bf16 %v2796_v40, %v2780_v39  ;;  %v2322_v16 = vpop.f32.mrb[13].mxu0  ;;  %v2321_v4 = vadd.f32 %v2320_v49, %v5808_v25 }
 0x24e   : > { %v3770_v58 = vpack.c.bf16 %v2797_v37, %v2781_v44  ;;  %v2323_v52 = vadd.f32 %v2322_v16, %v5808_v25 }
 0x24f   : > { %v2812_v18 = vmax.f32 %v2321_v4, 0.0 }
 0x250   : > { %v2397_v46 = vpop.f32.mrb[8].mxu1  ;;  %v2326_v51 = vpop.f32.mrb[14].mxu0  ;;  %3771 = vmatprep.subr.bf16.mxu0 %v3770_v58  ;;  %v2813_v30 = vmax.f32 %v2323_v52, 0.0 }
 0x251   : > { %v2399_v15 = vpop.f32.mrb[9].mxu1  ;;  %v2327_v9 = vadd.f32 %v2326_v51, %v5831_v36  ;;  %v2328_v23 = vpop.f32.mrb[15].mxu0  ;;  %3773 = vmatpush1.bf16.msra.mxu0 %v3772_v17  ;;  %v2398_v27 = vadd.f32 %v2397_v46, %v5794_v22 }
 0x252   : > { %v2329_v55 = vadd.f32 %v2328_v23, %v5831_v36  ;;  %v2400_v12 = vadd.f32 %v2399_v15, %v5794_v22 }
 0x253   : > { %v2828_v54 = vmax.f32 %v2327_v9, 0.0  ;;  %v2782_v8 = vmax.f32 %v2398_v27, 0.0 }
 0x254   : > { %v2403_v33 = vpop.f32.mrb[10].mxu1  ;;  %v2829_v50 = vmax.f32 %v2329_v55, 0.0  ;;  %v2783_v6 = vmax.f32 %v2400_v12, 0.0 }
 0x255   : > { %v2404_v38 = vadd.f32 %v2403_v33, %v5812_v13  ;;  %v2405_v60 = vpop.f32.mrb[11].mxu1  ;;  %v3776_v24 = vpack.c.bf16 %v2828_v54, %v2812_v18 }
 0x256   : > { %v2406_v62 = vadd.f32 %v2405_v60, %v5812_v13  ;;  %v3774_v20 = vpack.c.bf16 %v2829_v50, %v2813_v30 }
 0x257   : > { %v2798_v19 = vmax.f32 %v2404_v38, 0.0 }
 0x258   : > { %v2799_v42 = vmax.f32 %v2406_v62, 0.0  ;;  %v2409_v28 = vpop.f32.mrb[12].mxu1  ;;  %3775 = vmatprep.subr.bf16.mxu0 %v3774_v20 }
 0x259   : > { %v3780_v45 = vpack.c.bf16 %v2798_v19, %v2782_v8  ;;  %v2411_v61 = vpop.f32.mrb[13].mxu1  ;;  %3777 = vmatpush1.bf16.msra.mxu0 %v3776_v24  ;;  %v2410_v11 = vadd.f32 %v2409_v28, %v5808_v25 }
 0x25a   : > { %v3778_v7 = vpack.c.bf16 %v2799_v42, %v2783_v6  ;;  %v2412_v34 = vadd.f32 %v2411_v61, %v5808_v25 }
 0x25b   : > { %v2814_v14 = vmax.f32 %v2410_v11, 0.0 }
 0x25c   : > { %v2415_v57 = vpop.f32.mrb[14].mxu1  ;;  %3779 = vmatprep.subr.bf16.mxu1 %v3778_v7  ;;  %3674 = vmatmul.mubr.msk.f32.vlgmr.msra.gmra.mrb[34].mxu0 %vm2051_vm6, %v5846_v5  ;;  %v2815_v47 = vmax.f32 %v2412_v34, 0.0 }
 0x25d   : > { %v2416_v21 = vadd.f32 %v2415_v57, %v5831_v36  ;;  %v2417_v29 = vpop.f32.mrb[15].mxu1  ;;  %3781 = vmatpush1.bf16.msra.mxu1 %v3780_v45  ;;  %3198 = vmatprep.mubr.f32.mxu0 %v6174_v26 }
 0x25e   : > { %v2418_v56 = vadd.f32 %v2417_v29, %v5831_v36 }
 0x25f   : > { %v2830_v53 = vmax.f32 %v2416_v21, 0.0 }
 0x260   : > { %v2831_v10 = vmax.f32 %v2418_v56, 0.0 }
 0x261   : > { %v3784_v32 = vpack.c.bf16 %v2830_v53, %v2814_v14 }
 0x262   : > { %v3782_v35 = vpack.c.bf16 %v2831_v10, %v2815_v47 }
 0x264   : > { %3783 = vmatprep.subr.bf16.mxu1 %v3782_v35 }
 0x265   : > { %3785 = vmatpush1.bf16.msra.mxu1 %v3784_v32 }
 0x268   : > { %3675 = vmatmul.mubr.msk.f32.vlgmr.msra.gmra.mrb[34].mxu1 %vm2051_vm6, %v5846_v5 }
 0x269   : > { %3269 = vmatprep.mubr.f32.mxu1 %v6174_v26 }
 0x29c   : > { %v2486_v3 = vpop.f32.mrb[16].mxu0 }
 0x29d   : > { %v2488_v31 = vpop.f32.mrb[17].mxu0  ;;  %v2487_v1 = vadd.f32 %v2486_v3, %v5794_v22 }
 0x29e   : > { %v2489_v48 = vadd.f32 %v2488_v31, %v5794_v22 }
 0x29f   : > { %v2784_v63 = vmax.f32 %v2487_v1, 0.0 }
 0x2a0   : > { %v2492_v43 = vpop.f32.mrb[18].mxu0  ;;  %v2785_v39 = vmax.f32 %v2489_v48, 0.0 }
 0x2a1   : > { %v2493_v59 = vadd.f32 %v2492_v43, %v5812_v13  ;;  %v2494_v0 = vpop.f32.mrb[19].mxu0 }
 0x2a2   : > { %v2495_v2 = vadd.f32 %v2494_v0, %v5812_v13 }
 0x2a3   : > { %v2800_v41 = vmax.f32 %v2493_v59, 0.0 }
 0x2a4   : > { %v2801_v40 = vmax.f32 %v2495_v2, 0.0  ;;  %v2498_v44 = vpop.f32.mrb[20].mxu0 }
 0x2a5   : > { %v3788_v37 = vpack.c.bf16 %v2800_v41, %v2784_v63  ;;  %v2500_v49 = vpop.f32.mrb[21].mxu0  ;;  %v2499_v16 = vadd.f32 %v2498_v44, %v5808_v25 }
 0x2a6   : > { %v3786_v17 = vpack.c.bf16 %v2801_v40, %v2785_v39  ;;  %v2501_v4 = vadd.f32 %v2500_v49, %v5808_v25 }
 0x2a7   : > { %v2816_v55 = vmax.f32 %v2499_v16, 0.0 }
 0x2a8   : > { %v2575_v58 = vpop.f32.mrb[16].mxu1  ;;  %v2504_v46 = vpop.f32.mrb[22].mxu0  ;;  %3787 = vmatprep.subr.bf16.mxu0 %v3786_v17  ;;  %v2817_v12 = vmax.f32 %v2501_v4, 0.0 }
 0x2a9   : > { %v2577_v52 = vpop.f32.mrb[17].mxu1  ;;  %v2505_v51 = vadd.f32 %v2504_v46, %v5831_v36  ;;  %v2506_v15 = vpop.f32.mrb[23].mxu0  ;;  %3789 = vmatpush1.bf16.msra.mxu0 %v3788_v37  ;;  %v2576_v23 = vadd.f32 %v2575_v58, %v5794_v22 }
 0x2aa   : > { %v2507_v9 = vadd.f32 %v2506_v15, %v5831_v36  ;;  %v2578_v18 = vadd.f32 %v2577_v52, %v5794_v22 }
 0x2ab   : > { %v2832_v27 = vmax.f32 %v2505_v51, 0.0  ;;  %v2786_v62 = vmax.f32 %v2576_v23, 0.0 }
 0x2ac   : > { %v2581_v54 = vpop.f32.mrb[18].mxu1  ;;  %v2833_v33 = vmax.f32 %v2507_v9, 0.0  ;;  %v2787_v8 = vmax.f32 %v2578_v18, 0.0 }
 0x2ad   : > { %v2582_v30 = vadd.f32 %v2581_v54, %v5812_v13  ;;  %v2583_v50 = vpop.f32.mrb[19].mxu1  ;;  %v3792_v38 = vpack.c.bf16 %v2832_v27, %v2816_v55 }
 0x2ae   : > { %v2584_v60 = vadd.f32 %v2583_v50, %v5812_v13  ;;  %v3790_v24 = vpack.c.bf16 %v2833_v33, %v2817_v12 }
 0x2af   : > { %v2802_v20 = vmax.f32 %v2582_v30, 0.0 }
 0x2b0   : > { %v2803_v19 = vmax.f32 %v2584_v60, 0.0  ;;  %v2587_v6 = vpop.f32.mrb[20].mxu1  ;;  %3791 = vmatprep.subr.bf16.mxu0 %v3790_v24 }
 0x2b1   : > { %v3796_v42 = vpack.c.bf16 %v2802_v20, %v2786_v62  ;;  %v2589_v28 = vpop.f32.mrb[21].mxu1  ;;  %3793 = vmatpush1.bf16.msra.mxu0 %v3792_v38  ;;  %v2588_v61 = vadd.f32 %v2587_v6, %v5808_v25 }
 0x2b2   : > { %v3794_v45 = vpack.c.bf16 %v2803_v19, %v2787_v8  ;;  %v2590_v7 = vadd.f32 %v2589_v28, %v5808_v25 }
 0x2b3   : > { %v2818_v29 = vmax.f32 %v2588_v61, 0.0 }
 0x2b4   : > { %v2593_v11 = vpop.f32.mrb[22].mxu1  ;;  %3795 = vmatprep.subr.bf16.mxu1 %v3794_v45  ;;  %3676 = vmatmul.mubr.msk.f32.vlgmr.msra.gmra.mrb[36].mxu0 %vm2051_vm6, %v5846_v5  ;;  %v2819_v14 = vmax.f32 %v2590_v7, 0.0 }
 0x2b5   : > { %v2594_v34 = vadd.f32 %v2593_v11, %v5831_v36  ;;  %v2595_v57 = vpop.f32.mrb[23].mxu1  ;;  %3797 = vmatpush1.bf16.msra.mxu1 %v3796_v42  ;;  %3340 = vmatprep.mubr.f32.mxu0 %v6174_v26 }
 0x2b6   : > { %v2596_v21 = vadd.f32 %v2595_v57, %v5831_v36 }
 0x2b7   : > { %v2834_v56 = vmax.f32 %v2594_v34, 0.0 }
 0x2b8   : > { %v2835_v53 = vmax.f32 %v2596_v21, 0.0 }
 0x2b9   : > { %v3800_v47 = vpack.c.bf16 %v2834_v56, %v2818_v29 }
 0x2ba   : > { %v3798_v10 = vpack.c.bf16 %v2835_v53, %v2819_v14 }
 0x2bc   : > { %3799 = vmatprep.subr.bf16.mxu1 %v3798_v10 }
 0x2bd   : > { %3801 = vmatpush1.bf16.msra.mxu1 %v3800_v47 }
 0x2c0   : > { %3677 = vmatmul.mubr.msk.f32.vlgmr.msra.gmra.mrb[36].mxu1 %vm2051_vm6, %v5846_v5 }
 0x2c1   : > { %3411 = vmatprep.mubr.f32.mxu1 %v6174_v26 }
 0x2ef   : > { %v2664_v32 = vpop.f32.mrb[24].mxu0 }
 0x2f0   : > { %v2666_v35 = vpop.f32.mrb[25].mxu0  ;;  %v2665_v3 = vadd.f32 %v2664_v32, %v5794_v22 }
 0x2f1   : > { %v2667_v31 = vadd.f32 %v2666_v35, %v5794_v22 }
 0x2f2   : > { %v2788_v0 = vmax.f32 %v2665_v3, 0.0 }
 0x2f3   : > { %v2670_v1 = vpop.f32.mrb[26].mxu0  ;;  %v2789_v63 = vmax.f32 %v2667_v31, 0.0 }
 0x2f4   : > { %v2671_v48 = vadd.f32 %v2670_v1, %v5812_v13  ;;  %v2672_v43 = vpop.f32.mrb[27].mxu0 }
 0x2f5   : > { %v2673_v59 = vadd.f32 %v2672_v43, %v5812_v13 }
 0x2f6   : > { %v2804_v2 = vmax.f32 %v2671_v48, 0.0 }
 0x2f7   : > { %v2805_v41 = vmax.f32 %v2673_v59, 0.0  ;;  %v2676_v39 = vpop.f32.mrb[28].mxu0 }
 0x2f8   : > { %v3804_v40 = vpack.c.bf16 %v2804_v2, %v2788_v0  ;;  %v2678_v44 = vpop.f32.mrb[29].mxu0  ;;  %v2677_v37 = vadd.f32 %v2676_v39, %v5808_v25 }
 0x2f9   : > { %v3802_v26 = vpack.c.bf16 %v2805_v41, %v2789_v63  ;;  %v2679_v49 = vadd.f32 %v2678_v44, %v5808_v25 }
 0x2fa   : > { %v2820_v52 = vmax.f32 %v2677_v37, 0.0 }
 0x2fb   : > { %v2682_v17 = vpop.f32.mrb[30].mxu0  ;;  %3803 = vmatprep.subr.bf16.mxu0 %v3802_v26  ;;  %v2821_v9 = vmax.f32 %v2679_v49, 0.0 }
 0x2fc   : > { %v2683_v16 = vadd.f32 %v2682_v17, %v5831_v36  ;;  %v2684_v58 = vpop.f32.mrb[31].mxu0  ;;  %3805 = vmatpush1.bf16.msra.mxu0 %v3804_v40 }
 0x2fd   : > { %v2685_v4 = vadd.f32 %v2684_v58, %v5831_v36 }
 0x2fe   : > { %v2753_v46 = vpop.f32.mrb[24].mxu1  ;;  %v2836_v51 = vmax.f32 %v2683_v16, 0.0 }
 0x2ff   : > { %v2755_v15 = vpop.f32.mrb[25].mxu1  ;;  %v2837_v23 = vmax.f32 %v2685_v4, 0.0  ;;  %v2754_v27 = vadd.f32 %v2753_v46, %v5794_v22 }
 0x300   : > { %v3808_v55 = vpack.c.bf16 %v2836_v51, %v2820_v52  ;;  %v2756_v54 = vadd.f32 %v2755_v15, %v5794_v22 }
 0x301   : > { %v3806_v18 = vpack.c.bf16 %v2837_v23, %v2821_v9  ;;  %v2790_v38 = vmax.f32 %v2754_v27, 0.0 }
 0x302   : > { %v2759_v12 = vpop.f32.mrb[26].mxu1  ;;  %v2791_v24 = vmax.f32 %v2756_v54, 0.0 }
 0x303   : > { %v2760_v33 = vadd.f32 %v2759_v12, %v5812_v13  ;;  %v2761_v30 = vpop.f32.mrb[27].mxu1  ;;  %3807 = vmatprep.subr.bf16.mxu0 %v3806_v18 }
 0x304   : > { %v2762_v50 = vadd.f32 %v2761_v30, %v5812_v13  ;;  %3809 = vmatpush1.bf16.msra.mxu0 %v3808_v55 }
 0x305   : > { %v2806_v60 = vmax.f32 %v2760_v33, 0.0 }
 0x306   : > { %v2807_v62 = vmax.f32 %v2762_v50, 0.0  ;;  %v2765_v20 = vpop.f32.mrb[28].mxu1 }
 0x307   : > { %v3812_v8 = vpack.c.bf16 %v2806_v60, %v2790_v38  ;;  %v2767_v19 = vpop.f32.mrb[29].mxu1  ;;  %3678 = vmatmul.mubr.msk.f32.vlgmr.msra.gmra.mrb[38].mxu0 %vm2051_vm6, %v5846_v5  ;;  %v2766_v22 = vadd.f32 %v2765_v20, %v5808_v25 }
 0x308   : > { %v3810_v6 = vpack.c.bf16 %v2807_v62, %v2791_v24  ;;  %v2768_v42 = vadd.f32 %v2767_v19, %v5808_v25  ;;  %v2845_v25 = vpop.permute.xlu0 %2844 }
 0x309   : > { %v2822_v7 = vmax.f32 %v2766_v22, 0.0 }
 0x30a   : > { %v2771_v28 = vpop.f32.mrb[30].mxu1  ;;  %3811 = vmatprep.subr.bf16.mxu1 %v3810_v6  ;;  %v2823_v34 = vmax.f32 %v2768_v42, 0.0 }
 0x30b   : > { %v2772_v13 = vadd.f32 %v2771_v28, %v5831_v36  ;;  %v2773_v45 = vpop.f32.mrb[31].mxu1  ;;  %3813 = vmatpush1.bf16.msra.mxu1 %v3812_v8 }
 0x30c   : > { %v2774_v61 = vadd.f32 %v2773_v45, %v5831_v36 }
 0x30d   : > { %v2838_v11 = vmax.f32 %v2772_v13, 0.0 }
 0x30e   : > { %v2839_v57 = vmax.f32 %v2774_v61, 0.0 }
 0x30f   : > { %v3816_v21 = vpack.c.bf16 %v2838_v11, %v2822_v7 }
 0x310   : > { %v3814_v29 = vpack.c.bf16 %v2839_v57, %v2823_v34 }
 0x312   : > { %3815 = vmatprep.subr.bf16.mxu1 %v3814_v29 }
 0x313   : > { %3817 = vmatpush1.bf16.msra.mxu1 %v3816_v21 }
 0x314   : > { %v2916_v56 = vpop.f32.mrb[32].mxu0 }
 0x315   : > { %v2917_v53 = vadd.f32 %v2916_v56, %v2845_v25  ;;  %v2918_v10 = vpop.f32.mrb[33].mxu0 }
 0x316   : > { %3679 = vmatmul.mubr.msk.f32.vlgmr.msra.gmra.mrb[38].mxu1 %vm2051_vm6, %v5846_v5  ;;  %v2919_v36 = vadd.f32 %v2918_v10, %v2845_v25 }
 0x318   : > { %v2987_v14 = vpop.f32.mrb[32].mxu1  ;;  %v3434_v3 = vcombine.low %v2917_v53, %v2919_v36 }
 0x319   : > { %v2988_v47 = vadd.f32 %v2987_v14, %v2845_v25  ;;  %v2989_v32 = vpop.f32.mrb[33].mxu1 }
 0x31a   : > { %v2990_v35 = vadd.f32 %v2989_v32, %v2845_v25  ;;  %3450 = vst [vmem:[%s5919_s8] sm:$0xff] %v3434_v3 }
 0x31c   : > { %v3435_v31 = vcombine.low %v2988_v47, %v2990_v35 }
 0x31e   : > { %3451 = vst [vmem:[%s5919_s8 + $0x8] sm:$0xff] %v3435_v31 }
 0x32f   : > { %v3058_v5 = vpop.f32.mrb[34].mxu0 }
 0x330   : > { %v3059_v1 = vadd.f32 %v3058_v5, %v2845_v25  ;;  %v3060_v48 = vpop.f32.mrb[35].mxu0 }
 0x331   : > { %v3061_v43 = vadd.f32 %v3060_v48, %v2845_v25 }
 0x333   : > { %v3436_v59 = vcombine.low %v3059_v1, %v3061_v43 }
 0x335   : > { %3452 = vst [vmem:[%s5919_s8 + $0x10] sm:$0xff] %v3436_v59 }
 0x33b   : > { %v3129_v0 = vpop.f32.mrb[34].mxu1 }
 0x33c   : > { %v3130_v2 = vadd.f32 %v3129_v0, %v2845_v25  ;;  %v3131_v63 = vpop.f32.mrb[35].mxu1 }
 0x33d   : > { %v3132_v41 = vadd.f32 %v3131_v63, %v2845_v25 }
 0x33f   : > { %v3437_v39 = vcombine.low %v3130_v2, %v3132_v41 }
 0x341   : > { %3453 = vst [vmem:[%s5919_s8 + $0x18] sm:$0xff] %v3437_v39 }
 0x387   : > { %v3200_v40 = vpop.f32.mrb[36].mxu0 }
 0x388   : > { %v3201_v44 = vadd.f32 %v3200_v40, %v2845_v25  ;;  %v3202_v26 = vpop.f32.mrb[37].mxu0 }
 0x389   : > { %v3203_v37 = vadd.f32 %v3202_v26, %v2845_v25 }
 0x38b   : > { %v3438_v49 = vcombine.low %v3201_v44, %v3203_v37 }
 0x38d   : > { %3454 = vst [vmem:[%s5919_s8 + $0x20] sm:$0xff] %v3438_v49 }
 0x393   : > { %v3271_v17 = vpop.f32.mrb[36].mxu1 }
 0x394   : > { %v3272_v16 = vadd.f32 %v3271_v17, %v2845_v25  ;;  %v3273_v58 = vpop.f32.mrb[37].mxu1 }
 0x395   : > { %v3274_v4 = vadd.f32 %v3273_v58, %v2845_v25 }
 0x397   : > { %v3439_v46 = vcombine.low %v3272_v16, %v3274_v4 }
 0x399   : > { %3455 = vst [vmem:[%s5919_s8 + $0x28] sm:$0xff] %v3439_v46 }
 0x3da   : > { %v3342_v52 = vpop.f32.mrb[38].mxu0 }
 0x3db   : > { %v3343_v51 = vadd.f32 %v3342_v52, %v2845_v25  ;;  %v3344_v15 = vpop.f32.mrb[39].mxu0 }
 0x3dc   : > { %v3345_v9 = vadd.f32 %v3344_v15, %v2845_v25 }
 0x3de   : > { %v3440_v23 = vcombine.low %v3343_v51, %v3345_v9 }
 0x3e0   : > { %3456 = vst [vmem:[%s5919_s8 + $0x30] sm:$0xff] %v3440_v23 }
 0x3e9   : > { %v3413_v55 = vpop.f32.mrb[38].mxu1 }
 0x3ea   : > { %v3414_v27 = vadd.f32 %v3413_v55, %v2845_v25  ;;  %v3415_v18 = vpop.f32.mrb[39].mxu1 }
 0x3eb   : > { %v3416_v54 = vadd.f32 %v3415_v18, %v2845_v25 }
 0x3ed   : > { %v3441_v12 = vcombine.low %v3414_v27, %v3416_v54 }
 0x3ef   : > { %3457 = vst [vmem:[%s5919_s8 + $0x38] sm:$0xff] %v3441_v12 }
 0x3f0   : > { %4001 = shalt.err (!%p3998_p4)
}
 0x3f1   : > { %s4002_s7 = scalar_lea.hbm %s5933_s20, 1024  ;;  %s4006_s18 = scalar_lea.hbm %s5989_s6, 2048 }
 0x3f2   : > { %p4003_p7 = scmp.ne.s32.totalorder %s5933_s20, %s4002_s7  ;;  %p4007_p1 = scmp.lt.u32.totalorder %s5933_s20, %s5989_s6 }
 0x3f3   : > { %p4008_p3 = scmp.lt.u32.totalorder %s4006_s18, %s4002_s7  ;;  %p4010_p8 = scmp.lt.u32.totalorder %s4002_s7, %s5933_s20 }
 0x3f4   : > { %p4004_p10 = pnand %p4003_p7, %p6220_p11 }
 0x3f5   : > { %p4009_p9 = por %p4008_p3, %p4007_p1 }
 0x3f6   : > { %p4005_p12 = pneg %p4004_p10 }
 0x3f7   : > { %p4011_p0 = por %p4010_p8, %p4009_p9 }
 0x3f9   : > { %p4012_p6 = pnand %p4011_p0, %p4005_p12 }
 0x3fb   : > { %4015 = shalt.err (!%p4012_p6)
}
 0x3fc   : > { %3884 = dma.vmem_to_hbm [thread:$0]  (%p6220_p11), %s5935_s14, 1024, %s5933_s20, %s3459_s27  }
 0x3fd PF: > { %s3487_s15 = sand.u32 1, %s4050_s21   ;;  %p6221_p13 = scmp.ne.s32.totalorder %s6030_s12, 0 }
 0x3fe   : > { %p6222_p2 = scmp.ge.s32.totalorder %s4070_s26, 2  ;;  %s3488_s16 = scalar_lea.sflag [#allocation4], %s3487_s15 }
 0x400   : > { %p3891_p5 = pnand %p6222_p2, %p6221_p13 }
 0x402   : > { %4045 = dma.done.wait (!%p3891_p5), %s3488_s16, 1024  }
 0x403   : > { %4047 = vsyncadd (!%p3891_p5), %s3488_s16, 4294966272  ;;  %s22_s26 = sadd.s32 1, %s4070_s26   ;;  %s6223_s21 = smov %s4054_s22 }
 0x404   : > { %p19_p4 = scmp.ge.s32.totalorder %s22_s26, 4   ;;  %s6224_s22 = smov %s4058_s23 }
 0x405   : > { %s6225_s23 = smov %s4170_s11  ;;  %s6226_s24 = smov %s4066_s25 }
 0x406   : > { %s6227_s25 = smov %s6229_s29  ;;  %21 = sbr.rel (!%p19_p4) target bundleno = 6 (0x6), region = 104 }
 0x40d   :  { %3493 = vsyncpa [#allocation3], 1 }
 0x40e   :  { %3495 = vsyncpa [#allocation3 + $0x1], 1 }
 0x40f   :  { %3496 = vsyncpa [#allocation4], 1 }
 0x410   :  { %3498 = vsyncpa [#allocation4 + $0x1], 1 }

</bundles_post_ra>
